<compile_context>
chip_gen: v7x
topology: tpu7x:2x2x1
jax: 0.10.0
libtpu: 0.0.40
codegen_flags: <defaults>
</compile_context>

<pallas_src>
import functools

import numpy as np
import jax
import jax.numpy as jnp
from jax import lax
from jax.experimental import pallas as pl
from jax.experimental.pallas import tpu as pltpu

F32 = jnp.float32
_HIGHEST = lax.Precision.HIGHEST
_VMEM_SPEC = pl.BlockSpec(memory_space=pltpu.MemorySpace.VMEM)


# ----------------------------------------------------------------------------
# Kernel 1: series decomposition + trend projection as ONE matmul per call.
#   y = M @ [x_0 | x_1 | ... ]   with M = [[I - A], [W_trend @ A]]
#   rows [0:L)   -> residual (seasonal_init)
#   rows [L:L+P) -> trend projection (Linear_Trend applied to the moving mean)
# ----------------------------------------------------------------------------
def _decomp_trend_kernel(m_ref, bt_ref, x_ref, res_ref, tp_ref):
    B, L, D = x_ref.shape
    # pack the batch into the lane axis: (L, B*D)
    x_slab = jnp.concatenate([x_ref[b] for b in range(B)], axis=1)
    y = jnp.dot(m_ref[...], x_slab, preferred_element_type=F32,
                precision=_HIGHEST)                                   # (L+P, B*D)
    for b in range(B):                                                # B tiny & static
        res_ref[b] = y[:L, b * D:(b + 1) * D].astype(res_ref.dtype)
    tp_ref[...] = (y[L:, :] + bt_ref[...]).astype(tp_ref.dtype)      # (P, B*D) slab


def decomp_and_trend(prep, x):
    # x: (B, L, D) -> res: (B, L, D) [for the SVD], trend slab: (P, B*D)
    B, L, D = x.shape
    P = prep["b_trend_col"].shape[0]
    return pl.pallas_call(
        _decomp_trend_kernel,
        out_shape=(jax.ShapeDtypeStruct((B, L, D), F32),
                   jax.ShapeDtypeStruct((P, B * D), F32)),
        in_specs=[_VMEM_SPEC, _VMEM_SPEC, _VMEM_SPEC],
        out_specs=(_VMEM_SPEC, _VMEM_SPEC),
    )(prep["M"], prep["b_trend_col"], x)


# ----------------------------------------------------------------------------
# Kernel 2: fused post-SVD tail, batch folded into the lane axis.
# ----------------------------------------------------------------------------
def _tail_kernel(u_ref, s_ref, v_ref, tp_ref, wl_ref, bl_ref, wcblk_ref, bc_ref,
                 wlc_ref, blc_ref, o_ref):
    B, P, D = o_ref.shape
    L = u_ref.shape[1]
    BD = B * D
    eps = 1e-12

    # pack the batch into the lane axis
    u_slab = jnp.concatenate([u_ref[b] for b in range(B)], axis=1)    # (L, B*L)
    v_slab = jnp.concatenate([v_ref[b] for b in range(B)], axis=1)    # (D, B*D)

    # Linear on U^T (all batches at once): upT[:, b*L+i] = U_p[b, i, :]
    upT = jnp.dot(wl_ref[...], u_slab, preferred_element_type=F32,
                  precision=_HIGHEST) + bl_ref[...]                   # (P, B*L)

    # Conv1d(kernel=3, padding=1) over the time axis: ONE matmul against the
    # tap-stacked, batch-block-diagonal weight, then +-1 time shifts.
    m_all = jnp.dot(upT, wcblk_ref[...], preferred_element_type=F32,
                    precision=_HIGHEST)                               # (P, 3*B*D)
    m0 = m_all[:, 0:BD]
    m1 = m_all[:, BD:2 * BD]
    m2 = m_all[:, 2 * BD:3 * BD]
    row = lax.broadcasted_iota(jnp.int32, (P, BD), 0)
    m0s = jnp.where(row == 0, jnp.zeros_like(m0), pltpu.roll(m0, 1, 0))           # t-1
    m2s = jnp.where(row == P - 1, jnp.zeros_like(m2), pltpu.roll(m2, P - 1, 0))   # t+1
    u_new = m0s + m1 + m2s + bc_ref[...]                              # (P, B*D)

    # A = U_p[:, :D, :]^T + U_new  (per batch), repacked as a (P, B*D) slab
    a = jnp.concatenate([upT[:, b * L:b * L + D] for b in range(B)], axis=1) + u_new

    # Linear_C on V^T plus residual: composes directly on the lane slab
    vm = jnp.dot(wlc_ref[...], v_slab, preferred_element_type=F32,
                 precision=_HIGHEST) + blc_ref[...] + v_slab          # (D, B*D)

    # F.normalize(p=2, dim=1): column-wise L2 normalisation
    a_n = a / jnp.maximum(jnp.sqrt(jnp.sum(a * a, axis=0, keepdims=True)), eps)
    v_n = vm / jnp.maximum(jnp.sqrt(jnp.sum(vm * vm, axis=0, keepdims=True)), eps)

    a_sc = a_n * s_ref[...]                                           # * diag(S)

    # seasonal = (U * S) @ V^T per batch (contract shared last axis), + trend
    for b in range(B):
        seas = lax.dot_general(a_sc[:, b * D:(b + 1) * D], v_n[:, b * D:(b + 1) * D],
                               (((1,), (1,)), ((), ())),
                               preferred_element_type=F32, precision=_HIGHEST)
        o_ref[b] = (seas + tp_ref[:, b * D:(b + 1) * D]).astype(o_ref.dtype)


def fused_tail(prep, U, S, V, tp_slab):
    # U: (B, L, L), S: (B, D), V: (B, D, D), tp_slab: (P, B*D) -> (B, P, D)
    B, L, _ = U.shape
    D = V.shape[1]
    P = tp_slab.shape[0]
    return pl.pallas_call(
        _tail_kernel,
        out_shape=jax.ShapeDtypeStruct((B, P, D), F32),
        in_specs=[_VMEM_SPEC] * 10,
        out_specs=_VMEM_SPEC,
    )(U, S.reshape(1, B * D), V, tp_slab,
      prep["W_lin"], prep["b_lin_col"], prep["W_conv_blk"], prep["b_conv_row"],
      prep["W_linC"], prep["b_linC_col"])


# ----------------------------------------------------------------------------
# Parameters (deterministic, matching the module's __init__ shapes/values)
# ----------------------------------------------------------------------------
def init_params(key, seq_len, pred_len, channels):
    ks = jax.random.split(key, 5)
    inv_sl = 1.0 / (seq_len ** 0.5)
    inv_c = 1.0 / (channels ** 0.5)
    p = {
        "W_lin": jnp.full((pred_len, seq_len), 1.0 / seq_len, F32),
        "b_lin": jax.random.uniform(ks[0], (pred_len,), F32, -inv_sl, inv_sl),
        "W_trend": jnp.full((pred_len, seq_len), 1.0 / seq_len, F32),
        "b_trend": jax.random.uniform(ks[1], (pred_len,), F32, -inv_sl, inv_sl),
        "W_linC": jnp.full((channels, channels), 1.0 / channels, F32),
        "b_linC": jax.random.uniform(ks[2], (channels,), F32, -inv_c, inv_c),
    }
    cout = channels if seq_len > channels else seq_len
    bound = 1.0 / ((seq_len * 3) ** 0.5)
    p["W_conv"] = jax.random.uniform(ks[3], (cout, seq_len, 3), F32, -bound, bound)
    p["b_conv"] = jax.random.uniform(ks[4], (cout,), F32, -bound, bound)
    return p


def _avg_matrix(L, k):
    # A such that moving_mean = A @ x (replicate-padded, stride-1 AvgPool1d)
    pad = (k - 1) // 2
    A = np.zeros((L, L), np.float32)
    for t in range(L):
        for s in range(-pad, pad + 1):
            j = min(max(t + s, 0), L - 1)
            A[t, j] += 1.0 / k
    return jnp.asarray(A)


def prepare_params(params, *, batch, seq_len, pred_len, channels, moving_avg_k):
    """One-time preprocessing of weights into kernel-ready layouts."""
    assert moving_avg_k % 2 == 1, "replicate-pad moving average needs an odd kernel"
    L, D, P, B = seq_len, channels, pred_len, batch
    A = _avg_matrix(L, moving_avg_k)
    M = jnp.concatenate([jnp.eye(L, dtype=F32) - A, params["W_trend"] @ A], axis=0)
    # conv taps: transposed, batch-block-diagonalised and stacked along lanes
    eye_b = jnp.eye(B, dtype=F32)
    wc_blocks = [jnp.kron(eye_b, params["W_conv"][:, :, k].T) for k in range(3)]
    prep = {
        "M": M,                                                    # (L+P, L)
        "b_trend_col": params["b_trend"].reshape(P, 1),
        "W_lin": params["W_lin"],                                  # (P, L)
        "b_lin_col": params["b_lin"].reshape(P, 1),
        "W_conv_blk": jnp.concatenate(wc_blocks, axis=1),          # (B*L, 3*B*D)
        "b_conv_row": jnp.tile(params["b_conv"].reshape(1, D), (1, B)),  # (1, B*D)
        "W_linC": params["W_linC"],                                # (D, D)
        "b_linC_col": params["b_linC"].reshape(D, 1),
    }
    return jax.tree_util.tree_map(lambda a: jnp.asarray(a, F32), prep)


# ----------------------------------------------------------------------------
# Forward (long_term_forecast path)
# ----------------------------------------------------------------------------
def model_forward(prep, x, *, pred_len):
    B, L, D = x.shape
    # TODO(synk): only the seq_len > enc_in branch of Model.encoder is implemented.
    assert L > D
    res, tp_slab = decomp_and_trend(prep, x)
    # TODO(synk): torch.svd(some=False) has no Pallas equivalent; XLA batched SVD here.
    # Note: the orthonormal completion columns of the full U (and per-vector signs)
    # are not unique, exactly as in the PyTorch model.
    U, S, Vh = jnp.linalg.svd(res, full_matrices=True)   # U:(B,L,L) S:(B,D) Vh:(B,D,D)
    V = jnp.swapaxes(Vh, 1, 2)                            # torch.svd returns V, not V^H
    out = fused_tail(prep, U, S, V, tp_slab)              # (B, P, D)
    return out[:, -pred_len:, :]


# ----------------------------------------------------------------------------
# Pure-JAX references (for correctness checking of the Pallas kernels)
# ----------------------------------------------------------------------------
def ref_decomp(x, k):
    L = x.shape[1]
    pad = (k - 1) // 2
    xp = jnp.concatenate([jnp.repeat(x[:, :1, :], pad, 1), x,
                          jnp.repeat(x[:, -1:, :], pad, 1)], axis=1)
    mean = jnp.mean(jnp.stack([xp[:, j:j + L, :] for j in range(k)], 0), axis=0)
    return x - mean, mean


def ref_tail(params, U, S, V, trend_proj, *, pred_len):
    B, L, _ = U.shape
    D = V.shape[1]
    U_p = jnp.swapaxes(U, 1, 2) @ params["W_lin"].T + params["b_lin"]      # (B, L, P)
    T = U_p.shape[2]
    xpad = jnp.pad(U_p, ((0, 0), (0, 0), (1, 1)))
    conv = sum(jnp.einsum('oc,bct->bot', params["W_conv"][:, :, j], xpad[:, :, j:j + T])
               for j in range(3)) + params["b_conv"][None, :, None]
    U_new = jnp.swapaxes(conv, 1, 2)                                        # (B, P, D)
    V_new = jnp.swapaxes(V, 1, 2) @ params["W_linC"].T + params["b_linC"]
    A = jnp.swapaxes(U_p[:, :D, :], 1, 2) + U_new
    Vm = jnp.swapaxes(V_new, 1, 2) + V
    eps = 1e-12
    Un = A / jnp.maximum(jnp.linalg.norm(A, axis=1, keepdims=True), eps)
    Vn = Vm / jnp.maximum(jnp.linalg.norm(Vm, axis=1, keepdims=True), eps)
    seas = jnp.einsum('bpd,bed->bpe', Un * S[:, None, :], Vn)
    out = seas + trend_proj
    return out[:, -pred_len:, :]


if __name__ == "__main__":
    B, seq_len, enc_in = 2, 16, 8
    pred_len, moving_avg_k = 8, 5

    key = jax.random.PRNGKey(0)
    kx, kp = jax.random.split(key)
    x = jax.random.normal(kx, (B, seq_len, enc_in), F32)
    params = init_params(kp, seq_len, pred_len, enc_in)
    prep = prepare_params(params, batch=B, seq_len=seq_len, pred_len=pred_len,
                          channels=enc_in, moving_avg_k=moving_avg_k)

    # Full Pallas-backed forward: 2 pallas_calls + XLA SVD, jitted end to end.
    fwd = jax.jit(functools.partial(model_forward, pred_len=pred_len))
    out = jax.block_until_ready(fwd(prep, x))
    assert out.shape == (B, pred_len, enc_in)

    # --- Correctness: decomposition + trend kernel vs pure-JAX reference ---
    res_p, tp_slab = decomp_and_trend(prep, x)
    with jax.default_matmul_precision("highest"):
        res_r, mean_r = ref_decomp(x, moving_avg_k)
        tp_r = (jnp.einsum('pl,bld->bpd', params["W_trend"], mean_r)
                + params["b_trend"][None, :, None])
    tp_p = jnp.swapaxes(tp_slab.reshape(pred_len, B, enc_in), 0, 1)   # (B, P, D)
    assert float(jnp.max(jnp.abs(res_p - res_r))) < 2e-3
    assert float(jnp.max(jnp.abs(tp_p - tp_r))) < 2e-3

    # --- Correctness: fused post-SVD tail vs reference (same SVD factors) ---
    U, S, Vh = jnp.linalg.svd(res_p, full_matrices=True)
    V = jnp.swapaxes(Vh, 1, 2)
    out_k = jax.block_until_ready(fused_tail(prep, U, S, V, tp_slab))
    with jax.default_matmul_precision("highest"):
        out_r = ref_tail(params, U, S, V, tp_p, pred_len=pred_len)
        out_r = jax.block_until_ready(out_r)
    err = float(jnp.max(jnp.abs(out_k[:, -pred_len:, :] - out_r)))
    assert err < 2e-3, f"mismatch {err}"

    print("KERNEL_OK")
</pallas_src>

<mosaic_0001>
module attributes {stable_mosaic.version = 11 : i64} {
  func.func @_decomp_trend_kernel(%arg0: memref<24x16xf32, #tpu.memory_space<vmem>>, %arg1: memref<8x1xf32, #tpu.memory_space<vmem>>, %arg2: memref<2x16x8xf32, #tpu.memory_space<vmem>>, %arg3: memref<2x16x8xf32, #tpu.memory_space<vmem>>, %arg4: memref<8x16xf32, #tpu.memory_space<vmem>>) attributes {dimension_semantics = [], scalar_prefetch = 0 : i64, scratch_operands = 0 : i64, tpu.core_type = #tpu.core_type<tc>} {
    %c0 = arith.constant 0 : index
    %c0_0 = arith.constant 0 : index
    %c0_1 = arith.constant 0 : index
    %0 = vector.load %arg2[%c0, %c0_0, %c0_1] : memref<2x16x8xf32, #tpu.memory_space<vmem>>, vector<1x16x8xf32>
    %1 = vector.shape_cast %0 : vector<1x16x8xf32> to vector<16x8xf32>
    %c1 = arith.constant 1 : index
    %c0_2 = arith.constant 0 : index
    %c0_3 = arith.constant 0 : index
    %2 = vector.load %arg2[%c1, %c0_2, %c0_3] : memref<2x16x8xf32, #tpu.memory_space<vmem>>, vector<1x16x8xf32>
    %3 = vector.shape_cast %2 : vector<1x16x8xf32> to vector<16x8xf32>
    %4 = tpu.concatenate %1, %3 in 1 : vector<16x8xf32>, vector<16x8xf32> -> vector<16x16xf32>
    %c0_4 = arith.constant 0 : index
    %c0_5 = arith.constant 0 : index
    %5 = vector.load %arg0[%c0_4, %c0_5] : memref<24x16xf32, #tpu.memory_space<vmem>>, vector<24x16xf32>
    %cst = arith.constant dense<0.000000e+00> : vector<24x16xf32>
    %6 = tpu.matmul %5, %4, %cst {dimension_numbers = #tpu.dot_dimension_numbers<[1], [0], [0], [1], [0, 0, 1, 1], [], []>, precision = #tpu.contract_precision<fp32>} : vector<24x16xf32>, vector<16x16xf32>, vector<24x16xf32> -> vector<24x16xf32>
    %7 = vector.extract_strided_slice %6 {offsets = [0, 0], sizes = [16, 8], strides = [1, 1]} : vector<24x16xf32> to vector<16x8xf32>
    %c0_6 = arith.constant 0 : index
    %c0_7 = arith.constant 0 : index
    %c0_8 = arith.constant 0 : index
    %8 = vector.load %arg3[%c0_6, %c0_7, %c0_8] : memref<2x16x8xf32, #tpu.memory_space<vmem>>, vector<1x16x8xf32>
    %9 = vector.shape_cast %8 : vector<1x16x8xf32> to vector<16x8xf32>
    %10 = vector.shape_cast %7 : vector<16x8xf32> to vector<1x16x8xf32>
    tpu.vector_store %arg3[%c0_6, %c0_7, %c0_8], %10 {strides = array<i32>} : memref<2x16x8xf32, #tpu.memory_space<vmem>>, vector<1x16x8xf32>,
    %11 = vector.extract_strided_slice %6 {offsets = [0, 8], sizes = [16, 8], strides = [1, 1]} : vector<24x16xf32> to vector<16x8xf32>
    %c1_9 = arith.constant 1 : index
    %c0_10 = arith.constant 0 : index
    %c0_11 = arith.constant 0 : index
    %12 = vector.load %arg3[%c1_9, %c0_10, %c0_11] : memref<2x16x8xf32, #tpu.memory_space<vmem>>, vector<1x16x8xf32>
    %13 = vector.shape_cast %12 : vector<1x16x8xf32> to vector<16x8xf32>
    %14 = vector.shape_cast %11 : vector<16x8xf32> to vector<1x16x8xf32>
    tpu.vector_store %arg3[%c1_9, %c0_10, %c0_11], %14 {strides = array<i32>} : memref<2x16x8xf32, #tpu.memory_space<vmem>>, vector<1x16x8xf32>,
    %15 = vector.extract_strided_slice %6 {offsets = [16, 0], sizes = [8, 16], strides = [1, 1]} : vector<24x16xf32> to vector<8x16xf32>
    %c0_12 = arith.constant 0 : index
    %c0_13 = arith.constant 0 : index
    %16 = vector.load %arg1[%c0_12, %c0_13] : memref<8x1xf32, #tpu.memory_space<vmem>>, vector<8x1xf32>
    %17 = vector.broadcast %16 : vector<8x1xf32> to vector<8x16xf32>
    %18 = arith.addf %15, %17 : vector<8x16xf32>
    %c0_14 = arith.constant 0 : index
    %c0_15 = arith.constant 0 : index
    %19 = vector.load %arg4[%c0_14, %c0_15] : memref<8x16xf32, #tpu.memory_space<vmem>>, vector<8x16xf32>
    tpu.vector_store %arg4[%c0_14, %c0_15], %18 {strides = array<i32>} : memref<8x16xf32, #tpu.memory_space<vmem>>, vector<8x16xf32>,
    return
  }
}

module attributes {stable_mosaic.version = 11 : i64} {
  func.func @_tail_kernel(%arg0: memref<2x16x16xf32, #tpu.memory_space<vmem>>, %arg1: memref<1x16xf32, #tpu.memory_space<vmem>>, %arg2: memref<2x8x8xf32, #tpu.memory_space<vmem>>, %arg3: memref<8x16xf32, #tpu.memory_space<vmem>>, %arg4: memref<8x16xf32, #tpu.memory_space<vmem>>, %arg5: memref<8x1xf32, #tpu.memory_space<vmem>>, %arg6: memref<32x48xf32, #tpu.memory_space<vmem>>, %arg7: memref<1x16xf32, #tpu.memory_space<vmem>>, %arg8: memref<8x8xf32, #tpu.memory_space<vmem>>, %arg9: memref<8x1xf32, #tpu.memory_space<vmem>>, %arg10: memref<2x8x8xf32, #tpu.memory_space<vmem>>) attributes {dimension_semantics = [], scalar_prefetch = 0 : i64, scratch_operands = 0 : i64, tpu.core_type = #tpu.core_type<tc>} {
    %c0 = arith.constant 0 : index
    %c0_0 = arith.constant 0 : index
    %c0_1 = arith.constant 0 : index
    %0 = vector.load %arg0[%c0, %c0_0, %c0_1] : memref<2x16x16xf32, #tpu.memory_space<vmem>>, vector<1x16x16xf32>
    %1 = vector.shape_cast %0 : vector<1x16x16xf32> to vector<16x16xf32>
    %c1 = arith.constant 1 : index
    %c0_2 = arith.constant 0 : index
    %c0_3 = arith.constant 0 : index
    %2 = vector.load %arg0[%c1, %c0_2, %c0_3] : memref<2x16x16xf32, #tpu.memory_space<vmem>>, vector<1x16x16xf32>
    %3 = vector.shape_cast %2 : vector<1x16x16xf32> to vector<16x16xf32>
    %4 = tpu.concatenate %1, %3 in 1 : vector<16x16xf32>, vector<16x16xf32> -> vector<16x32xf32>
    %c0_4 = arith.constant 0 : index
    %c0_5 = arith.constant 0 : index
    %c0_6 = arith.constant 0 : index
    %5 = vector.load %arg2[%c0_4, %c0_5, %c0_6] : memref<2x8x8xf32, #tpu.memory_space<vmem>>, vector<1x8x8xf32>
    %6 = vector.shape_cast %5 : vector<1x8x8xf32> to vector<8x8xf32>
    %c1_7 = arith.constant 1 : index
    %c0_8 = arith.constant 0 : index
    %c0_9 = arith.constant 0 : index
    %7 = vector.load %arg2[%c1_7, %c0_8, %c0_9] : memref<2x8x8xf32, #tpu.memory_space<vmem>>, vector<1x8x8xf32>
    %8 = vector.shape_cast %7 : vector<1x8x8xf32> to vector<8x8xf32>
    %9 = tpu.concatenate %6, %8 in 1 : vector<8x8xf32>, vector<8x8xf32> -> vector<8x16xf32>
    %c0_10 = arith.constant 0 : index
    %c0_11 = arith.constant 0 : index
    %10 = vector.load %arg4[%c0_10, %c0_11] : memref<8x16xf32, #tpu.memory_space<vmem>>, vector<8x16xf32>
    %cst = arith.constant dense<0.000000e+00> : vector<8x32xf32>
    %11 = tpu.matmul %10, %4, %cst {dimension_numbers = #tpu.dot_dimension_numbers<[1], [0], [0], [1], [0, 0, 1, 1], [], []>, precision = #tpu.contract_precision<fp32>} : vector<8x16xf32>, vector<16x32xf32>, vector<8x32xf32> -> vector<8x32xf32>
    %c0_12 = arith.constant 0 : index
    %c0_13 = arith.constant 0 : index
    %12 = vector.load %arg5[%c0_12, %c0_13] : memref<8x1xf32, #tpu.memory_space<vmem>>, vector<8x1xf32>
    %13 = vector.broadcast %12 : vector<8x1xf32> to vector<8x32xf32>
    %14 = arith.addf %11, %13 : vector<8x32xf32>
    %c0_14 = arith.constant 0 : index
    %c0_15 = arith.constant 0 : index
    %15 = vector.load %arg6[%c0_14, %c0_15] : memref<32x48xf32, #tpu.memory_space<vmem>>, vector<32x48xf32>
    %cst_16 = arith.constant dense<0.000000e+00> : vector<8x48xf32>
    %16 = tpu.matmul %14, %15, %cst_16 {dimension_numbers = #tpu.dot_dimension_numbers<[1], [0], [0], [1], [0, 0, 1, 1], [], []>, precision = #tpu.contract_precision<fp32>} : vector<8x32xf32>, vector<32x48xf32>, vector<8x48xf32> -> vector<8x48xf32>
    %17 = vector.extract_strided_slice %16 {offsets = [0, 0], sizes = [8, 16], strides = [1, 1]} : vector<8x48xf32> to vector<8x16xf32>
    %18 = vector.extract_strided_slice %16 {offsets = [0, 16], sizes = [8, 16], strides = [1, 1]} : vector<8x48xf32> to vector<8x16xf32>
    %19 = vector.extract_strided_slice %16 {offsets = [0, 32], sizes = [8, 16], strides = [1, 1]} : vector<8x48xf32> to vector<8x16xf32>
    %20 = tpu.iota {dimensions = array<i32: 0>} : vector<8x16xi32>
    %c0_i32 = arith.constant 0 : i32
    %21 = vector.broadcast %c0_i32 : i32 to vector<8x16xi32>
    %22 = arith.cmpi eq, %20, %21 : vector<8x16xi32>
    %cst_17 = arith.constant 0.000000e+00 : f32
    %23 = vector.broadcast %cst_17 : f32 to vector<8x16xf32>
    %c1_i32 = arith.constant 1 : i32
    %24 = tpu.dynamic_rotate %17 by %c1_i32 dim 0 : vector<8x16xf32>, i32 -> vector<8x16xf32>
    %25 = arith.select %22, %23, %24 : vector<8x16xi1>, vector<8x16xf32>
    %c7_i32 = arith.constant 7 : i32
    %26 = vector.broadcast %c7_i32 : i32 to vector<8x16xi32>
    %27 = arith.cmpi eq, %20, %26 : vector<8x16xi32>
    %cst_18 = arith.constant 0.000000e+00 : f32
    %28 = vector.broadcast %cst_18 : f32 to vector<8x16xf32>
    %c7_i32_19 = arith.constant 7 : i32
    %29 = tpu.dynamic_rotate %19 by %c7_i32_19 dim 0 : vector<8x16xf32>, i32 -> vector<8x16xf32>
    %30 = arith.select %27, %28, %29 : vector<8x16xi1>, vector<8x16xf32>
    %31 = arith.addf %25, %18 : vector<8x16xf32>
    %32 = arith.addf %31, %30 : vector<8x16xf32>
    %c0_20 = arith.constant 0 : index
    %c0_21 = arith.constant 0 : index
    %33 = vector.load %arg7[%c0_20, %c0_21] : memref<1x16xf32, #tpu.memory_space<vmem>>, vector<1x16xf32>
    %34 = vector.broadcast %33 : vector<1x16xf32> to vector<8x16xf32>
    %35 = arith.addf %32, %34 : vector<8x16xf32>
    %36 = vector.extract_strided_slice %14 {offsets = [0, 0], sizes = [8, 8], strides = [1, 1]} : vector<8x32xf32> to vector<8x8xf32>
    %37 = vector.extract_strided_slice %14 {offsets = [0, 16], sizes = [8, 8], strides = [1, 1]} : vector<8x32xf32> to vector<8x8xf32>
    %38 = tpu.concatenate %36, %37 in 1 : vector<8x8xf32>, vector<8x8xf32> -> vector<8x16xf32>
    %39 = arith.addf %38, %35 : vector<8x16xf32>
    %c0_22 = arith.constant 0 : index
    %c0_23 = arith.constant 0 : index
    %40 = vector.load %arg8[%c0_22, %c0_23] : memref<8x8xf32, #tpu.memory_space<vmem>>, vector<8x8xf32>
    %cst_24 = arith.constant dense<0.000000e+00> : vector<8x16xf32>
    %41 = tpu.matmul %40, %9, %cst_24 {dimension_numbers = #tpu.dot_dimension_numbers<[1], [0], [0], [1], [0, 0, 1, 1], [], []>, precision = #tpu.contract_precision<fp32>} : vector<8x8xf32>, vector<8x16xf32>, vector<8x16xf32> -> vector<8x16xf32>
    %c0_25 = arith.constant 0 : index
    %c0_26 = arith.constant 0 : index
    %42 = vector.load %arg9[%c0_25, %c0_26] : memref<8x1xf32, #tpu.memory_space<vmem>>, vector<8x1xf32>
    %43 = vector.broadcast %42 : vector<8x1xf32> to vector<8x16xf32>
    %44 = arith.addf %41, %43 : vector<8x16xf32>
    %45 = arith.addf %44, %9 : vector<8x16xf32>
    %46 = arith.mulf %39, %39 : vector<8x16xf32>
    %cst_27 = arith.constant dense<0.000000e+00> : vector<16xf32>
    %47 = vector.multi_reduction <add>, %46, %cst_27 [0] : vector<8x16xf32> to vector<16xf32>
    %48 = vector.shape_cast %47 : vector<16xf32> to vector<1x16xf32>
    %49 = math.sqrt %48 : vector<1x16xf32>
    %cst_28 = arith.constant 9.99999996E-13 : f32
    %50 = vector.broadcast %cst_28 : f32 to vector<1x16xf32>
    %51 = arith.maximumf %49, %50 : vector<1x16xf32>
    %52 = vector.broadcast %51 : vector<1x16xf32> to vector<8x16xf32>
    %53 = arith.divf %39, %52 : vector<8x16xf32>
    %54 = arith.mulf %45, %45 : vector<8x16xf32>
    %cst_29 = arith.constant dense<0.000000e+00> : vector<16xf32>
    %55 = vector.multi_reduction <add>, %54, %cst_29 [0] : vector<8x16xf32> to vector<16xf32>
    %56 = vector.shape_cast %55 : vector<16xf32> to vector<1x16xf32>
    %57 = math.sqrt %56 : vector<1x16xf32>
    %cst_30 = arith.constant 9.99999996E-13 : f32
    %58 = vector.broadcast %cst_30 : f32 to vector<1x16xf32>
    %59 = arith.maximumf %57, %58 : vector<1x16xf32>
    %60 = vector.broadcast %59 : vector<1x16xf32> to vector<8x16xf32>
    %61 = arith.divf %45, %60 : vector<8x16xf32>
    %c0_31 = arith.constant 0 : index
    %c0_32 = arith.constant 0 : index
    %62 = vector.load %arg1[%c0_31, %c0_32] : memref<1x16xf32, #tpu.memory_space<vmem>>, vector<1x16xf32>
    %63 = vector.broadcast %62 : vector<1x16xf32> to vector<8x16xf32>
    %64 = arith.mulf %53, %63 : vector<8x16xf32>
    %65 = vector.extract_strided_slice %64 {offsets = [0, 0], sizes = [8, 8], strides = [1, 1]} : vector<8x16xf32> to vector<8x8xf32>
    %66 = vector.extract_strided_slice %61 {offsets = [0, 0], sizes = [8, 8], strides = [1, 1]} : vector<8x16xf32> to vector<8x8xf32>
    %cst_33 = arith.constant dense<0.000000e+00> : vector<8x8xf32>
    %67 = tpu.matmul %65, %66, %cst_33 {dimension_numbers = #tpu.dot_dimension_numbers<[1], [1], [0], [0], [0, 0, 1, 0], [], []>, precision = #tpu.contract_precision<fp32>} : vector<8x8xf32>, vector<8x8xf32>, vector<8x8xf32> -> vector<8x8xf32>
    %c0_34 = arith.constant 0 : index
    %c0_35 = arith.constant 0 : index
    %68 = vector.load %arg3[%c0_34, %c0_35] : memref<8x16xf32, #tpu.memory_space<vmem>>, vector<8x8xf32>
    %69 = arith.addf %67, %68 : vector<8x8xf32>
    %c0_36 = arith.constant 0 : index
    %c0_37 = arith.constant 0 : index
    %c0_38 = arith.constant 0 : index
    %70 = vector.load %arg10[%c0_36, %c0_37, %c0_38] : memref<2x8x8xf32, #tpu.memory_space<vmem>>, vector<1x8x8xf32>
    %71 = vector.shape_cast %70 : vector<1x8x8xf32> to vector<8x8xf32>
    %72 = vector.shape_cast %69 : vector<8x8xf32> to vector<1x8x8xf32>
    tpu.vector_store %arg10[%c0_36, %c0_37, %c0_38], %72 {strides = array<i32>} : memref<2x8x8xf32, #tpu.memory_space<vmem>>, vector<1x8x8xf32>,
    %73 = vector.extract_strided_slice %64 {offsets = [0, 8], sizes = [8, 8], strides = [1, 1]} : vector<8x16xf32> to vector<8x8xf32>
    %74 = vector.extract_strided_slice %61 {offsets = [0, 8], sizes = [8, 8], strides = [1, 1]} : vector<8x16xf32> to vector<8x8xf32>
    %cst_39 = arith.constant dense<0.000000e+00> : vector<8x8xf32>
    %75 = tpu.matmul %73, %74, %cst_39 {dimension_numbers = #tpu.dot_dimension_numbers<[1], [1], [0], [0], [0, 0, 1, 0], [], []>, precision = #tpu.contract_precision<fp32>} : vector<8x8xf32>, vector<8x8xf32>, vector<8x8xf32> -> vector<8x8xf32>
    %c0_40 = arith.constant 0 : index
    %c8 = arith.constant 8 : index
    %76 = vector.load %arg3[%c0_40, %c8] : memref<8x16xf32, #tpu.memory_space<vmem>>, vector<8x8xf32>
    %77 = arith.addf %75, %76 : vector<8x8xf32>
    %c1_41 = arith.constant 1 : index
    %c0_42 = arith.constant 0 : index
    %c0_43 = arith.constant 0 : index
    %78 = vector.load %arg10[%c1_41, %c0_42, %c0_43] : memref<2x8x8xf32, #tpu.memory_space<vmem>>, vector<1x8x8xf32>
    %79 = vector.shape_cast %78 : vector<1x8x8xf32> to vector<8x8xf32>
    %80 = vector.shape_cast %77 : vector<8x8xf32> to vector<1x8x8xf32>
    tpu.vector_store %arg10[%c1_41, %c0_42, %c0_43], %80 {strides = array<i32>} : memref<2x8x8xf32, #tpu.memory_space<vmem>>, vector<1x8x8xf32>,
    return
  }
}

</mosaic_0001>

<bundles_post_ra>
// kernel: custom-call.46
= control target key start
LH: loop header
LB: loop body
LE: loop exit
PB: predicated region body
PF: predicated region fallthrough
CT: control target
= control target key end

     0   :  { %s736_s9 = smov 0   ;;  %s738_s10 = smov 0   ;;  %s918_s0 = inlined_call_operand.vmem [shape: f32[2,16,8], index: 0, kind: input, shape index: {}]   ;;  %s919_s1 = inlined_call_operand.vmem [shape: f32[2,16,8], index: 1, kind: output, shape index: {0}]   ;;  %s920_s2 = inlined_call_operand.vmem [shape: f32[2,8], index: 2, kind: output, shape index: {1}]  }
   0x1   :  { %s740_s11 = smov 0   ;;  %s742_s12 = smov 0  }
   0x2   :  { %s744_s13 = smov 0  }
   0x3 LB: > { %s28_s14 = sadd.s32 1, %s709_s12  ;;  %s578_s15 = sadd.s32 4294967295, %s713_s13   ;;  %s713_s13 = sphi %s744_s13, %s9_s13   ;;  %s709_s12 = sphi %s742_s12, %s927_s12   ;;  %s705_s11 = sphi %s740_s11, %s926_s11   ;;  %s701_s10 = sphi %s738_s10, %s925_s10   ;;  %s697_s9 = sphi %s736_s9, %s924_s9  }
   0x4   : > { %p30_p0 = scmp.ge.s32.totalorder %s28_s14, 2  ;;  %s33_s16 = ssub.s32 0, %s709_s12 }
   0x5   : > { %s580_s17 = smin.u32 %s709_s12, %s33_s16  ;;  %p57_p1 = scmp.ne.s32.totalorder %s701_s10, %s697_s9 }
   0x6   : > { %s929_s14 = smov (%p30_p0, %s28_s14), 0  ;;  %s35_s18 = sshrl.u32 %s580_s17, 3 }
   0x7   : > { %s39_s19 = ssub.s32 0, %s929_s14  ;;  %p58_p2 = scmp.eq.s32.totalorder %s578_s15, 1 }
   0x8   : > { %s581_s20 = smin.u32 %s39_s19, %s929_s14  ;;  %s47_s24 = sadd.s32 1, %s701_s10 }
   0x9   : > { %s41_s21 = sshrl.u32 %s581_s20, 3  ;;  %p773_p3 = por %p58_p2, %p57_p1 }
   0xa   : > { %s44_s23 = ssub.s32 %s35_s18, %s41_s21  ;;  %p583_p5 = scmp.ge.s32.totalorder %s713_s13, 2 }
   0xb   : > { %p45_p4 = scmp.eq.s32.totalorder %s44_s23, 0  ;;  %s82_s26 = sand.u32 (!%p583_p5), 1, %s713_s13  }
   0xc   : > { %80 = sbr.rel (%p583_p5) target bundleno = 19 (0x13), region = 16  ;;  %s609_s27 = sshll.u32 (!%p583_p5), %s709_s12, 4 }
   0xd   : > { %s779_s25 = scalar_select %p45_p4, %s701_s10, %s47_s24  }
   0xe   : > { %s584_s28 = sshll.u32 (!%p583_p5), %s82_s26, 4  ;;  %s90_s3 = scalar_lea.vmem (!%p583_p5), %s918_s0, %s609_s27 }
   0xf   : > { %v120_v0 = vld [vmem:[%s90_s3] sm:$0xff] (!%p583_p5)  ;;  %v122_v1 = vld [vmem:[%s90_s3 + $0x8] sm:$0xff] (!%p583_p5)  ;;  %s84_s4 = scalar_lea.vmem (!%p583_p5), [#allocation0], %s584_s28 }
  0x10   : > { %121 = vst [vmem:[%s84_s4] sm:$0xff] (!%p583_p5), %v120_v0  ;;  %123 = vst [vmem:[%s84_s4 + $0x8] sm:$0xff] (!%p583_p5), %v122_v1 }
  0x13 PF: > { %p587_p6 = scmp.ge.s32.totalorder %s713_s13, 1  ;;  %p128_p7 = scmp.lt.s32.totalorder %s713_s13, 3 }
  0x15   : > { %p129_p8 = pnand %p587_p6, %p128_p7 }
  0x17   : > { %132 = sbr.rel (%p129_p8) target bundleno = 339 (0x153), region = 54 }
  0x1e   : > { %s135_s5 = sand.u32 1, %s578_s15   ;;  %s149_s6 = sand.u32 1, %s697_s9   ;;  %v719_v4 = vmov 0.0  }
  0x1f   : > { %s588_s7 = sshll.u32 %s135_s5, 4  ;;  %s792_s8 = sshll.u32 %s149_s6, 1 }
  0x20   : > { %s160_s16 = sand.u32 7, %s705_s11   ;;  %s137_s17 = scalar_lea.vmem [#allocation0], %s588_s7 }
  0x21   : > { %v162_v2 = vld [vmem:[%s137_s17] sm:$0xff]  ;;  %v591_v3 = vld [vmem:[%s137_s17 + $0x8] sm:$0xff]  ;;  %s795_s18 = scalar_lea.vmem [#allocation1], %s588_s7  ;;  %s799_s19 = scalar_lea.vmem [#allocation2], %s160_s16 }
  0x22   : > { %163 = vst [vmem:[%s795_s18] sm:$0xff] %v162_v2  ;;  %592 = vst [vmem:[%s795_s18 + $0x8] sm:$0xff] %v591_v3  ;;  %s151_s9 = scalar_lea.vmem [#allocation3], %s792_s8  ;;  %s803_s15 = smov 0  }
  0x23   : > { %168 = vst [vmem:[%s799_s19] sm:$0x1] %v719_v4 }
  0x24 LB: >> { %v176_v5 = vlaneseq  ;;  %v813_v8 = vstv %s717_s15  ;;  %s213_s20 = scalar_lea.vmem %s795_s18, %s717_s15 [#allocation1]  ;;  %s289_s21 = scalar_lea.vmem [#allocation4], %s717_s15  ;;  %s717_s15 = sphi %s803_s15, %s174_s15  }
  0x25   : >> { %s306_s23 = smov [#allocation4] }
  0x26   : >> { %v810_v7 = vshrl.u32 %v176_v5, 7  ;;  %v842_v56 = vand.u32 127, %v176_v5 }
  0x28   : >> { %vm180_vm0 = vcmp.gt.s32.totalorder %v810_v7, %v813_v8  ;;  %v187_v10 = vadd.s32 8, %v810_v7  ;;  %v252_v7 = vmov %v810_v7  ;;  %vm846_vm12 = vcmp.eq.s32.totalorder %v842_v56, %v813_v8 }
  0x29   : >> { %v175_v6 = vld [vmem:[%s795_s18] sm:$0xff]  ;;  %v593_v9 = vld [vmem:[%s795_s18 + $0x8] sm:$0xff]  ;;  %v271_v52 = vadd.s32 8, %v252_v7  ;;  %s249_s18 = smov %s795_s18  ;;  %vm256_vm10 = vcmp.gt.s32.totalorder %v252_v7, %v813_v8  ;;  %v309_v7 = vmov %v810_v7 }
  0x2a   : >> { %v181_v11 = vsel %vm180_vm0, %v175_v6, 0.0  ;;  %vm189_vm1 = vcmp.gt.s32.totalorder %v187_v10, %v813_v8  ;;  %v214_v22 = vld [vmem:[%s213_s20] ss:$0 sm:$0xff]  ;;  %v595_v55 = vld [vmem:[%s249_s18 + $0x8] sm:$0xff]  ;;  %vm342_vm0 = vcmp.gt.s32.totalorder %v842_v56, %v813_v8 }
  0x2b   : >> { %v182_v12 = vmul.f32 %v181_v11, %v181_v11  ;;  %v192_v13 = vsel %vm189_vm1, %v593_v9, 0.0  ;;  %v215_v23 = vand.u32 2147483647, %v214_v22  ;;  %vm240_vm7 = vcmp.lt.f32.partialorder %v214_v22, 0.0  ;;  %v253_v54 = vld [vmem:[%s249_s18] sm:$0xff]  ;;  %s305_s18 = smov %s795_s18 }
  0x2c   : >> { %v193_v14 = vmul.f32 %v192_v13, %v192_v13  ;;  %vm273_vm8 = vcmp.gt.s32.totalorder %v271_v52, %v813_v8  ;;  %vm274_vm9 = vcmp.lt.s32.totalorder %v271_v52, 16  ;;  %v257_v58 = vsel %vm256_vm10, %v253_v54, 0.0  ;;  %v302_v9 = vld [vmem:[%s799_s19] ss:$0 sm:$0xff] }
  0x2d   : >> { %v216_v28 = vmax.f32 %v215_v23, 0.0  ;;  %vm275_vm11 = vmand %vm273_vm8, %vm274_vm9 }
  0x2e   : >> { %v194_v15 = vadd.f32 %v193_v14, %v182_v12  ;;  %v276_v59 = vsel %vm275_vm11, %v595_v55, 0.0  ;;  %v720_v14 = vmov 1.0  }
  0x30   : >> { %v195_v16 = vrot.slane %v194_v15, 4 }
  0x32   : >> { %v196_v17 = vadd.f32 %v195_v16, %v194_v15  ;;  %v314_v15 = vadd.s32 8, %v309_v7  ;;  %v312_v16 = vld [vmem:[%s305_s18] sm:$0xff]  ;;  %v333_v7 = vmov %v810_v7 }
  0x33   : >> { %vm350_vm14 = vcmp.ge.s32.totalorder %v333_v7, %v813_v8 }
  0x34   : >> { %v197_v18 = vrot.slane %v196_v17, 2  ;;  %vm320_vm13 = vcmp.lt.s32.totalorder %v314_v15, 16  ;;  %vm351_vm1 = vmand %vm846_vm12, %vm350_vm14 }
  0x36   : >> { %v198_v19 = vadd.f32 %v197_v18, %v196_v17  ;;  %v597_v17 = vld [vmem:[%s305_s18 + $0x8] sm:$0xff]  ;;  %s329_s18 = smov %s305_s18 }
  0x37   : >> { %s375_s24 = scalar_lea.vmem %s329_s18, %s717_s15  ;;  %s174_s15 = sadd.s32 1, %s717_s15  }
  0x38   : >> { %v199_v20 = vrot.slane %v198_v19, 1  ;;  %p171_p9 = scmp.ge.s32.totalorder %s174_s15, 8  }
  0x39   : > { %s610_s26 = sshll.u32 (%p171_p9), %s705_s11, 4 }
  0x3a   : >> { %v820_v21 = vadd.f32 %v199_v20, %v198_v19  ;;  %s402_s29 = scalar_lea.vmem (%p171_p9), %s919_s1, %s610_s26 }
  0x3c   : >> { %661 = vrsqrt.f32 %v820_v21  ;;  %vm203_vm2 = vcmp.eq.f32.partialorder %v820_v21, inf  ;;  %v206_v25 = vand.u32 2147483648, %v820_v21  ;;  %vm205_vm3 = vcmp.eq.f32.partialorder %v820_v21, 0.0 }
  0x46   : >> { %v662_v24 = vpop.eup %661 }
  0x47   : >> { %v202_v26 = vmul.f32 %v662_v24, %v820_v21 }
  0x49   : >> { %v204_v27 = vsel %vm203_vm2, %v820_v21, %v202_v26 }
  0x4a   : >> { %v207_v29 = vsel %vm205_vm3, %v206_v25, %v204_v27 }
  0x4b   : >> { %v217_v30 = vand.u32 2147483647, %v207_v29  ;;  %v354_v29 = vadd.s32 8, %v333_v7 }
  0x4d   : >> { %v218_v31 = vmax.f32 %v216_v28, %v217_v30  ;;  %vm371_vm15 = vcmp.ge.s32.totalorder %v354_v29, %v813_v8 }
  0x4e   : >> { %vm372_vm2 = vmand %vm846_vm12, %vm371_vm15 }
  0x4f   : >> { %663 = vrcp.f32 %v218_v31  ;;  %vm230_vm6 = vcmp.eq.f32.partialorder %v218_v31, 0.0 }
  0x59   : >> { %v664_v32 = vpop.eup %663 }
  0x5a   : >> { %v220_v33 = vmul.f32 %v664_v32, %v215_v23  ;;  %v223_v34 = vmul.f32 0.0, %v664_v32  ;;  %v227_v35 = vmul.f32 %v664_v32, %v217_v30 }
  0x5c   : >> { %v221_v36 = vmul.f32 %v220_v33, %v220_v33  ;;  %v224_v37 = vmul.f32 %v223_v34, %v223_v34  ;;  %v228_v38 = vmul.f32 %v227_v35, %v227_v35  ;;  %v599_v35 = vld [vmem:[%s329_s18 + $0x8] sm:$0xff] }
  0x5e   : >> { %v225_v39 = vadd.f32 %v224_v37, %v221_v36 }
  0x60   : >> { %v229_v40 = vadd.f32 %v228_v38, %v225_v39 }
  0x62   : >> { %665 = vrsqrt.f32 %v229_v40  ;;  %vm233_vm4 = vcmp.eq.f32.partialorder %v229_v40, inf  ;;  %v236_v42 = vand.u32 2147483648, %v229_v40  ;;  %vm235_vm5 = vcmp.eq.f32.partialorder %v229_v40, 0.0 }
  0x6c   : >> { %v666_v41 = vpop.eup %665 }
  0x6d   : >> { %v232_v43 = vmul.f32 %v666_v41, %v229_v40 }
  0x6f   : >> { %v234_v44 = vsel %vm233_vm4, %v229_v40, %v232_v43 }
  0x70   : >> { %v237_v45 = vsel %vm235_vm5, %v236_v42, %v234_v44 }
  0x71   : >> { %v238_v46 = vmul.f32 %v237_v45, %v218_v31  ;;  %v340_v31 = vld [vmem:[%s329_s18] sm:$0xff] }
  0x73   : >> { %v239_v47 = vsel %vm230_vm6, 0.0, %v238_v46 }
  0x74   : >> { %v241_v48 = vxor.u32 2147483648, %v239_v47 }
  0x76   : >> { %v242_v49 = vsel %vm240_vm7, %v239_v47, %v241_v48 }
  0x77   : >> { %v835_v50 = vsel %vm205_vm3, %v214_v22, %v242_v49  ;;  %667 = vrcp.f32 %v242_v49  ;;  %v243_v53 = vsub.f32 %v242_v49, %v214_v22 }
  0x78   : >> { %v248_v51 = vsub.f32 %v214_v22, %v835_v50 }
  0x7a   : >> { %669 = vrcp.f32 %v248_v51 }
  0x81   : >> { %v668_v57 = vpop.eup %667 }
  0x82   : >> { %v245_v60 = vmul.f32 %v668_v57, %v243_v53 }
  0x84   : >> { %v670_v61 = vpop.eup %669  ;;  %v247_v63 = vsel %vm205_vm3, 0.0, %v245_v60 }
  0x85   : >> { %v259_v0 = vmul.f32 %v670_v61, %v257_v58  ;;  %v278_v1 = vmul.f32 %v670_v61, %v276_v59  ;;  %v295_v2 = vsel %vm846_vm12, %v247_v63, 0.0 }
  0x86   : >> { %296 = vadd.xlane.f32.xlu1 %v295_v2 }
  0x87   : >> { %v260_v3 = vsel %vm205_vm3, 0.0, %v259_v0  ;;  %v279_v4 = vsel %vm205_vm3, 0.0, %v278_v1 }
  0x88   : >> { %v265_v5 = vsel %vm846_vm12, %v260_v3, 0.0  ;;  %v284_v6 = vsel %vm846_vm12, %v279_v4, 0.0 }
  0x89   : >> { %266 = vadd.xlane.f32.xlu0 %v265_v5 }
  0x8d   : >> { %285 = vadd.xlane.f32.xlu0 %v284_v6 }
 0x113   : >> { %v297_v10 = vpop.xlane.xlu1 %296 }
 0x114   : >> { %v303_v11 = vsel %vm846_vm12, %v297_v10, %v302_v9 }
 0x115   : >> { %304 = vst [vmem:[%s799_s19] sm:$0x1] %v303_v11 }
 0x116   : >> { %v267_v12 = vpop.xlane.xlu0 %266 }
 0x117   : >> { %268 = vst [vmem:[#allocation4] sm:$0xff] %v267_v12 }
 0x11a   : >> { %v286_v13 = vpop.xlane.xlu0 %285 }
 0x11b   : >> { %288 = vst [vmem:[#allocation4 + $0x8] sm:$0xff] %v286_v13 }
 0x11c   : >> { %290 = vst [vmem:[%s289_s21] sm:$0x1] %v720_v14  ;;  %v386_v44 = vld [vmem:[#allocation2] sm:$0x3] (%p171_p9) }
 0x11d   : > { %388 = vst [vmem:[%s151_s9] sm:$0x3] (%p171_p9), %v386_v44 }
 0x123   : >> { %v311_v18 = vld [vmem:[%s306_s23] sm:$0xff]  ;;  %v596_v19 = vld [vmem:[%s306_s23 + $0x8] sm:$0xff]  ;;  %s330_s23 = smov %s306_s23 }
 0x124   : >> { %v313_v20 = vmul.f32 %v312_v16, %v311_v18  ;;  %v319_v21 = vmul.f32 %v597_v17, %v596_v19  ;;  %v338_v33 = vld [vmem:[%s330_s23] sm:$0xff]  ;;  %v598_v34 = vld [vmem:[%s330_s23 + $0x8] sm:$0xff] }
 0x126   : >> { %v321_v22 = vsel %vm320_vm13, %v319_v21, 0.0 }
 0x127   : >> { %v322_v23 = vadd.f32 %v321_v22, %v313_v20 }
 0x129   : >> { %v323_v24 = vrot.slane %v322_v23, 4 }
 0x12b   : >> { %v324_v25 = vadd.f32 %v323_v24, %v322_v23 }
 0x12d   : >> { %v325_v26 = vrot.slane %v324_v25, 2 }
 0x12f   : >> { %v326_v27 = vadd.f32 %v325_v26, %v324_v25 }
 0x131   : >> { %v327_v28 = vrot.slane %v326_v27, 1 }
 0x133   : >> { %v328_v30 = vadd.f32 %v327_v28, %v326_v27 }
 0x135   : >> { %v334_v32 = vmul.f32 %v328_v30, %v297_v10 }
 0x137   : >> { %v339_v36 = vmul.f32 %v338_v33, %v334_v32  ;;  %v359_v37 = vmul.f32 %v598_v34, %v334_v32 }
 0x139   : >> { %v343_v38 = vsub.f32 %v340_v31, %v339_v36  ;;  %v364_v7 = vsub.f32 %v599_v35, %v359_v37 }
 0x13b   : >> { %v344_v39 = vsel %vm342_vm0, %v343_v38, %v340_v31  ;;  %v365_v40 = vsel %vm342_vm0, %v364_v7, %v599_v35 }
 0x13c   : >> { %v352_v41 = vsel %vm351_vm1, %v338_v33, %v344_v39  ;;  %v373_v42 = vsel %vm372_vm2, %v598_v34, %v365_v40 }
 0x13d   : >> { %353 = vst [vmem:[%s329_s18] sm:$0xff] %v352_v41  ;;  %600 = vst [vmem:[%s329_s18 + $0x8] sm:$0xff] %v373_v42 }
 0x140   : > { %173 = sbr.rel (!%p171_p9) target bundleno = 36 (0x24), region = 184 }
 0x144   : >> { %v376_v43 = vld [vmem:[%s375_s24] ss:$0 sm:$0xff] }
 0x145   : >> { %v381_v8 = vsel %vm846_vm12, %v835_v50, %v376_v43 }
 0x146   : >> { %382 = vst [vmem:[%s375_s24] sm:$0x1] %v381_v8 }
 0x147   : > { %p442_p10 = scmp.lt.s32.totalorder (%p773_p3), %s705_s11, 0  ;;  %s443_s30 = ssub.s32 (%p773_p3), 0, %s705_s11  ;;  %v465_v47 = vld [vmem:[%s151_s9] sm:$0x3] (%p773_p3) }
 0x148   : > { %441 = sbr.rel (!%p773_p3) target bundleno = 339 (0x153), region = 99  ;;  %s605_s3 = smin.u32 (%p773_p3), %s705_s11, %s443_s30 }
 0x149   : > { %s445_s4 = sshrl.u32 (%p773_p3), %s605_s3, 3 }
 0x14a   : > { %s446_s5 = ssub.s32 (%p773_p3), 0, %s445_s4 }
 0x14d   : > { %v432_v45 = vld [vmem:[%s795_s18] sm:$0xff]  ;;  %v434_v46 = vld [vmem:[%s795_s18 + $0x8] sm:$0xff] }
 0x14e   : > { %433 = vst [vmem:[%s402_s29] sm:$0xff] %v432_v45  ;;  %435 = vst [vmem:[%s402_s29 + $0x8] sm:$0xff] %v434_v46 }
 0x14f   : > { %s931_s5 = smov (!%p442_p10, %s446_s5), %s445_s4 }
 0x150   : > { %s606_s6 = sshll.u32 %s931_s5, 1 }
 0x151   : > { %s449_s17 = scalar_lea.vmem %s920_s2, %s606_s6 }
 0x152   : > { %466 = vst [vmem:[%s449_s17] sm:$0x3] %v465_v47 }
 0x153 PF: > { %s9_s13 = sadd.s32 1, %s713_s13   ;;  %s924_s9 = smov %s701_s10 }
 0x154   : > { %p6_p11 = scmp.ge.s32.totalorder %s9_s13, 4   ;;  %s925_s10 = smov %s779_s25 }
 0x155   : > { %s926_s11 = smov %s709_s12  ;;  %s927_s12 = smov %s929_s14 }
 0x156   :  { %8 = sbr.rel (!%p6_p11) target bundleno = 3 (0x3), region = 195 }

// kernel: custom-call.21
= control target key start
LH: loop header
LB: loop body
LE: loop exit
PB: predicated region body
PF: predicated region fallthrough
CT: control target
= control target key end

     0   :  { %s290_s6 = smov 0   ;;  %s331_s0 = inlined_call_operand.vmem [shape: f32[2,8,8], index: 0, kind: input, shape index: {}]   ;;  %s332_s1 = inlined_call_operand.vmem [shape: f32[2,8,8], index: 1, kind: output, shape index: {}]  }
   0x1 LB: > { %s245_s7 = sadd.s32 4294967295, %s278_s6   ;;  %p247_p0 = scmp.ge.s32.totalorder %s278_s6, 2  ;;  %s278_s6 = sphi %s290_s6, %s7_s6  }
   0x2   : > { %s23_s8 = sand.u32 (!%p247_p0), 1, %s278_s6   ;;  %s249_s9 = sshll.u32 (!%p247_p0), %s278_s6, 3 }
   0x3   : > { %21 = sbr.rel (%p247_p0) target bundleno = 10 (0xa), region = 16  ;;  %s248_s10 = sshll.u32 (!%p247_p0), %s23_s8, 3 }
   0x4   : > { %s27_s13 = scalar_lea.vmem (!%p247_p0), %s331_s0, %s249_s9  ;;  %s25_s14 = scalar_lea.vmem (!%p247_p0), [#allocation0], %s248_s10 }
   0x5   : > { %v55_v0 = vld [vmem:[%s27_s13] sm:$0xff] (!%p247_p0) }
   0x6   : > { %56 = vst [vmem:[%s25_s14] sm:$0xff] (!%p247_p0), %v55_v0 }
   0xa PF: > { %p250_p1 = scmp.ge.s32.totalorder %s278_s6, 1  ;;  %p61_p2 = scmp.lt.s32.totalorder %s278_s6, 3 }
   0xc   : > { %p62_p3 = pnand %p250_p1, %p61_p2 }
   0xd   : > { %s68_s15 = sand.u32 (!%p62_p3), 1, %s245_s7   ;;  %v79_v1 = vlaneseq (!%p62_p3)  ;;  %vm93_vm0 = vcmask (!%p62_p3), 64512   ;;  %s261_s18 = sshll.u32 (!%p62_p3), %s245_s7, 3 }
   0xe   : > { %65 = sbr.rel (%p62_p3) target bundleno = 1036 (0x40c), region = 54  ;;  %s251_s16 = sshll.u32 (!%p62_p3), %s68_s15, 3 }
   0xf   : > { %v80_v2 = vand.u32 (!%p62_p3), 127, %v79_v1  ;;  %v82_v3 = vshrl.u32 (!%p62_p3), %v79_v1, 7  ;;  %s306_s17 = scalar_lea.vmem (!%p62_p3), [#allocation0], %s251_s16  ;;  %s174_s21 = scalar_lea.vmem (!%p62_p3), %s332_s1, %s261_s18 }
  0x10   : > { %v85_v4 = vld [vmem:[%s306_s17] sm:$0xff] (!%p62_p3) }
  0x11   : > { %v253_v5 = vld [vmem:[%s306_s17 + $0x1] ss:$0 sm:$0xff] (!%p62_p3)  ;;  %vm84_vm1 = vcmp.eq.s32.totalorder (!%p62_p3), %v80_v2, %v82_v3  ;;  %vm88_vm2 = vcmp.eq.s32.totalorder (!%p62_p3), %v80_v2, 0  ;;  %v254_v10 = vld [vmem:[%s306_s17 + $0x2] ss:$0 sm:$0xff] (!%p62_p3)  ;;  %vm97_vm3 = vcmp.eq.s32.totalorder (!%p62_p3), %v80_v2, 1 }
  0x12   : > { %v94_v6 = vsel (!%p62_p3), %vm93_vm0, %v253_v5, 0.0  ;;  %v89_v7 = vsel (!%p62_p3), %vm88_vm2, %v85_v4, 1.0  ;;  %v105_v11 = vsel (!%p62_p3), %vm93_vm0, %v254_v10, 0.0  ;;  %v255_v15 = vld [vmem:[%s306_s17 + $0x3] ss:$0 sm:$0xff] (!%p62_p3)  ;;  %vm108_vm4 = vcmp.eq.s32.totalorder (!%p62_p3), %v80_v2, 2 }
  0x13   : > { %v90_v8 = vsel (!%p62_p3), %vm84_vm1, %v89_v7, 0.0  ;;  %v116_v16 = vsel (!%p62_p3), %vm93_vm0, %v255_v15, 0.0  ;;  %v256_v20 = vld [vmem:[%s306_s17 + $0x4] ss:$0 sm:$0xff] (!%p62_p3)  ;;  %vm119_vm5 = vcmp.eq.s32.totalorder (!%p62_p3), %v80_v2, 3  ;;  %vm130_vm6 = vcmp.eq.s32.totalorder (!%p62_p3), %v80_v2, 4 }
  0x14   : > { %v98_v9 = vmul.f32 (!%p62_p3), %v94_v6, %v90_v8  ;;  %v127_v21 = vsel (!%p62_p3), %vm93_vm0, %v256_v20, 0.0  ;;  %v257_v25 = vld [vmem:[%s306_s17 + $0x5] ss:$0 sm:$0xff] (!%p62_p3)  ;;  %v258_v30 = vld [vmem:[%s306_s17 + $0x6] ss:$0 sm:$0xff] (!%p62_p3)  ;;  %vm141_vm7 = vcmp.eq.s32.totalorder (!%p62_p3), %v80_v2, 5 }
  0x15   : > { %v138_v26 = vsel %vm93_vm0, %v257_v25, 0.0  ;;  %v149_v31 = vsel %vm93_vm0, %v258_v30, 0.0  ;;  %v259_v35 = vld [vmem:[%s306_s17 + $0x7] ss:$0 sm:$0xff]  ;;  %vm152_vm8 = vcmp.eq.s32.totalorder %v80_v2, 6  ;;  %vm163_vm9 = vcmp.eq.s32.totalorder %v80_v2, 7 }
  0x16   : > { %99 = vadd.xlane.f32.xlu0 %v98_v9  ;;  %v160_v36 = vsel %vm93_vm0, %v259_v35, 0.0 }
  0xa3   : > { %v100_v12 = vpop.xlane.xlu0 %99 }
  0xa4   : > { %v101_v13 = vsel %vm97_vm3, %v100_v12, %v90_v8 }
  0xa5   : > { %v109_v14 = vmul.f32 %v105_v11, %v101_v13 }
  0xa7   : > { %110 = vadd.xlane.f32.xlu0 %v109_v14 }
 0x134   : > { %v111_v17 = vpop.xlane.xlu0 %110 }
 0x135   : > { %v112_v18 = vsel %vm108_vm4, %v111_v17, %v101_v13 }
 0x136   : > { %v120_v19 = vmul.f32 %v116_v16, %v112_v18 }
 0x138   : > { %121 = vadd.xlane.f32.xlu1 %v120_v19 }
 0x1c5   : > { %v122_v22 = vpop.xlane.xlu1 %121 }
 0x1c6   : > { %v123_v23 = vsel %vm119_vm5, %v122_v22, %v112_v18 }
 0x1c7   : > { %v131_v24 = vmul.f32 %v127_v21, %v123_v23 }
 0x1c9   : > { %132 = vadd.xlane.f32.xlu1 %v131_v24 }
 0x256   : > { %v133_v27 = vpop.xlane.xlu1 %132 }
 0x257   : > { %v134_v28 = vsel %vm130_vm6, %v133_v27, %v123_v23 }
 0x258   : > { %v142_v29 = vmul.f32 %v138_v26, %v134_v28 }
 0x25a   : > { %143 = vadd.xlane.f32.xlu0 %v142_v29 }
 0x2e7   : > { %v144_v32 = vpop.xlane.xlu0 %143 }
 0x2e8   : > { %v145_v33 = vsel %vm141_vm7, %v144_v32, %v134_v28 }
 0x2e9   : > { %v153_v34 = vmul.f32 %v149_v31, %v145_v33 }
 0x2eb   : > { %154 = vadd.xlane.f32.xlu1 %v153_v34 }
 0x378   : > { %v155_v37 = vpop.xlane.xlu1 %154 }
 0x379   : > { %v156_v38 = vsel %vm152_vm8, %v155_v37, %v145_v33 }
 0x37a   : > { %v164_v39 = vmul.f32 %v160_v36, %v156_v38 }
 0x37c   : > { %165 = vadd.xlane.f32.xlu0 %v164_v39 }
 0x409   : > { %v166_v40 = vpop.xlane.xlu0 %165 }
 0x40a   : > { %v167_v41 = vsel %vm163_vm9, %v166_v40, %v156_v38 }
 0x40b   : > { %203 = vst [vmem:[%s174_s21] sm:$0xff] %v167_v41 }
 0x40c PF: > { %s7_s6 = sadd.s32 1, %s278_s6  }
 0x40d   : > { %p4_p4 = scmp.ge.s32.totalorder %s7_s6, 4  }
 0x40f   :  { %6 = sbr.rel (!%p4_p4) target bundleno = 1 (0x1), region = 125 }

// kernel: model_forward.2
= control target key start
LH: loop header
LB: loop body
LE: loop exit
PB: predicated region body
PF: predicated region fallthrough
CT: control target
= control target key end

     0   :  { %v775_v1 = vmov 0.0|0.0   ;;  %s776_s17 = smov 8   ;;  %vm777_vm0 = vmmov 0   ;;  %v778_v2 = vmov 0.0   ;;  %v779_v4 = vmov 0   ;;  %s780_s5 = smov 120   ;;  %s925_s2 = inlined_call_operand.vmem [shape: f32[2,16,8], index: 2, kind: input, shape index: {}]   ;;  %s926_s1 = inlined_call_operand.vmem [shape: f32[8,1], index: 1, kind: input, shape index: {}]   ;;  %s927_s0 = inlined_call_operand.vmem [shape: f32[24,16], index: 0, kind: input, shape index: {}]   ;;  %s928_s3 = inlined_call_operand.vmem [shape: f32[2,16,8], index: 3, kind: output, shape index: {0}]   ;;  %s929_s4 = inlined_call_operand.vmem [shape: f32[8,16], index: 4, kind: output, shape index: {1}]  }
   0x1   :  { %v619_v0 = vld [vmem:[%s925_s2 + $0x10] sm:$0xff]  ;;  %731 = vmatprep.subr.bf16.mxu1 %v775_v1  ;;  %740 = vmatprep.subr.bf16.mxu0 %v775_v1  ;;  %v620_v3 = vld [vmem:[%s925_s2 + $0x18] sm:$0xff]  ;;  %v603_v5 = vld [vmem:[%s926_s1] sm:$0xff]  ;;  %vm35_vm1 = vcmask 130048   ;;  %vm29_vm2 = vcmask 64512  }
   0x2   :  { %23 = vrot.lane.b32.xlu0 %v619_v0, %s776_s17  ;;  %657 = vmatprep.mubr.msk.f32.mxu1 %vm777_vm0, %v778_v2  ;;  %v32_v6 = vld [vmem:[%s927_s0] sm:$0xff]  ;;  %v33_v8 = vld [vmem:[%s927_s0 + $0x8] sm:$0xff]  ;;  %v34_v11 = vld [vmem:[%s927_s0 + $0x10] sm:$0xff] }
   0x3   :  { %696 = vmatprep.mubr.msk.f32.mxu0 %vm777_vm0, %v778_v2  ;;  %773 = vset.pattern.permute.xlu1 %v779_v4  ;;  %v37_v7 = vsel %vm35_vm1, %v32_v6, 0  ;;  %v40_v10 = vsel %vm35_vm1, %v33_v8, 0  ;;  %v16_v14 = vld [vmem:[%s925_s2] sm:$0xff]  ;;  %v43_v15 = vsel %vm35_vm1, %v34_v11, 0  ;;  %v17_v22 = vld [vmem:[%s925_s2 + $0x8] sm:$0xff] }
   0x4   :  { %774 = vset.pattern.permute.xlu0 %v779_v4  ;;  %606 = vperm.xlu1 %773, %v603_v5   ;;  %v828_v9 = vand.u32 4294901760, %v37_v7  ;;  %v837_v13 = vand.u32 4294901760, %v40_v10  ;;  %v848_v20 = vand.u32 4294901760, %v43_v15 }
   0x6   :  { %25 = vrot.lane.b32.xlu0 %v620_v3, %s776_s17  ;;  %v835_v12 = vsub.f32 %v37_v7, %v828_v9  ;;  %v846_v19 = vsub.f32 %v40_v10, %v837_v13  ;;  %v133_v28 = vsub.f32 %v43_v15, %v848_v20 }
   0x8   :  { %v114_v18 = vand.u32 4294901760, %v835_v12  ;;  %v124_v27 = vand.u32 4294901760, %v846_v19  ;;  %v134_v35 = vand.u32 4294901760, %v133_v28 }
   0xa   :  { %v115_v26 = vsub.f32 %v835_v12, %v114_v18  ;;  %v125_v34 = vsub.f32 %v846_v19, %v124_v27  ;;  %v135_v41 = vsub.f32 %v133_v28, %v134_v35 }
   0xc   :  { %v116_v33 = vand.u32 4294901760, %v115_v26  ;;  %v126_v40 = vand.u32 4294901760, %v125_v34  ;;  %v136_v45 = vand.u32 4294901760, %v135_v41 }
  0x74   :  { %v24_v16 = vpop.permute.xlu0 %23 }
  0x75   :  { %v30_v17 = vsel %vm29_vm2, %v16_v14, %v24_v16 }
  0x76   :  { %v46_v21 = vand.u32 4294901760, %v30_v17 }
  0x78   :  { %v144_v23 = vsub.f32 %v30_v17, %v46_v21  ;;  %v26_v24 = vpop.permute.xlu0 %25 }
  0x79   :  { %v31_v25 = vsel %vm29_vm2, %v17_v22, %v26_v24 }
  0x7a   :  { %v145_v29 = vand.u32 4294901760, %v144_v23  ;;  %v49_v30 = vand.u32 4294901760, %v31_v25 }
  0x7c   :  { %v151_v31 = vsub.f32 %v31_v25, %v49_v30  ;;  %v732_v32 = vpack.c.bf16 %v49_v30, %v46_v21  ;;  %v146_v36 = vsub.f32 %v144_v23, %v145_v29 }
  0x7e   :  { %v152_v37 = vand.u32 4294901760, %v151_v31  ;;  %733 = vmatpush3.bf16.msra.mxu1 %v732_v32  ;;  %742 = vmatpush3.bf16.msra.mxu0 %v732_v32  ;;  %v147_v42 = vand.u32 4294901760, %v146_v36  ;;  %v738_v46 = vpack.c.bf16 %v151_v31, %v144_v23 }
  0x7f   :  { %743 = vmatprep.subr.bf16.mxu0 %v775_v1  ;;  %734 = vmatprep.subr.bf16.mxu1 %v775_v1 }
  0x80   :  { %v153_v38 = vsub.f32 %v151_v31, %v152_v37  ;;  %v744_v39 = vpack.c.bf16 %v152_v37, %v145_v29 }
  0x81   :  { %658 = vmatmul.mubr.f32.vlgmr.msra.gmra.mrb[0].mxu1 %v116_v33  ;;  %697 = vmatmul.mubr.f32.vlgmr.msra.gmra.mrb[0].mxu0 %v114_v18 }
  0x82   :  { %v154_v43 = vand.u32 4294901760, %v153_v38  ;;  %745 = vmatpush3.bf16.msra.mxu0 %v744_v39  ;;  %660 = vmatprep.mubr.msk.f32.mxu1 %vm777_vm0, %v778_v2 }
  0x83   :  { %699 = vmatprep.mubr.msk.f32.mxu0 %vm777_vm0, %v778_v2  ;;  %746 = vmatprep.subr.bf16.mxu0 %v775_v1 }
  0x84   :  { %v735_v44 = vpack.c.bf16 %v154_v43, %v147_v42 }
  0x85   :  { %661 = vmatmul.mubr.f32.gmra.mrb[2].mxu1 %v126_v40  ;;  %700 = vmatmul.mubr.f32.gmra.mrb[2].mxu0 %v124_v27 }
  0x86   :  { %736 = vmatpush3.bf16.msra.mxu1 %v735_v44  ;;  %663 = vmatprep.mubr.msk.f32.mxu1 %vm777_vm0, %v778_v2 }
  0x87   :  { %702 = vmatprep.mubr.msk.f32.mxu0 %vm777_vm0, %v778_v2  ;;  %737 = vmatprep.subr.bf16.mxu1 %v775_v1 }
  0x89   :  { %664 = vmatmul.mubr.f32.gmra.mrb[4].mxu1 %v136_v45  ;;  %703 = vmatmul.mubr.f32.gmra.mrb[4].mxu0 %v134_v35 }
  0x8a   :  { %670 = vmatprep.mubr.msk.f32.mxu1 %vm777_vm0, %v778_v2  ;;  %709 = vmatprep.mubr.msk.f32.mxu0 %vm777_vm0, %v778_v2 }
  0x8d   :  { %671 = vmatmul.mubr.f32.vlgmr.msra.gmra.mrb[0].mxu1 %v828_v9  ;;  %710 = vmatmul.mubr.f32.vlgmr.msra.gmra.mrb[0].mxu0 %v828_v9 }
  0x8e   :  { %739 = vmatpush3.bf16.msra.mxu1 %v738_v46  ;;  %748 = vmatpush3.bf16.msra.mxu0 %v732_v32 }
  0x8f   :  { %673 = vmatprep.mubr.msk.f32.mxu1 %vm777_vm0, %v778_v2  ;;  %712 = vmatprep.mubr.msk.f32.mxu0 %vm777_vm0, %v778_v2 }
  0x91   :  { %674 = vmatmul.mubr.f32.gmra.mrb[2].mxu1 %v837_v13  ;;  %713 = vmatmul.mubr.f32.gmra.mrb[2].mxu0 %v837_v13 }
  0x92   :  { %676 = vmatprep.mubr.msk.f32.mxu1 %vm777_vm0, %v778_v2  ;;  %715 = vmatprep.mubr.msk.f32.mxu0 %vm777_vm0, %v778_v2 }
  0x95   :  { %677 = vmatmul.mubr.f32.gmra.mrb[6].mxu1 %v848_v20  ;;  %716 = vmatmul.mubr.f32.gmra.mrb[6].mxu0 %v848_v20 }
  0x96   :  { %683 = vmatprep.mubr.msk.f32.mxu1 %vm777_vm0, %v778_v2  ;;  %722 = vmatprep.mubr.msk.f32.mxu0 %vm777_vm0, %v778_v2 }
  0x99   :  { %684 = vmatmul.mubr.f32.vlgmr.msra.gmra.mrb[0].mxu1 %v835_v12  ;;  %723 = vmatmul.mubr.f32.vlgmr.msra.gmra.mrb[0].mxu0 %v828_v9  ;;  %v607_v9 = vpop.permute.xlu1 %606 }
  0x9a   :  { %686 = vmatprep.mubr.msk.f32.mxu1 %vm777_vm0, %v778_v2  ;;  %725 = vmatprep.mubr.msk.f32.mxu0 %vm777_vm0, %v778_v2 }
  0x9d   :  { %687 = vmatmul.mubr.f32.gmra.mrb[2].mxu1 %v846_v19  ;;  %726 = vmatmul.mubr.f32.gmra.mrb[2].mxu0 %v837_v13 }
  0x9e   :  { %689 = vmatprep.mubr.msk.f32.mxu1 %vm777_vm0, %v778_v2  ;;  %728 = vmatprep.mubr.msk.f32.mxu0 %vm777_vm0, %v778_v2 }
  0xa1   :  { %690 = vmatmul.mubr.f32.gmra.mrb[8].mxu1 %v133_v28  ;;  %729 = vmatmul.mubr.f32.gmra.mrb[8].mxu0 %v848_v20 }
 0x15c   :  { %v138_v47 = vpop.f32.mrb[4].mxu1  ;;  %v412_v48 = vpop.f32.mrb[4].mxu0 }
 0x15d   :  { %v665_v49 = vpop.f32.mrb[5].mxu1  ;;  %v704_v50 = vpop.f32.mrb[5].mxu0 }
 0x168   :  { %v231_v51 = vpop.f32.mrb[6].mxu1  ;;  %v501_v52 = vpop.f32.mrb[6].mxu0 }
 0x169   :  { %v232_v53 = vadd.f32 %v231_v51, %v138_v47  ;;  %v678_v54 = vpop.f32.mrb[7].mxu1  ;;  %v717_v55 = vpop.f32.mrb[7].mxu0 }
 0x16c   :  { %v307_v56 = vpop.f32.mrb[0].mxu1  ;;  %v574_v57 = vpop.f32.mrb[0].mxu0 }
 0x16d   :  { %v749_v58 = vadd.f32 %v574_v57, %v307_v56  ;;  %v685_v59 = vpop.f32.mrb[1].mxu1  ;;  %v724_v60 = vpop.f32.mrb[1].mxu0 }
 0x16f   :  { %590 = vst.msk [vmem:[%s928_s3] sm:$0xff] %vm29_vm2, %v749_v58  ;;  %594 = vrot.lane.b32.xlu1 %v749_v58, %s780_s5 }
 0x170   :  { %v314_v61 = vpop.f32.mrb[2].mxu1  ;;  %v580_v62 = vpop.f32.mrb[2].mxu0 }
 0x171   :  { %v750_v63 = vadd.f32 %v580_v62, %v314_v61  ;;  %v688_v0 = vpop.f32.mrb[3].mxu1  ;;  %v727_v1 = vpop.f32.mrb[3].mxu0 }
 0x173   :  { %591 = vst.msk [vmem:[%s928_s3 + $0x8] sm:$0xff] %vm29_vm2, %v750_v63  ;;  %596 = vrot.lane.b32.xlu0 %v750_v63, %s780_s5 }
 0x174   :  { %v321_v2 = vpop.f32.mrb[8].mxu1  ;;  %v586_v3 = vpop.f32.mrb[8].mxu0 }
 0x175   :  { %v322_v4 = vadd.f32 %v321_v2, %v232_v53  ;;  %v691_v5 = vpop.f32.mrb[9].mxu1  ;;  %v730_v6 = vpop.f32.mrb[9].mxu0 }
 0x177   :  { %v413_v7 = vadd.f32 %v412_v48, %v322_v4 }
 0x179   :  { %v502_v8 = vadd.f32 %v501_v52, %v413_v7 }
 0x17b   :  { %v587_v10 = vadd.f32 %v586_v3, %v502_v8 }
 0x17d   :  { %v609_v11 = vadd.f32 %v607_v9, %v587_v10 }
 0x17f   :  { %610 = vst.msk [vmem:[%s929_s4] sm:$0xff] %vm35_vm1, %v609_v11 }
 0x1e1   :  { %v595_v12 = vpop.permute.xlu1 %594 }
 0x1e2   :  { %621 = vst.msk [vmem:[%s928_s3 + $0x10] sm:$0xff] %vm29_vm2, %v595_v12 }
 0x1e5   :  { %v597_v13 = vpop.permute.xlu0 %596 }
 0x1e6   :  { %622 = vst.msk [vmem:[%s928_s3 + $0x18] sm:$0xff] %vm29_vm2, %v597_v13 }

// kernel: custom-call.47
= control target key start
LH: loop header
LB: loop body
LE: loop exit
PB: predicated region body
PF: predicated region fallthrough
CT: control target
= control target key end

     0   :  { %s6_s0 = inlined_call_operand.hbm [shape: pred[2], index: 0, kind: output, shape index: {}]  }

// kernel: custom-call.52
= control target key start
LH: loop header
LB: loop body
LE: loop exit
PB: predicated region body
PF: predicated region fallthrough
CT: control target
= control target key end

     0   :  { %s469_s6 = smov 0   ;;  %s471_s7 = smov 0   ;;  %s549_s0 = inlined_call_operand.vmem [shape: f32[2,8,8], index: 0, kind: input, shape index: {}]   ;;  %s550_s1 = inlined_call_operand.vmem [shape: f32[2,8,8], index: 1, kind: output, shape index: {}]  }
   0x1   :  { %s473_s8 = smov 0  }
   0x2 LB: > { %s367_s9 = sadd.s32 4294967295, %s456_s8   ;;  %s26_s10 = sadd.s32 1, %s452_s7  ;;  %s456_s8 = sphi %s473_s8, %s7_s8   ;;  %s452_s7 = sphi %s471_s7, %s552_s7   ;;  %s448_s6 = sphi %s469_s6, %s551_s6  }
   0x3   : > { %p28_p0 = scmp.ge.s32.totalorder %s26_s10, 2  ;;  %p369_p1 = scmp.ge.s32.totalorder %s456_s8, 2 }
   0x4   : > { %s42_s11 = sand.u32 (!%p369_p1), 1, %s456_s8   ;;  %s371_s12 = sshll.u32 (!%p369_p1), %s452_s7, 3 }
   0x5   : > { %s554_s10 = smov (%p28_p0, %s26_s10), 0  ;;  %40 = sbr.rel (%p369_p1) target bundleno = 12 (0xc), region = 16 }
   0x6   : > { %s370_s13 = sshll.u32 (!%p369_p1), %s42_s11, 3  ;;  %s48_s16 = scalar_lea.vmem (!%p369_p1), %s549_s0, %s371_s12 }
   0x7   : > { %v76_v0 = vld [vmem:[%s48_s16] sm:$0xff] (!%p369_p1)  ;;  %s44_s17 = scalar_lea.vmem (!%p369_p1), [#allocation0], %s370_s13 }
   0x8   : > { %77 = vst [vmem:[%s44_s17] sm:$0xff] (!%p369_p1), %v76_v0 }
   0xc PF: > { %p372_p2 = scmp.ge.s32.totalorder %s456_s8, 1  ;;  %p82_p3 = scmp.lt.s32.totalorder %s456_s8, 3 }
   0xe   : > { %p83_p4 = pnand %p372_p2, %p82_p3 }
   0xf   : > { %s89_s18 = sand.u32 (!%p83_p4), 1, %s367_s9   ;;  %v458_v1 = vmov (!%p83_p4), 0.0   ;;  %vm101_vm0 = vcmask (!%p83_p4), 7168   ;;  %vm119_vm1 = vcmask (!%p83_p4), 15368   ;;  %vm136_vm2 = vcmask (!%p83_p4), 1047553   ;;  %s390_s22 = sshll.u32 (!%p83_p4), %s448_s6, 3 }
  0x10   : > { %86 = sbr.rel (%p83_p4) target bundleno = 1377 (0x561), region = 54  ;;  %s373_s19 = sshll.u32 (!%p83_p4), %s89_s18, 3  ;;  %vm137_vm3 = vmand (!%p83_p4), %vm119_vm1, %vm136_vm2  ;;  %vm141_vm4 = vcmask (!%p83_p4), 23568   ;;  %vm158_vm5 = vcmask (!%p83_p4), 1047554   ;;  %vm163_vm7 = vcmask (!%p83_p4), 31768   ;;  %vm180_vm8 = vcmask (!%p83_p4), 1047555  }
  0x11   : > { %s496_s20 = scalar_lea.vmem (!%p83_p4), [#allocation1], %s373_s19  ;;  %s500_s21 = scalar_lea.vmem (!%p83_p4), [#allocation0], %s373_s19  ;;  %vm159_vm6 = vmand (!%p83_p4), %vm141_vm4, %vm158_vm5  ;;  %vm185_vm10 = vcmask (!%p83_p4), 39968   ;;  %vm202_vm11 = vcmask (!%p83_p4), 1047556   ;;  %vm207_vm13 = vcmask (!%p83_p4), 48168   ;;  %vm224_vm14 = vcmask (!%p83_p4), 1047557  }
  0x12   : > { %100 = vst [vmem:[%s496_s20] sm:$0xff] (!%p83_p4), %v458_v1  ;;  %v103_v5 = vld [vmem:[%s500_s21] ss:$0 sm:$0xff] (!%p83_p4)  ;;  %v376_v17 = vld [vmem:[%s500_s21 + $0x1] ss:$0 sm:$0xff] (!%p83_p4)  ;;  %v378_v29 = vld [vmem:[%s500_s21 + $0x2] ss:$0 sm:$0xff] (!%p83_p4)  ;;  %s280_s25 = scalar_lea.vmem (!%p83_p4), %s550_s1, %s390_s22 }
  0x13   : > { %v504_v9 = vld [vmem:[%s500_s21] sm:$0xff] (!%p83_p4)  ;;  %vm181_vm9 = vmand (!%p83_p4), %vm163_vm7, %vm180_vm8  ;;  %vm246_vm1 = vcmask (!%p83_p4), 1047558   ;;  %vm268_vm4 = vcmask (!%p83_p4), 1047559  }
  0x14   : > { %v380_v41 = vld [vmem:[%s500_s21 + $0x3] ss:$0 sm:$0xff] (!%p83_p4)  ;;  %v382_v53 = vld [vmem:[%s500_s21 + $0x4] ss:$0 sm:$0xff] (!%p83_p4)  ;;  %vm203_vm12 = vmand (!%p83_p4), %vm185_vm10, %vm202_vm11 }
  0x15   : > { %v384_v1 = vld [vmem:[%s500_s21 + $0x5] ss:$0 sm:$0xff] (!%p83_p4)  ;;  %vm225_vm15 = vmand (!%p83_p4), %vm207_vm13, %vm224_vm14 }
  0x19   : > { %v102_v2 = vld [vmem:[%s496_s20] ss:$0 sm:$0xff] }
  0x1a   : > { %v104_v3 = vmul.f32 %v102_v2, %v102_v2  ;;  %v111_v4 = vmul.f32 0.0, %v102_v2 }
  0x1c   : > { %105 = vadd.xlane.f32.xlu0 %v104_v3 }
  0x20   : > { %112 = vadd.xlane.f32.xlu0 %v111_v4 }
  0xa9   : > { %v106_v6 = vpop.xlane.xlu0 %105 }
  0xaa   : > { %v107_v7 = vsub.f32 %v103_v5, %v106_v6 }
  0xac   : > { %418 = vrsqrt.f32 %v107_v7 }
  0xad   : > { %v113_v8 = vpop.xlane.xlu0 %112 }
  0xae   : > { %v114_v10 = vsub.f32 %v504_v9, %v113_v8 }
  0xb6   : > { %v419_v11 = vpop.eup %418 }
  0xb7   : > { %v115_v12 = vmul.f32 %v419_v11, %v114_v10 }
  0xb9   : > { %v116_v13 = vsel %vm101_vm0, %v115_v12, 0.0  ;;  %vm229_vm0 = vcmask 56368  }
  0xba   : > { %118 = vst [vmem:[%s496_s20] sm:$0xff] %v116_v13  ;;  %vm247_vm2 = vmand %vm229_vm0, %vm246_vm1 }
  0xc1   : > { %v375_v14 = vld [vmem:[%s496_s20 + $0x1] ss:$0 sm:$0xff] }
  0xc2   : > { %v124_v15 = vmul.f32 %v375_v14, %v375_v14  ;;  %v131_v16 = vmul.f32 %v375_v14, %v116_v13  ;;  %v386_v14 = vld [vmem:[%s500_s21 + $0x6] ss:$0 sm:$0xff] }
  0xc4   : > { %125 = vadd.xlane.f32.xlu1 %v124_v15 }
  0xc8   : > { %132 = vadd.xlane.f32.xlu1 %v131_v16 }
 0x151   : > { %v126_v18 = vpop.xlane.xlu1 %125 }
 0x152   : > { %v127_v19 = vsub.f32 %v376_v17, %v126_v18 }
 0x154   : > { %420 = vrsqrt.f32 %v127_v19 }
 0x155   : > { %v133_v20 = vpop.xlane.xlu1 %132 }
 0x156   : > { %v134_v21 = vsub.f32 %v504_v9, %v133_v20 }
 0x15e   : > { %v421_v22 = vpop.eup %420 }
 0x15f   : > { %v135_v23 = vmul.f32 %v421_v22, %v134_v21 }
 0x161   : > { %v138_v24 = vsel %vm137_vm3, %v135_v23, 0.0  ;;  %vm251_vm3 = vcmask 64568  }
 0x162   : > { %v139_v25 = vadd.f32 %v138_v24, %v116_v13  ;;  %vm269_vm5 = vmand %vm251_vm3, %vm268_vm4 }
 0x164   : > { %140 = vst [vmem:[%s496_s20] sm:$0xff] %v139_v25 }
 0x16b   : > { %v377_v26 = vld [vmem:[%s496_s20 + $0x2] ss:$0 sm:$0xff] }
 0x16c   : > { %v153_v27 = vmul.f32 %v377_v26, %v139_v25  ;;  %v146_v28 = vmul.f32 %v377_v26, %v377_v26  ;;  %v388_v26 = vld [vmem:[%s500_s21 + $0x7] ss:$0 sm:$0xff] }
 0x16e   : > { %154 = vadd.xlane.f32.xlu1 %v153_v27  ;;  %147 = vadd.xlane.f32.xlu0 %v146_v28 }
 0x1fb   : > { %v148_v30 = vpop.xlane.xlu0 %147  ;;  %v155_v32 = vpop.xlane.xlu1 %154 }
 0x1fc   : > { %v149_v31 = vsub.f32 %v378_v29, %v148_v30  ;;  %v156_v33 = vsub.f32 %v504_v9, %v155_v32 }
 0x1fe   : > { %422 = vrsqrt.f32 %v149_v31 }
 0x208   : > { %v423_v34 = vpop.eup %422 }
 0x209   : > { %v157_v35 = vmul.f32 %v423_v34, %v156_v33 }
 0x20b   : > { %v160_v36 = vsel %vm159_vm6, %v157_v35, 0.0 }
 0x20c   : > { %v161_v37 = vadd.f32 %v160_v36, %v139_v25 }
 0x20e   : > { %162 = vst [vmem:[%s496_s20] sm:$0xff] %v161_v37 }
 0x215   : > { %v379_v38 = vld [vmem:[%s496_s20 + $0x3] ss:$0 sm:$0xff] }
 0x216   : > { %v175_v39 = vmul.f32 %v379_v38, %v161_v37  ;;  %v168_v40 = vmul.f32 %v379_v38, %v379_v38 }
 0x218   : > { %176 = vadd.xlane.f32.xlu1 %v175_v39  ;;  %169 = vadd.xlane.f32.xlu0 %v168_v40 }
 0x2a5   : > { %v170_v42 = vpop.xlane.xlu0 %169  ;;  %v177_v44 = vpop.xlane.xlu1 %176 }
 0x2a6   : > { %v171_v43 = vsub.f32 %v380_v41, %v170_v42  ;;  %v178_v45 = vsub.f32 %v504_v9, %v177_v44 }
 0x2a8   : > { %424 = vrsqrt.f32 %v171_v43 }
 0x2b2   : > { %v425_v46 = vpop.eup %424 }
 0x2b3   : > { %v179_v47 = vmul.f32 %v425_v46, %v178_v45 }
 0x2b5   : > { %v182_v48 = vsel %vm181_vm9, %v179_v47, 0.0 }
 0x2b6   : > { %v183_v49 = vadd.f32 %v182_v48, %v161_v37 }
 0x2b8   : > { %184 = vst [vmem:[%s496_s20] sm:$0xff] %v183_v49 }
 0x2bf   : > { %v381_v50 = vld [vmem:[%s496_s20 + $0x4] ss:$0 sm:$0xff] }
 0x2c0   : > { %v197_v51 = vmul.f32 %v381_v50, %v183_v49  ;;  %v190_v52 = vmul.f32 %v381_v50, %v381_v50 }
 0x2c2   : > { %198 = vadd.xlane.f32.xlu1 %v197_v51  ;;  %191 = vadd.xlane.f32.xlu0 %v190_v52 }
 0x34f   : > { %v192_v54 = vpop.xlane.xlu0 %191  ;;  %v199_v56 = vpop.xlane.xlu1 %198 }
 0x350   : > { %v193_v55 = vsub.f32 %v382_v53, %v192_v54  ;;  %v200_v57 = vsub.f32 %v504_v9, %v199_v56 }
 0x352   : > { %426 = vrsqrt.f32 %v193_v55 }
 0x35c   : > { %v427_v58 = vpop.eup %426 }
 0x35d   : > { %v201_v59 = vmul.f32 %v427_v58, %v200_v57 }
 0x35f   : > { %v204_v60 = vsel %vm203_vm12, %v201_v59, 0.0 }
 0x360   : > { %v205_v61 = vadd.f32 %v204_v60, %v183_v49 }
 0x362   : > { %206 = vst [vmem:[%s496_s20] sm:$0xff] %v205_v61 }
 0x369   : > { %v383_v62 = vld [vmem:[%s496_s20 + $0x5] ss:$0 sm:$0xff] }
 0x36a   : > { %v219_v63 = vmul.f32 %v383_v62, %v205_v61  ;;  %v212_v0 = vmul.f32 %v383_v62, %v383_v62 }
 0x36c   : > { %220 = vadd.xlane.f32.xlu1 %v219_v63  ;;  %213 = vadd.xlane.f32.xlu0 %v212_v0 }
 0x3f9   : > { %v214_v2 = vpop.xlane.xlu0 %213  ;;  %v221_v4 = vpop.xlane.xlu1 %220 }
 0x3fa   : > { %v215_v3 = vsub.f32 %v384_v1, %v214_v2  ;;  %v222_v5 = vsub.f32 %v504_v9, %v221_v4 }
 0x3fc   : > { %428 = vrsqrt.f32 %v215_v3 }
 0x406   : > { %v429_v6 = vpop.eup %428 }
 0x407   : > { %v223_v7 = vmul.f32 %v429_v6, %v222_v5 }
 0x409   : > { %v226_v8 = vsel %vm225_vm15, %v223_v7, 0.0 }
 0x40a   : > { %v227_v10 = vadd.f32 %v226_v8, %v205_v61 }
 0x40c   : > { %228 = vst [vmem:[%s496_s20] sm:$0xff] %v227_v10 }
 0x413   : > { %v385_v11 = vld [vmem:[%s496_s20 + $0x6] ss:$0 sm:$0xff] }
 0x414   : > { %v241_v12 = vmul.f32 %v385_v11, %v227_v10  ;;  %v234_v13 = vmul.f32 %v385_v11, %v385_v11 }
 0x416   : > { %242 = vadd.xlane.f32.xlu1 %v241_v12  ;;  %235 = vadd.xlane.f32.xlu0 %v234_v13 }
 0x4a3   : > { %v236_v15 = vpop.xlane.xlu0 %235  ;;  %v243_v17 = vpop.xlane.xlu1 %242 }
 0x4a4   : > { %v237_v16 = vsub.f32 %v386_v14, %v236_v15  ;;  %v244_v18 = vsub.f32 %v504_v9, %v243_v17 }
 0x4a6   : > { %430 = vrsqrt.f32 %v237_v16 }
 0x4b0   : > { %v431_v19 = vpop.eup %430 }
 0x4b1   : > { %v245_v20 = vmul.f32 %v431_v19, %v244_v18 }
 0x4b3   : > { %v248_v21 = vsel %vm247_vm2, %v245_v20, 0.0 }
 0x4b4   : > { %v249_v22 = vadd.f32 %v248_v21, %v227_v10 }
 0x4b6   : > { %250 = vst [vmem:[%s496_s20] sm:$0xff] %v249_v22 }
 0x4bd   : > { %v387_v23 = vld [vmem:[%s496_s20 + $0x7] ss:$0 sm:$0xff] }
 0x4be   : > { %v263_v24 = vmul.f32 %v387_v23, %v249_v22  ;;  %v256_v25 = vmul.f32 %v387_v23, %v387_v23 }
 0x4c0   : > { %264 = vadd.xlane.f32.xlu1 %v263_v24  ;;  %257 = vadd.xlane.f32.xlu0 %v256_v25 }
 0x54d   : > { %v258_v27 = vpop.xlane.xlu0 %257  ;;  %v265_v29 = vpop.xlane.xlu1 %264 }
 0x54e   : > { %v259_v28 = vsub.f32 %v388_v26, %v258_v27  ;;  %v266_v30 = vsub.f32 %v504_v9, %v265_v29 }
 0x550   : > { %432 = vrsqrt.f32 %v259_v28 }
 0x55a   : > { %v433_v31 = vpop.eup %432 }
 0x55b   : > { %v267_v32 = vmul.f32 %v433_v31, %v266_v30 }
 0x55d   : > { %v270_v33 = vsel %vm269_vm5, %v267_v32, 0.0 }
 0x55e   : > { %v271_v34 = vadd.f32 %v270_v33, %v249_v22 }
 0x560   : > { %272 = vst [vmem:[%s496_s20] sm:$0xff] %v271_v34  ;;  %309 = vst [vmem:[%s280_s25] sm:$0xff] %v271_v34 }
 0x561 PF: > { %s7_s8 = sadd.s32 1, %s456_s8   ;;  %s551_s6 = smov %s452_s7 }
 0x562   : > { %p4_p5 = scmp.ge.s32.totalorder %s7_s8, 4   ;;  %s552_s7 = smov %s554_s10 }
 0x564   :  { %6 = sbr.rel (!%p4_p5) target bundleno = 2 (0x2), region = 132 }

// kernel: custom-call.53
= control target key start
LH: loop header
LB: loop body
LE: loop exit
PB: predicated region body
PF: predicated region fallthrough
CT: control target
= control target key end

     0   :  { %s385_s6 = smov 0   ;;  %s387_s7 = smov 0   ;;  %s443_s0 = inlined_call_operand.vmem [shape: f32[2,1,8,8], index: 0, kind: input, shape index: {}]   ;;  %s444_s1 = inlined_call_operand.vmem [shape: f32[2,1,8,8], index: 1, kind: output, shape index: {}]  }
   0x1   :  { %s389_s8 = smov 0  }
   0x2 LB: > { %s311_s9 = sadd.s32 4294967295, %s372_s8   ;;  %s33_s10 = sadd.s32 1, %s368_s7  ;;  %s372_s8 = sphi %s389_s8, %s7_s8   ;;  %s368_s7 = sphi %s387_s7, %s446_s7   ;;  %s364_s6 = sphi %s385_s6, %s445_s6  }
   0x3   : > { %p35_p0 = scmp.ge.s32.totalorder %s33_s10, 2  ;;  %p313_p1 = scmp.ge.s32.totalorder %s372_s8, 2 }
   0x4   : > { %s49_s11 = sand.u32 (!%p313_p1), 1, %s372_s8   ;;  %s315_s12 = sshll.u32 (!%p313_p1), %s368_s7, 3 }
   0x5   : > { %s448_s10 = smov (%p35_p0, %s33_s10), 0  ;;  %47 = sbr.rel (%p313_p1) target bundleno = 12 (0xc), region = 16 }
   0x6   : > { %s314_s13 = sshll.u32 (!%p313_p1), %s49_s11, 3  ;;  %s56_s16 = scalar_lea.vmem (!%p313_p1), %s443_s0, %s315_s12 }
   0x7   : > { %v84_v0 = vld [vmem:[%s56_s16] sm:$0xff] (!%p313_p1)  ;;  %s51_s17 = scalar_lea.vmem (!%p313_p1), [#allocation0], %s314_s13 }
   0x8   : > { %85 = vst [vmem:[%s51_s17] sm:$0xff] (!%p313_p1), %v84_v0 }
   0xc PF: > { %p316_p2 = scmp.ge.s32.totalorder %s372_s8, 1  ;;  %p90_p3 = scmp.lt.s32.totalorder %s372_s8, 3 }
   0xe   : > { %p91_p4 = pnand %p316_p2, %p90_p3 }
  0x10   : > { %94 = sbr.rel (%p91_p4) target bundleno = 1213 (0x4bd), region = 54 }
  0x17   : > { %s97_s18 = sand.u32 1, %s311_s9   ;;  %v108_v1 = vlaneseq  ;;  %v374_v10 = vmov -1.0   ;;  %s320_s21 = sshll.u32 %s364_s6, 3 }
  0x18   : > { %s317_s19 = sshll.u32 %s97_s18, 3  ;;  %s219_s24 = scalar_lea.vmem %s444_s1, %s320_s21 }
  0x19   : > { %v412_v2 = vand.u32 127, %v108_v1  ;;  %v112_v3 = vshrl.u32 %v108_v1, 7  ;;  %s99_s20 = scalar_lea.vmem [#allocation0], %s317_s19 }
  0x1a   : > { %v115_v4 = vld [vmem:[%s99_s20] sm:$0xff] }
  0x1b   : > { %vm110_vm0 = vcmp.lt.s32.totalorder %v412_v2, 8  ;;  %vm114_vm1 = vcmp.eq.s32.totalorder %v112_v3, %v412_v2  ;;  %vm119_vm2 = vcmp.ge.s32.totalorder %v112_v3, %v412_v2  ;;  %vm133_vm4 = vcmp.eq.s32.totalorder %v412_v2, 0 }
  0x1c   : > { %v116_v5 = vsel %vm114_vm1, %v115_v4, 0.0  ;;  %vm120_vm3 = vmand %vm119_vm2, %vm110_vm0  ;;  %vm130_vm5 = vcmp.eq.s32.totalorder %v412_v2, %v112_v3  ;;  %v134_v11 = vsel %vm133_vm4, 1.0, %v374_v10  ;;  %vm141_vm6 = vcmp.eq.s32.totalorder %v412_v2, 1 }
  0x1d   : > { %v121_v6 = vsel %vm120_vm3, %v115_v4, 0.0  ;;  %117 = vadd.xlane.f32.xlu0 %v116_v5  ;;  %v135_v12 = vsel %vm130_vm5, %v134_v11, 0.0  ;;  %vm151_vm7 = vcmp.eq.s32.totalorder %v412_v2, 2  ;;  %vm161_vm8 = vcmp.eq.s32.totalorder %v412_v2, 3 }
  0x1e   : > { %vm171_vm9 = vcmp.eq.s32.totalorder %v412_v2, 4  ;;  %vm181_vm10 = vcmp.eq.s32.totalorder %v412_v2, 5  ;;  %vm191_vm11 = vcmp.eq.s32.totalorder %v412_v2, 6  ;;  %vm201_vm12 = vcmp.eq.s32.totalorder %v412_v2, 7 }
  0xaa   : > { %v417_v7 = vpop.xlane.xlu0 %117 }
  0xab   : > { %348 = vrcp.f32 %v417_v7  ;;  %vm208_vm13 = vweird.f32 %v417_v7 }
  0xb5   : > { %v349_v8 = vpop.eup %348 }
  0xb6   : > { %v123_v9 = vmul.f32 %v349_v8, %v121_v6 }
  0xb8   : > { %124 = vst [vmem:[#allocation2] sm:$0xff] %v123_v9 }
  0xbf   : > { %v137_v13 = vld [vmem:[#allocation2 + $0x1] ss:$0 sm:$0xff]  ;;  %v147_v16 = vld [vmem:[#allocation2 + $0x2] ss:$0 sm:$0xff]  ;;  %v157_v21 = vld [vmem:[#allocation2 + $0x3] ss:$0 sm:$0xff] }
  0xc0   : > { %v138_v14 = vxor.u32 2147483648, %v137_v13  ;;  %v148_v18 = vxor.u32 2147483648, %v147_v16  ;;  %v158_v23 = vxor.u32 2147483648, %v157_v21  ;;  %v167_v26 = vld [vmem:[#allocation2 + $0x4] ss:$0 sm:$0xff] }
  0xc1   : > { %v168_v28 = vxor.u32 2147483648, %v167_v26  ;;  %v177_v31 = vld [vmem:[#allocation2 + $0x5] ss:$0 sm:$0xff]  ;;  %v187_v36 = vld [vmem:[#allocation2 + $0x6] ss:$0 sm:$0xff] }
  0xc2   : > { %v142_v15 = vmul.f32 %v138_v14, %v135_v12  ;;  %v178_v33 = vxor.u32 2147483648, %v177_v31  ;;  %v188_v38 = vxor.u32 2147483648, %v187_v36  ;;  %v197_v41 = vld [vmem:[#allocation2 + $0x7] ss:$0 sm:$0xff] }
  0xc3   : > { %v198_v43 = vxor.u32 2147483648, %v197_v41 }
  0xc4   : > { %143 = vadd.xlane.f32.xlu0 %v142_v15 }
 0x151   : > { %v144_v17 = vpop.xlane.xlu0 %143 }
 0x152   : > { %v145_v19 = vsel %vm141_vm6, %v144_v17, %v135_v12 }
 0x153   : > { %v152_v20 = vmul.f32 %v148_v18, %v145_v19 }
 0x155   : > { %153 = vadd.xlane.f32.xlu1 %v152_v20 }
 0x1e2   : > { %v154_v22 = vpop.xlane.xlu1 %153 }
 0x1e3   : > { %v155_v24 = vsel %vm151_vm7, %v154_v22, %v145_v19 }
 0x1e4   : > { %v162_v25 = vmul.f32 %v158_v23, %v155_v24 }
 0x1e6   : > { %163 = vadd.xlane.f32.xlu1 %v162_v25 }
 0x273   : > { %v164_v27 = vpop.xlane.xlu1 %163 }
 0x274   : > { %v165_v29 = vsel %vm161_vm8, %v164_v27, %v155_v24 }
 0x275   : > { %v172_v30 = vmul.f32 %v168_v28, %v165_v29 }
 0x277   : > { %173 = vadd.xlane.f32.xlu0 %v172_v30 }
 0x304   : > { %v174_v32 = vpop.xlane.xlu0 %173 }
 0x305   : > { %v175_v34 = vsel %vm171_vm9, %v174_v32, %v165_v29 }
 0x306   : > { %v182_v35 = vmul.f32 %v178_v33, %v175_v34 }
 0x308   : > { %183 = vadd.xlane.f32.xlu1 %v182_v35 }
 0x395   : > { %v184_v37 = vpop.xlane.xlu1 %183 }
 0x396   : > { %v185_v39 = vsel %vm181_vm10, %v184_v37, %v175_v34 }
 0x397   : > { %v192_v40 = vmul.f32 %v188_v38, %v185_v39 }
 0x399   : > { %193 = vadd.xlane.f32.xlu0 %v192_v40 }
 0x426   : > { %v194_v42 = vpop.xlane.xlu0 %193 }
 0x427   : > { %v195_v44 = vsel %vm191_vm11, %v194_v42, %v185_v39 }
 0x428   : > { %v202_v45 = vmul.f32 %v198_v43, %v195_v44 }
 0x42a   : > { %203 = vadd.xlane.f32.xlu1 %v202_v45 }
 0x4b7   : > { %v204_v46 = vpop.xlane.xlu1 %203 }
 0x4b8   : > { %v205_v47 = vsel %vm201_vm12, %v204_v46, %v195_v44 }
 0x4b9   : > { %v207_v48 = vmul.f32 %v349_v8, %v205_v47 }
 0x4bb   : > { %v209_v49 = vsel %vm208_vm13, %v205_v47, %v207_v48 }
 0x4bc   : > { %248 = vst [vmem:[%s219_s24] sm:$0xff] %v209_v49 }
 0x4bd PF: > { %s7_s8 = sadd.s32 1, %s372_s8   ;;  %s445_s6 = smov %s368_s7 }
 0x4be   : > { %p4_p5 = scmp.ge.s32.totalorder %s7_s8, 4   ;;  %s446_s7 = smov %s448_s10 }
 0x4c0   :  { %6 = sbr.rel (!%p4_p5) target bundleno = 2 (0x2), region = 125 }

// kernel: custom-call.22
= control target key start
LH: loop header
LB: loop body
LE: loop exit
PB: predicated region body
PF: predicated region fallthrough
CT: control target
= control target key end

     0   :  { %s1704_s30 = smov 0   ;;  %s1706_s10 = smov 0   ;;  %s2031_s0 = inlined_call_operand.vmem [shape: f32[2,4,4], index: 0, kind: input, shape index: {}]   ;;  %s2032_s1 = inlined_call_operand.vmem [shape: f32[2,4,4], index: 1, kind: input, shape index: {}]   ;;  %s2033_s2 = inlined_call_operand.vmem [shape: f32[2,4,4], index: 2, kind: input, shape index: {}]   ;;  %s2034_s3 = inlined_call_operand.vmem [shape: f32[2,4,4], index: 3, kind: input, shape index: {}]   ;;  %s2035_s4 = inlined_call_operand.vmem [shape: f32[2,4], index: 4, kind: output, shape index: {0}]   ;;  %s2036_s5 = inlined_call_operand.vmem [shape: f32[2,4], index: 5, kind: output, shape index: {1}]   ;;  %s2037_s6 = inlined_call_operand.vmem [shape: f32[2,4,4], index: 6, kind: output, shape index: {2}]   ;;  %s2038_s7 = inlined_call_operand.vmem [shape: f32[2,4,4], index: 7, kind: output, shape index: {3}]   ;;  %s2039_s8 = inlined_call_operand.vmem [shape: f32[2,4,4], index: 8, kind: output, shape index: {4}]   ;;  %s2040_s9 = inlined_call_operand.vmem [shape: f32[2,4,4], index: 9, kind: output, shape index: {5}]  }
   0x1   :  { %s1708_s11 = smov 0  }
   0x2 LB: > { %s1720_s12 = sadd.s32 4294967295, %s1641_s11   ;;  %s1723_s13 = sadd.s32 1, %s1641_s11   ;;  %s1641_s11 = sphi %s1708_s11, %s2059_s11   ;;  %s1637_s10 = sphi %s1706_s10, %s2058_s10   ;;  %s1633_s30 = sphi %s1704_s30, %s2057_s30  }
   0x3   : > { %s20_s14 = sshrl.u32 %s1641_s11, 3  ;;  %s21_s15 = sshrl.u32 %s1723_s13, 3 }
   0x4   : > { %s22_s16 = ssub.s32 %s20_s14, %s21_s15  ;;  %s25_s17 = sadd.s32 1, %s1637_s10 }
   0x5   : > { %p23_p0 = scmp.eq.s32.totalorder %s22_s16, 0  ;;  %p35_p1 = scmp.ne.s32.totalorder %s1637_s10, %s1633_s30 }
   0x6   : > { %p36_p2 = scmp.eq.s32.totalorder %s1720_s12, 1  ;;  %p1502_p4 = scmp.ge.s32.totalorder %s1641_s11, 2 }
   0x7   : > { %s1732_s18 = scalar_select %p23_p0, %s1637_s10, %s25_s17  }
   0x8   : > { %p1734_p3 = por %p36_p2, %p35_p1  ;;  %86 = sbr.rel (%p1502_p4) target bundleno = 17 (0x11), region = 16 }
   0x9   : > { %2041 = sst [smem:[#allocation33_spill]] %s1732_s18  ;;  %s88_s20 = sand.u32 (!%p1502_p4), 1, %s1641_s11  }
   0xa   : > { %s1504_s21 = sshll.u32 (!%p1502_p4), %s1641_s11, 2  ;;  %s1503_s22 = sshll.u32 (!%p1502_p4), %s88_s20, 2 }
   0xb   : > { %s92_s25 = scalar_lea.vmem (!%p1502_p4), %s2031_s0, %s1504_s21  ;;  %s90_s26 = scalar_lea.vmem (!%p1502_p4), [#allocation1], %s1503_s22 }
   0xc   : > { %v108_v0 = vld [vmem:[%s92_s25] sm:$0xf] (!%p1502_p4)  ;;  %s129_s29 = scalar_lea.vmem (!%p1502_p4), %s2032_s1, %s1504_s21  ;;  %s166_s16 = scalar_lea.vmem (!%p1502_p4), %s2033_s2, %s1504_s21 }
   0xd   : > { %109 = vst [vmem:[%s90_s26] sm:$0xf] (!%p1502_p4), %v108_v0  ;;  %v145_v1 = vld [vmem:[%s129_s29] sm:$0xf] (!%p1502_p4)  ;;  %s127_s17 = scalar_lea.vmem (!%p1502_p4), [#allocation3], %s1503_s22  ;;  %s203_s23 = scalar_lea.vmem (!%p1502_p4), %s2034_s3, %s1504_s21 }
   0xe   : > { %146 = vst [vmem:[%s127_s17] sm:$0xf] (!%p1502_p4), %v145_v1  ;;  %v182_v2 = vld [vmem:[%s166_s16] sm:$0xf] (!%p1502_p4)  ;;  %s164_s24 = scalar_lea.vmem (!%p1502_p4), [#allocation5], %s1503_s22  ;;  %s201_s25 = scalar_lea.vmem (!%p1502_p4), [#allocation7], %s1503_s22 }
   0xf   : > { %183 = vst [vmem:[%s164_s24] sm:$0xf] %v182_v2  ;;  %v219_v3 = vld [vmem:[%s203_s23] sm:$0xf] }
  0x10   : > { %220 = vst [vmem:[%s201_s25] sm:$0xf] %v219_v3 }
  0x11 PF: > { %p1511_p5 = scmp.ge.s32.totalorder %s1641_s11, 1  ;;  %p236_p6 = scmp.lt.s32.totalorder %s1641_s11, 3 }
  0x13   : > { %p237_p7 = pnand %p1511_p5, %p236_p6 }
  0x15   : > { %240 = sbr.rel (%p237_p7) target bundleno = 999 (0x3e7), region = 140 }
  0x1c   : > { %s259_s26 = sand.u32 1, %s1720_s12   ;;  %s277_s27 = sand.u32 1, %s1633_s30   ;;  %v337_v4 = vlaneseq  ;;  %v1651_v5 = vmov 0.0  }
  0x1d   : > { %s1757_s28 = sshll.u32 %s259_s26, 2  ;;  %s1759_s18 = sshll.u32 %s277_s27, 1  ;;  %332 = vst [vmem:[#allocation12] sm:$0xff] %v1651_v5  ;;  %333 = vst [vmem:[#allocation14] sm:$0xff] %v1651_v5 }
  0x1e   : > { %334 = vst [vmem:[#allocation16] sm:$0xff] %v1651_v5  ;;  %335 = vst [vmem:[#allocation18] sm:$0xff] %v1651_v5  ;;  %v1761_v6 = vand.u32 127, %v337_v4  ;;  %v1763_v7 = vshrl.u32 %v337_v4, 7  ;;  %s261_s11 = scalar_lea.vmem [#allocation1], %s1757_s28  ;;  %s265_s30 = scalar_lea.vmem [#allocation3], %s1757_s28 }
  0x1f   : > { %v304_v8 = vld [vmem:[%s261_s11] sm:$0xf]  ;;  %v308_v9 = vld [vmem:[%s265_s30] sm:$0xf]  ;;  %s269_s21 = scalar_lea.vmem [#allocation5], %s1757_s28  ;;  %s273_s22 = scalar_lea.vmem [#allocation7], %s1757_s28 }
  0x20   : > { %305 = vst [vmem:[#allocation0] sm:$0xf] %v304_v8  ;;  %309 = vst [vmem:[#allocation2] sm:$0xf] %v308_v9  ;;  %v312_v10 = vld [vmem:[%s269_s21] sm:$0xf]  ;;  %v339_v6 = vmov %v1761_v6  ;;  %v342_v7 = vmov %v1763_v7 }
  0x21   : > { %v316_v11 = vld [vmem:[%s273_s22] sm:$0xf]  ;;  %313 = vst [vmem:[#allocation4] sm:$0xf] %v312_v10  ;;  %v352_v6 = vmov %v1761_v6  ;;  %v355_v7 = vmov %v1763_v7  ;;  %s320_s29 = smov [#allocation20]  ;;  %s323_s14 = smov [#allocation21]  ;;  %vm346_vm0 = vcmp.eq.s32.totalorder %v342_v7, %v339_v6 }
  0x22   : > { %317 = vst [vmem:[#allocation6] sm:$0xf] %v316_v11  ;;  %vm359_vm1 = vcmp.eq.s32.totalorder %v355_v7, %v352_v6  ;;  %s336_s15 = smov [#allocation12]  ;;  %s349_s16 = smov [#allocation18]  ;;  %vm1391_vm2 = vcmp.lt.s32.totalorder %v1761_v6, 4  ;;  %v1383_v6 = vmov %v1761_v6  ;;  %v1386_v7 = vmov %v1763_v7 }
  0x23   : > { %s326_s17 = smov [#allocation22]  ;;  %s329_s20 = smov [#allocation23]  ;;  %vm1396_vm3 = vcmp.eq.s32.totalorder %v1386_v7, %v1383_v6  ;;  %v1434_v6 = vmov %v1761_v6  ;;  %v1403_v7 = vmov %v1763_v7 }
  0x24   : > { %v343_v12 = vld [vmem:[%s336_s15] sm:$0xf]  ;;  %s1387_s30 = smov [#allocation20]  ;;  %s1404_s21 = smov [#allocation21]  ;;  %v1400_v6 = vmov %v1761_v6  ;;  %v1437_v7 = vmov %v1763_v7 }
  0x25   : > { %v356_v13 = vld [vmem:[%s349_s16] sm:$0xf]  ;;  %v347_v16 = vsel %vm346_vm0, 1.0, %v343_v12  ;;  %s1421_s22 = smov [#allocation22]  ;;  %v1417_v6 = vmov %v1761_v6  ;;  %v1420_v7 = vmov %v1763_v7  ;;  %vm1447_vm4 = vcmp.eq.s32.totalorder %v1437_v7, %v1434_v6 }
  0x26   : > { %v360_v17 = vsel %vm359_vm1, 1.0, %v356_v13  ;;  %348 = vst [vmem:[%s336_s15] sm:$0xf] %v347_v16 }
  0x27   : > { %v321_v14 = vld [vmem:[#allocation0] sm:$0xff]  ;;  %v324_v15 = vld [vmem:[#allocation2] sm:$0xff]  ;;  %361 = vst [vmem:[%s349_s16] sm:$0xf] %v360_v17 }
  0x28   : > { %322 = vst [vmem:[%s320_s29] sm:$0xff] %v321_v14  ;;  %325 = vst [vmem:[%s323_s14] sm:$0xff] %v324_v15  ;;  %v327_v18 = vld [vmem:[#allocation4] sm:$0xff]  ;;  %s1438_s29 = smov [#allocation23] }
  0x29   : > { %v330_v19 = vld [vmem:[#allocation6] sm:$0xff]  ;;  %328 = vst [vmem:[%s326_s17] sm:$0xff] %v327_v18 }
  0x2a   : > { %331 = vst [vmem:[%s329_s20] sm:$0xff] %v330_v19 }
  0x2f   : > { %v1393_v20 = vld [vmem:[%s1387_s30] sm:$0xf] }
  0x30   : > { %v1410_v21 = vld [vmem:[%s1404_s21] sm:$0xf]  ;;  %v1394_v22 = vsel %vm1391_vm2, %v1393_v20, 0.0 }
  0x31   : > { %v1411_v23 = vsel %vm1391_vm2, %v1410_v21, 0.0  ;;  %v1427_v24 = vld [vmem:[%s1421_s22] sm:$0xf]  ;;  %v1395_v26 = vmul.f32 %v1394_v22, %v1394_v22 }
  0x32   : > { %v1444_v25 = vld [vmem:[%s1438_s29] sm:$0xf]  ;;  %v1412_v27 = vmul.f32 %v1411_v23, %v1411_v23  ;;  %v1428_v28 = vsel %vm1391_vm2, %v1427_v24, 0.0 }
  0x33   : > { %v1445_v29 = vsel %vm1391_vm2, %v1444_v25, 0.0  ;;  %v1429_v30 = vmul.f32 %v1428_v28, %v1428_v28  ;;  %v1397_v33 = vsel %vm1396_vm3, 0.0, %v1395_v26 }
  0x34   : > { %v1414_v31 = vadd.f32 %v1412_v27, %v1395_v26  ;;  %v1446_v32 = vmul.f32 %v1445_v29, %v1445_v29  ;;  %v1413_v34 = vadd.f32 %v1412_v27, %v1397_v33 }
  0x36   : > { %v1431_v35 = vadd.f32 %v1429_v30, %v1414_v31  ;;  %v1430_v36 = vadd.f32 %v1429_v30, %v1413_v34  ;;  %v1448_v37 = vsel %vm1447_vm4, 0.0, %v1446_v32 }
  0x38   : > { %v1450_v38 = vadd.f32 %v1446_v32, %v1431_v35  ;;  %v1449_v39 = vadd.f32 %v1448_v37, %v1430_v36 }
  0x3a   : > { %1451 = vadd.xlane.f32.xlu0 %v1450_v38 }
  0x3e   : > { %1459 = vadd.xlane.f32.xlu0 %v1449_v39 }
  0xc7   : > { %v1452_v40 = vpop.xlane.xlu0 %1451 }
  0xc8   : > { %v1453_v41 = vrot.slane %v1452_v40, 4 }
  0xca   : > { %v1454_v42 = vadd.f32 %v1453_v41, %v1452_v40 }
  0xcb   : > { %v1460_v43 = vpop.xlane.xlu0 %1459 }
  0xcc   : > { %v1455_v44 = vrot.slane %v1454_v42, 2  ;;  %v1461_v45 = vrot.slane %v1460_v43, 4 }
  0xce   : > { %v1462_v46 = vadd.f32 %v1461_v45, %v1460_v43  ;;  %v1456_v47 = vadd.f32 %v1455_v44, %v1454_v42 }
  0xd0   : > { %v1463_v48 = vrot.slane %v1462_v46, 2  ;;  %v1457_v50 = vrot.slane %v1456_v47, 1 }
  0xd2   : > { %v1464_v49 = vadd.f32 %v1463_v48, %v1462_v46  ;;  %v1458_v53 = vadd.f32 %v1457_v50, %v1456_v47 }
  0xd4   : > { %v1465_v51 = vrot.slane %v1464_v49, 1 }
  0xd6   : > { %v1466_v52 = vadd.f32 %v1465_v51, %v1464_v49 }
  0xd8   : > { %1552 = vpush %v1466_v52 }
  0xd9   : > { %1554 = vpush %v1458_v53 }
 0x109   : > { %s1553_s14 = spop %1552 }
 0x10a   : > { %s1555_s15 = spop %1554 }
 0x10b   : > { %s1469_s16 = smul.f32 1e-10, %s1555_s15 }
 0x10d   : > { %p1470_p8 = scmp.le.f32.partialorder %s1553_s14, %s1469_s16 }
 0x10e   : > { %s1797_s17 = smov (!%p1470_p8), 0  }
 0x10f   : > { %1473 = sbr.rel (%p1470_p8) target bundleno = 953 (0x3b9), region = 467 }
 0x116 LB: >> { %s1802_s20 = smov 0   ;;  %s1645_s17 = sphi %s1797_s17, %s2043_s17  }
 0x117 LB: >>> { %s466_s30 = smov [#allocation20]  ;;  %v470_v6 = vmov %v1761_v6  ;;  %v473_v7 = vmov %v1763_v7  ;;  %s486_s21 = smov [#allocation21]  ;;  %vm789_vm14 = vcmp.eq.s32.totalorder %v1763_v7, 0  ;;  %vm801_vm15 = vcmp.eq.s32.totalorder %v1763_v7, 3  ;;  %s1649_s20 = sphi %s1802_s20, %s465_s20  }
 0x118   : >>> { %v490_v6 = vmov %v1761_v6  ;;  %v493_v7 = vmov %v1763_v7  ;;  %v474_v54 = vld [vmem:[%s466_s30] sm:$0xf]  ;;  %vm477_vm5 = vcmp.eq.s32.totalorder %v473_v7, %v470_v6  ;;  %s506_s22 = smov [#allocation23]  ;;  %s467_s29 = smov [#allocation24] }
 0x119   : >>> { %vm497_vm6 = vcmp.eq.s32.totalorder %v493_v7, %v490_v6  ;;  %v510_v6 = vmov %v1761_v6  ;;  %v513_v7 = vmov %v1763_v7  ;;  %v478_v55 = vsel %vm477_vm5, %v474_v54, 0.0  ;;  %v494_v56 = vld [vmem:[%s486_s21] sm:$0xf]  ;;  %s487_s14 = smov [#allocation25]  ;;  %s507_s15 = smov [#allocation26] }
 0x11a   : >>> { %vm517_vm7 = vcmp.eq.s32.totalorder %v513_v7, %v510_v6  ;;  %v479_v57 = vrot.slane %v478_v55, 4  ;;  %v498_v58 = vsel %vm497_vm6, %v494_v56, 0.0  ;;  %v514_v59 = vld [vmem:[%s506_s22] sm:$0xf]  ;;  %s530_s16 = smov [#allocation25]  ;;  %s528_s30 = smov [#allocation24]  ;;  %v579_v6 = vmov %v1761_v6 }
 0x11b   : >>> { %v499_v60 = vrot.slane %v498_v58, 4  ;;  %v518_v61 = vsel %vm517_vm7, %v514_v59, 0.0  ;;  %s532_s21 = smov [#allocation26]  ;;  %s567_s22 = smov [#allocation27]  ;;  %v582_v7 = vmov %v1763_v7  ;;  %v594_v6 = vmov %v1761_v6 }
 0x11c   : >>> { %v480_v62 = vadd.f32 %v479_v57, %v478_v55  ;;  %v519_v63 = vrot.slane %v518_v61, 4  ;;  %v597_v7 = vmov %v1763_v7  ;;  %vm584_vm12 = vcmp.eq.s32.totalorder %v582_v7, %v579_v6  ;;  %s1821_s24 = smov [#allocation22]  ;;  %s1827_s23 = smov [#allocation14] }
 0x11d   : >>> { %v500_v0 = vadd.f32 %v499_v60, %v498_v58  ;;  %vm599_vm13 = vcmp.eq.s32.totalorder %v597_v7, %v594_v6  ;;  %s829_s11 = smov [#allocation31]  ;;  %s1833_s27 = smov [#allocation18]  ;;  %v615_v55 = vld [vmem:[%s1821_s24] sm:$0xf]  ;;  %v692_v6 = vmov %v1761_v6  ;;  %v695_v7 = vmov %v1763_v7 }
 0x11e   : >>> { %v481_v1 = vrot.slane %v480_v62, 2  ;;  %v520_v2 = vadd.f32 %v519_v63, %v518_v61  ;;  %v838_v58 = vld [vmem:[%s1827_s23] sm:$0xf]  ;;  %s607_s26 = smov [#allocation32]  ;;  %s831_s25 = smov [#allocation32]  ;;  %v706_v6 = vmov %v1761_v6  ;;  %v709_v7 = vmov %v1763_v7 }
 0x11f   : >>> { %v501_v3 = vrot.slane %v500_v0, 2  ;;  %v840_v61 = vld [vmem:[%s1833_s27] sm:$0xf]  ;;  %vm699_vm0 = vcmp.eq.s32.totalorder %v695_v7, %v692_v6  ;;  %v665_v6 = vmov %v1761_v6  ;;  %v668_v7 = vmov %v1763_v7  ;;  %s465_s20 = sadd.s32 1, %s1649_s20  }
 0x120   : >>> { %v482_v4 = vadd.f32 %v481_v1, %v480_v62  ;;  %v521_v5 = vrot.slane %v520_v2, 2  ;;  %v679_v6 = vmov %v1761_v6  ;;  %v682_v7 = vmov %v1763_v7  ;;  %p462_p9 = scmp.ge.s32.totalorder %s465_s20, 7  }
 0x121   : >>> { %v502_v8 = vadd.f32 %v501_v3, %v500_v0  ;;  %vm714_vm1 = vcmp.eq.s32.totalorder %v709_v7, %v706_v6  ;;  %vm673_vm3 = vcmp.eq.s32.totalorder %v668_v7, %v665_v6  ;;  %vm686_vm4 = vcmp.eq.s32.totalorder %v682_v7, %v679_v6 }
 0x122   : >>> { %v483_v9 = vrot.slane %v482_v4, 1  ;;  %v522_v10 = vadd.f32 %v521_v5, %v520_v2  ;;  %vm728_vm5 = vcmp.eq.s32.totalorder %v1761_v6, 0  ;;  %vm732_vm6 = vcmp.eq.s32.totalorder %v1761_v6, 1 }
 0x123   : >>> { %v503_v11 = vrot.slane %v502_v8, 1  ;;  %vm745_vm7 = vcmp.eq.s32.totalorder %v1761_v6, 3  ;;  %v366_v6 = vmov (%p462_p9), %v1761_v6  ;;  %v369_v7 = vmov (%p462_p9), %v1763_v7 }
 0x124   : >>> { %v484_v12 = vadd.f32 %v483_v9, %v482_v4  ;;  %v523_v13 = vrot.slane %v522_v10, 1  ;;  %v419_v6 = vmov (%p462_p9), %v1761_v6 }
 0x125   : >>> { %v504_v14 = vadd.f32 %v503_v11, %v502_v8 }
 0x126   : >>> { %485 = vst [vmem:[%s467_s29] sm:$0x1] %v484_v12  ;;  %v524_v15 = vadd.f32 %v523_v13, %v522_v10  ;;  %s569_s29 = smov [#allocation28] }
 0x127   : >>> { %505 = vst [vmem:[%s487_s14] sm:$0x1] %v504_v14  ;;  %s526_s14 = smov [#allocation29] }
 0x128   : >>> { %525 = vst [vmem:[%s507_s15] sm:$0x1] %v524_v15  ;;  %s527_s15 = smov [#allocation30]  ;;  %s571_s14 = smov %s526_s14 }
 0x129   : >>> { %s573_s15 = smov %s527_s15 }
 0x12d   : >>> { %v529_v18 = vld [vmem:[%s528_s30] sm:$0xff]  ;;  %s590_s30 = smov [#allocation30] }
 0x12e   : >>> { %v531_v16 = vld [vmem:[%s530_s16] sm:$0xff]  ;;  %v552_v31 = vand.u32 2147483647, %v529_v18  ;;  %s575_s16 = smov [#allocation29] }
 0x12f   : >>> { %v535_v17 = vmul.f32 2.0, %v531_v16  ;;  %v533_v19 = vld [vmem:[%s532_s21] sm:$0xff]  ;;  %v553_v36 = vand.u32 2147483647, %v531_v16  ;;  %s588_s21 = smov [#allocation31] }
 0x130   : >>> { %v534_v20 = vsub.f32 %v533_v19, %v529_v18  ;;  %v554_v32 = vand.u32 2147483647, %v533_v19 }
 0x131   : >>> { %1603 = vrcp.f32 %v535_v17 }
 0x132   : >>> { %v555_v35 = vmin.f32 %v552_v31, %v554_v32 }
 0x134   : >>> { %v556_v37 = vmul.f32 1.1920929e-08, %v555_v35 }
 0x136   : >>> { %vm557_vm11 = vcmp.le.f32.partialorder %v553_v36, %v556_v37 }
 0x13b   : >>> { %v1604_v21 = vpop.eup %1603 }
 0x13c   : >>> { %v537_v22 = vmul.f32 %v1604_v21, %v534_v20 }
 0x13e   : >>> { %v539_v23 = vmul.f32 %v537_v22, %v537_v22  ;;  %vm538_vm10 = vcmp.ge.f32.partialorder %v537_v22, 0.0 }
 0x140   : >>> { %v540_v24 = vadd.f32 1.0, %v539_v23 }
 0x142   : >>> { %1605 = vrsqrt.f32 %v540_v24  ;;  %vm543_vm8 = vcmp.eq.f32.partialorder %v540_v24, inf  ;;  %v546_v26 = vand.u32 2147483648, %v540_v24  ;;  %vm545_vm9 = vcmp.eq.f32.partialorder %v540_v24, 0.0 }
 0x14c   : >>> { %v1606_v25 = vpop.eup %1605 }
 0x14d   : >>> { %v542_v27 = vmul.f32 %v1606_v25, %v540_v24 }
 0x14f   : >>> { %v544_v28 = vsel %vm543_vm8, %v540_v24, %v542_v27  ;;  %vm381_vm8 = vcmp.eq.s32.totalorder (%p462_p9), %v369_v7, %v366_v6  ;;  %v422_v7 = vmov (%p462_p9), %v1763_v7  ;;  %v385_v6 = vmov (%p462_p9), %v1761_v6 }
 0x150   : >>> { %v547_v29 = vsel %vm545_vm9, %v546_v26, %v544_v28  ;;  %v388_v7 = vmov (%p462_p9), %v1763_v7  ;;  %v402_v6 = vmov (%p462_p9), %v1761_v6  ;;  %vm434_vm9 = vcmp.eq.s32.totalorder (%p462_p9), %v422_v7, %v419_v6 }
 0x151   : >>> { %v548_v30 = vxor.u32 2147483648, %v547_v29  ;;  %v405_v7 = vmov (%p462_p9), %v1763_v7 }
 0x153   : >>> { %v549_v33 = vsel %vm538_vm10, %v547_v29, %v548_v30 }
 0x154   : >>> { %v550_v34 = vadd.f32 %v549_v33, %v537_v22 }
 0x156   : >>> { %1607 = vrcp.f32 %v550_v34 }
 0x160   : >>> { %v1608_v38 = vpop.eup %1607 }
 0x161   : >>> { %v558_v39 = vsel %vm557_vm11, 0.0, %v1608_v38 }
 0x162   : >>> { %v559_v40 = vmul.f32 %v558_v39, %v558_v39  ;;  %v563_v41 = vmul.f32 %v558_v39, %v531_v16 }
 0x164   : >>> { %v560_v42 = vadd.f32 1.0, %v559_v40  ;;  %v564_v43 = vsub.f32 %v529_v18, %v563_v41  ;;  %v566_v44 = vadd.f32 %v563_v41, %v533_v19 }
 0x166   : >>> { %1609 = vrsqrt.f32 %v560_v42  ;;  %568 = vst [vmem:[%s567_s22] sm:$0xff] %v564_v43  ;;  %570 = vst [vmem:[%s569_s29] sm:$0xff] %v566_v44  ;;  %s605_s22 = smov [#allocation31]  ;;  %s1817_s29 = smov [#allocation20] }
 0x167   : >>> { %v613_v53 = vld [vmem:[%s1817_s29] sm:$0xf] }
 0x170   : >>> { %v1610_v45 = vpop.eup %1609 }
 0x171   : >>> { %572 = vst [vmem:[%s571_s14] sm:$0xff] %v1610_v45  ;;  %v562_v46 = vmul.f32 %v1610_v45, %v558_v39  ;;  %s603_s14 = smov [#allocation32] }
 0x173   : >>> { %574 = vst [vmem:[%s573_s15] sm:$0xff] %v562_v46  ;;  %s1819_s15 = smov [#allocation21] }
 0x174   : >>> { %v614_v54 = vld [vmem:[%s1819_s15] sm:$0xf] }
 0x178   : >>> { %v576_v47 = vld [vmem:[%s575_s16] ss:$0 sm:$0xff]  ;;  %s1823_s16 = smov [#allocation23] }
 0x179   : >>> { %v585_v48 = vsel %vm584_vm12, %v576_v47, 0.0  ;;  %v616_v56 = vld [vmem:[%s1823_s16] sm:$0xf] }
 0x17a   : >>> { %586 = vadd.xlane.f32.xlu0 %v585_v48  ;;  %v591_v49 = vld [vmem:[%s590_s30] ss:$0 sm:$0xff]  ;;  %s1825_s30 = smov [#allocation12] }
 0x17b   : >>> { %v600_v50 = vsel %vm599_vm13, %v591_v49, 0.0  ;;  %v837_v57 = vld [vmem:[%s1825_s30] sm:$0xf] }
 0x17e   : >>> { %601 = vadd.xlane.f32.xlu0 %v600_v50 }
 0x207   : >>> { %v587_v51 = vpop.xlane.xlu0 %586 }
 0x208   : >>> { %589 = vst [vmem:[%s588_s21] sm:$0xff] %v587_v51  ;;  %s1829_s21 = smov [#allocation16] }
 0x209   : >>> { %v839_v59 = vld [vmem:[%s1829_s21] sm:$0xf] }
 0x20b   : >>> { %v602_v52 = vpop.xlane.xlu0 %601 }
 0x20c   : >>> { %604 = vst [vmem:[%s603_s14] sm:$0xff] %v602_v52  ;;  %s1853_s14 = smov [#allocation23] }
 0x20f   : >>> { %v606_v60 = vld [vmem:[%s605_s22] sm:$0xff]  ;;  %s1851_s22 = smov [#allocation22] }
 0x210   : >>> { %v830_v62 = vld [vmem:[%s829_s11] sm:$0xff]  ;;  %v617_v63 = vmul.f32 %v613_v53, %v606_v60  ;;  %v620_v0 = vmul.f32 %v614_v54, %v606_v60  ;;  %v624_v1 = vmul.f32 %v615_v55, %v606_v60  ;;  %v627_v2 = vmul.f32 %v616_v56, %v606_v60  ;;  %s1849_s11 = smov [#allocation12] }
 0x211   : >>> { %v841_v3 = vmul.f32 %v837_v57, %v830_v62  ;;  %v844_v4 = vmul.f32 %v838_v58, %v830_v62  ;;  %v848_v5 = vmul.f32 %v839_v59, %v830_v62  ;;  %v851_v8 = vmul.f32 %v840_v61, %v830_v62 }
 0x213   : >>> { %v608_v9 = vld [vmem:[%s607_s26] sm:$0xff]  ;;  %s635_s26 = smov [#allocation30] }
 0x214   : >>> { %v832_v10 = vld [vmem:[%s831_s25] sm:$0xff]  ;;  %v618_v11 = vmul.f32 %v615_v55, %v608_v9  ;;  %v621_v12 = vmul.f32 %v616_v56, %v608_v9  ;;  %v623_v13 = vmul.f32 %v613_v53, %v608_v9  ;;  %v626_v14 = vmul.f32 %v614_v54, %v608_v9  ;;  %s633_s25 = smov [#allocation29] }
 0x215   : >>> { %v842_v15 = vmul.f32 %v839_v59, %v832_v10  ;;  %v845_v16 = vmul.f32 %v840_v61, %v832_v10  ;;  %v847_v17 = vmul.f32 %v837_v57, %v832_v10  ;;  %v850_v18 = vmul.f32 %v838_v58, %v832_v10  ;;  %v634_v27 = vld [vmem:[%s633_s25] ss:$0 sm:$0xff]  ;;  %s662_s25 = smov [#allocation27] }
 0x216   : >>> { %v619_v19 = vsub.f32 %v617_v63, %v618_v11  ;;  %v622_v20 = vsub.f32 %v620_v0, %v621_v12  ;;  %v625_v21 = vadd.f32 %v624_v1, %v623_v13  ;;  %v628_v22 = vadd.f32 %v627_v2, %v626_v14  ;;  %v636_v28 = vld [vmem:[%s635_s26] ss:$0 sm:$0xff]  ;;  %s661_s26 = smov [#allocation20] }
 0x217   : >>> { %v843_v23 = vsub.f32 %v841_v3, %v842_v15  ;;  %v846_v24 = vsub.f32 %v844_v4, %v845_v16  ;;  %v849_v25 = vadd.f32 %v848_v5, %v847_v17  ;;  %v852_v26 = vadd.f32 %v851_v8, %v850_v18  ;;  %v669_v63 = vld [vmem:[%s662_s25] ss:$0 sm:$0xff]  ;;  %s905_s25 = sadd.s32 (%p462_p9), 1, %s1645_s17  }
 0x218   : >>> { %630 = vst [vmem:[%s1819_s15] sm:$0xf] %v622_v20  ;;  %632 = vst [vmem:[%s1823_s16] sm:$0xf] %v628_v22  ;;  %s1855_s15 = smov [#allocation20]  ;;  %s703_s16 = smov [#allocation28] }
 0x219   : >>> { %629 = vst [vmem:[%s1817_s29] sm:$0xf] %v619_v19  ;;  %631 = vst [vmem:[%s1821_s24] sm:$0xf] %v625_v21  ;;  %s1857_s24 = smov [#allocation16]  ;;  %s1865_s29 = smov [#allocation21]  ;;  %v710_v59 = vld [vmem:[%s703_s16] ss:$0 sm:$0xff] }
 0x21a   : >>> { %853 = vst [vmem:[%s1825_s30] sm:$0xf] %v843_v23  ;;  %854 = vst [vmem:[%s1827_s23] sm:$0xf] %v846_v24  ;;  %s1859_s23 = smov [#allocation14]  ;;  %s689_s30 = smov [#allocation22] }
 0x21b   : >>> { %855 = vst [vmem:[%s1829_s21] sm:$0xf] %v849_v25  ;;  %856 = vst [vmem:[%s1833_s27] sm:$0xf] %v852_v26  ;;  %s1863_s27 = smov [#allocation18]  ;;  %s702_s21 = smov [#allocation23] }
 0x21c   : >>> { %s805_s16 = smov [#allocation21]  ;;  %p458_p10 = scmp.ge.s32.totalorder (%p462_p9), %s905_s25, 15 }
 0x21d   : >> { %s2043_s17 = smov (%p462_p9), %s905_s25 }
 0x21f   : >>> { %v644_v30 = vld [vmem:[%s1853_s14] sm:$0xf] }
 0x220   : >>> { %v643_v29 = vld [vmem:[%s1851_s22] sm:$0xf]  ;;  %v652_v36 = vmul.f32 %v644_v30, %v636_v28  ;;  %v655_v42 = vmul.f32 %v644_v30, %v634_v27 }
 0x221   : >>> { %v641_v31 = vld [vmem:[%s1855_s15] sm:$0xf]  ;;  %v651_v35 = vmul.f32 %v643_v29, %v634_v27  ;;  %v654_v37 = vmul.f32 %v643_v29, %v636_v28 }
 0x222   : >>> { %v859_v32 = vld [vmem:[%s1849_s11] ss:$0 sm:$0xff]  ;;  %v1531_v34 = vld [vmem:[%s1849_s11 + $0x3] ss:$0 sm:$0xff]  ;;  %v645_v48 = vmul.f32 %v641_v31, %v634_v27  ;;  %v648_v49 = vmul.f32 %v641_v31, %v636_v28 }
 0x223   : >>> { %v1530_v33 = vld [vmem:[%s1849_s11 - $0x1] sm:$0xe]  ;;  %v1535_v45 = vld [vmem:[%s1859_s23 + $0x3] ss:$0 sm:$0xff]  ;;  %v653_v47 = vsub.f32 %v651_v35, %v652_v36  ;;  %v656_v53 = vadd.f32 %v655_v42, %v654_v37 }
 0x224   : >>> { %v866_v38 = vsel %vm789_vm14, %v859_v32, %v1530_v33  ;;  %v870_v39 = vld [vmem:[%s1857_s24] ss:$0 sm:$0xff]  ;;  %v1533_v40 = vld [vmem:[%s1857_s24 + $0x1] sm:$0x7] }
 0x225   : >>> { %v883_v41 = vld [vmem:[%s1859_s23] ss:$0 sm:$0xff]  ;;  %869 = vst [vmem:[%s1849_s11] sm:$0xf] %v866_v38  ;;  %v878_v43 = vsel %vm801_vm15, %v1531_v34, %v1533_v40  ;;  %v1537_v51 = vld [vmem:[%s1863_s27 + $0x1] sm:$0x7]  ;;  %659 = vst [vmem:[%s1851_s22] sm:$0xf] %v653_v47 }
 0x226   : >>> { %v1534_v44 = vld [vmem:[%s1859_s23 - $0x1] sm:$0xe]  ;;  %1532 = vst [vmem:[%s1849_s11 + $0x1] sm:$0x1] %v870_v39  ;;  %880 = vst [vmem:[%s1857_s24] sm:$0xf] %v878_v43  ;;  %v902_v54 = vsel %vm801_vm15, %v1535_v45, %v1537_v51  ;;  %s676_s11 = smov [#allocation21] }
 0x227   : >>> { %v894_v46 = vld [vmem:[%s1863_s27] ss:$0 sm:$0xff]  ;;  %v890_v50 = vsel %vm789_vm14, %v883_v41, %v1534_v44  ;;  %660 = vst [vmem:[%s1853_s14] sm:$0xf] %v656_v53  ;;  %s1907_s22 = smov [#allocation22]  ;;  %s1652_s14 = smov 1  }
 0x228   : >>> { %v642_v52 = vld [vmem:[%s1865_s29] sm:$0xf]  ;;  %893 = vst [vmem:[%s1859_s23] sm:$0xf] %v890_v50  ;;  %904 = vst [vmem:[%s1863_s27] sm:$0xf] %v902_v54  ;;  %s718_s24 = smov [#allocation21]  ;;  %s1910_s27 = smov [#allocation23] }
 0x229   : >>> { %v646_v55 = vmul.f32 %v642_v52, %v636_v28  ;;  %v649_v56 = vmul.f32 %v642_v52, %v634_v27  ;;  %1536 = vst [vmem:[%s1859_s23 + $0x1] sm:$0x1] %v894_v46  ;;  %s1653_s23 = smov 127  }
 0x22b   : >>> { %v647_v57 = vsub.f32 %v645_v48, %v646_v55  ;;  %v650_v58 = vadd.f32 %v649_v56, %v648_v49 }
 0x22c   : >>> { %v696_v60 = vld [vmem:[%s689_s30] sm:$0xf] }
 0x22d   : >>> { %657 = vst [vmem:[%s1855_s15] sm:$0xf] %v647_v57  ;;  %658 = vst [vmem:[%s1865_s29] sm:$0xf] %v650_v58  ;;  %v700_v61 = vsel %vm699_vm0, 0.0, %v696_v60  ;;  %s717_s15 = smov [#allocation20]  ;;  %s781_s29 = smov [#allocation20] }
 0x22e   : >>> { %v711_v62 = vld [vmem:[%s702_s21] sm:$0xf]  ;;  %701 = vst [vmem:[%s689_s30] sm:$0xf] %v700_v61  ;;  %s782_s30 = smov [#allocation22] }
 0x22f   : >>> { %v715_v0 = vsel %vm714_vm1, %v710_v59, %v711_v62 }
 0x230   : >>> { %716 = vst [vmem:[%s702_s21] sm:$0xf] %v715_v0  ;;  %s806_s21 = smov [#allocation23] }
 0x234   : >>> { %v670_v1 = vld [vmem:[%s661_s26] sm:$0xf] }
 0x235   : >>> { %v683_v2 = vld [vmem:[%s676_s11] sm:$0xf]  ;;  %v674_v3 = vsel %vm673_vm3, %v669_v63, %v670_v1 }
 0x236   : >>> { %v687_v4 = vsel %vm686_vm4, 0.0, %v683_v2  ;;  %675 = vst [vmem:[%s661_s26] sm:$0xf] %v674_v3  ;;  %v755_v5 = vld [vmem:[%s1907_s22] sm:$0xf]  ;;  %s370_s26 = smov (%p462_p9), [#allocation20] }
 0x237   : >>> { %688 = vst [vmem:[%s676_s11] sm:$0xf] %v687_v4  ;;  %756 = vrot.lane.b32.xlu0 %v755_v5, %s1652_s14  ;;  %v751_v11 = vld [vmem:[%s1910_s27] sm:$0xf]  ;;  %s389_s11 = smov (%p462_p9), [#allocation21] }
 0x238   : >>> { %v772_v12 = vld [vmem:[%s1910_s27] sm:$0xf] }
 0x239   : >>> { %v754_v30 = vld [vmem:[%s1907_s22] sm:$0xf] }
 0x23d   : >>> { %v723_v8 = vld [vmem:[%s717_s15] sm:$0xf] }
 0x23e   : >>> { %724 = vrot.lane.b32.xlu1 %v723_v8, %s1652_s14  ;;  %v719_v9 = vld [vmem:[%s718_s24] sm:$0xf] }
 0x23f   : >>> { %v740_v10 = vld [vmem:[%s718_s24] sm:$0xf] }
 0x240   : >>> { %v722_v18 = vld [vmem:[%s717_s15] sm:$0xf] }
 0x242   : >>> { %720 = vrot.lane.b32.xlu1 %v719_v9, %s1652_s14 }
 0x246   : >>> { %741 = vrot.lane.b32.xlu1 %v740_v10, %s1653_s23 }
 0x24a   : >>> { %752 = vrot.lane.b32.xlu1 %v751_v11, %s1652_s14  ;;  %s423_s14 = smov (%p462_p9), [#allocation23] }
 0x24e   : >>> { %773 = vrot.lane.b32.xlu1 %v772_v12, %s1653_s23 }
 0x2a9   : >>> { %v757_v20 = vpop.permute.xlu0 %756 }
 0x2aa   : >>> { %v761_v22 = vsel %vm728_vm5, %v755_v5, %v757_v20 }
 0x2b0   : >>> { %v725_v13 = vpop.permute.xlu1 %724 }
 0x2b1   : >>> { %v729_v14 = vsel %vm728_vm5, %v723_v8, %v725_v13 }
 0x2b4   : >>> { %v721_v15 = vpop.permute.xlu1 %720 }
 0x2b5   : >>> { %v733_v16 = vsel %vm732_vm6, %v721_v15, %v729_v14 }
 0x2b6   : >>> { %v739_v17 = vsel %vm1391_vm2, %v733_v16, 0.0 }
 0x2b7   : >>> { %747 = vst [vmem:[%s717_s15] sm:$0xf] %v739_v17 }
 0x2b8   : >>> { %v742_v19 = vpop.permute.xlu1 %741 }
 0x2b9   : >>> { %v746_v21 = vsel %vm745_vm7, %v722_v18, %v742_v19 }
 0x2ba   : >>> { %748 = vst [vmem:[%s718_s24] sm:$0xf] %v746_v21 }
 0x2bc   : >>> { %v753_v23 = vpop.permute.xlu1 %752 }
 0x2bd   : >>> { %v765_v24 = vsel %vm732_vm6, %v753_v23, %v761_v22 }
 0x2be   : >>> { %v783_v25 = vld [vmem:[%s781_s29] ss:$0 sm:$0xff]  ;;  %v1523_v27 = vld [vmem:[%s781_s29 + $0x3] ss:$0 sm:$0xff]  ;;  %v771_v29 = vsel %vm1391_vm2, %v765_v24, 0.0 }
 0x2bf   : >>> { %v1522_v26 = vld [vmem:[%s781_s29 - $0x1] sm:$0xe]  ;;  %779 = vst [vmem:[%s1907_s22] sm:$0xf] %v771_v29  ;;  %s406_s22 = smov (%p462_p9), [#allocation22] }
 0x2c0   : >>> { %v790_v28 = vsel %vm789_vm14, %v783_v25, %v1522_v26  ;;  %v774_v31 = vpop.permute.xlu1 %773 }
 0x2c1   : >>> { %793 = vst [vmem:[%s781_s29] sm:$0xf] %v790_v28  ;;  %v807_v32 = vld [vmem:[%s805_s16] ss:$0 sm:$0xff]  ;;  %v1527_v34 = vld [vmem:[%s805_s16 + $0x3] ss:$0 sm:$0xff]  ;;  %v778_v35 = vsel %vm745_vm7, %v754_v30, %v774_v31 }
 0x2c2   : >>> { %v1526_v33 = vld [vmem:[%s805_s16 - $0x1] sm:$0xe]  ;;  %780 = vst [vmem:[%s1910_s27] sm:$0xf] %v778_v35 }
 0x2c3   : >>> { %v814_v36 = vsel %vm789_vm14, %v807_v32, %v1526_v33 }
 0x2c4   : >>> { %817 = vst [vmem:[%s805_s16] sm:$0xf] %v814_v36 }
 0x2c6   : >>> { %v794_v37 = vld [vmem:[%s782_s30] ss:$0 sm:$0xff]  ;;  %v1525_v38 = vld [vmem:[%s782_s30 + $0x1] sm:$0x7] }
 0x2c7   : >>> { %1524 = vst [vmem:[%s781_s29 + $0x1] sm:$0x1] %v794_v37  ;;  %v802_v39 = vsel %vm801_vm15, %v1523_v27, %v1525_v38  ;;  %464 = sbr.rel (!%p462_p9) target bundleno = 279 (0x117), region = 462 }
 0x2c8   : >>> { %804 = vst [vmem:[%s782_s30] sm:$0xf] %v802_v39 }
 0x2c9   : >>> { %v818_v40 = vld [vmem:[%s806_s21] ss:$0 sm:$0xff]  ;;  %v1529_v41 = vld [vmem:[%s806_s21 + $0x1] sm:$0x7] }
 0x2ca   : >>> { %1528 = vst [vmem:[%s805_s16 + $0x1] sm:$0x1] %v818_v40  ;;  %v826_v42 = vsel %vm801_vm15, %v1527_v34, %v1529_v41 }
 0x2cb   : >>> { %828 = vst [vmem:[%s806_s21] sm:$0xf] %v826_v42 }
 0x2ce   : >> { %v376_v43 = vld [vmem:[%s370_s26] sm:$0xf] }
 0x2cf   : >> { %v377_v45 = vsel %vm1391_vm2, %v376_v43, 0.0  ;;  %v412_v47 = vld [vmem:[%s406_s22] sm:$0xf] }
 0x2d0   : >> { %v378_v49 = vmul.f32 %v377_v45, %v377_v45  ;;  %v413_v51 = vsel %vm1391_vm2, %v412_v47, 0.0 }
 0x2d1   : >> { %v395_v44 = vld [vmem:[%s389_s11] sm:$0xf]  ;;  %v414_v53 = vmul.f32 %v413_v51, %v413_v51 }
 0x2d2   : >> { %v396_v46 = vsel %vm1391_vm2, %v395_v44, 0.0  ;;  %v429_v48 = vld [vmem:[%s423_s14] sm:$0xf]  ;;  %v382_v56 = vsel %vm381_vm8, 0.0, %v378_v49 }
 0x2d3   : >> { %v397_v50 = vmul.f32 %v396_v46, %v396_v46  ;;  %v430_v52 = vsel %vm1391_vm2, %v429_v48, 0.0 }
 0x2d4   : >> { %v431_v55 = vmul.f32 %v430_v52, %v430_v52 }
 0x2d5   : >> { %v399_v54 = vadd.f32 %v397_v50, %v378_v49  ;;  %v398_v57 = vadd.f32 %v397_v50, %v382_v56 }
 0x2d6   : >> { %v435_v60 = vsel %vm434_vm9, 0.0, %v431_v55 }
 0x2d7   : >> { %v416_v58 = vadd.f32 %v414_v53, %v399_v54  ;;  %v415_v59 = vadd.f32 %v414_v53, %v398_v57 }
 0x2d9   : >> { %v437_v61 = vadd.f32 %v431_v55, %v416_v58  ;;  %v436_v62 = vadd.f32 %v435_v60, %v415_v59 }
 0x2db   : >> { %438 = vadd.xlane.f32.xlu0 %v437_v61 }
 0x2df   : >> { %446 = vadd.xlane.f32.xlu0 %v436_v62 }
 0x368   : >> { %v439_v63 = vpop.xlane.xlu0 %438 }
 0x369   : >> { %v440_v0 = vrot.slane %v439_v63, 4 }
 0x36b   : >> { %v441_v1 = vadd.f32 %v440_v0, %v439_v63 }
 0x36c   : >> { %v447_v2 = vpop.xlane.xlu0 %446 }
 0x36d   : >> { %v442_v3 = vrot.slane %v441_v1, 2  ;;  %v448_v4 = vrot.slane %v447_v2, 4 }
 0x36f   : >> { %v449_v5 = vadd.f32 %v448_v4, %v447_v2  ;;  %v443_v8 = vadd.f32 %v442_v3, %v441_v1 }
 0x371   : >> { %v450_v9 = vrot.slane %v449_v5, 2  ;;  %v444_v11 = vrot.slane %v443_v8, 1 }
 0x373   : >> { %v451_v10 = vadd.f32 %v450_v9, %v449_v5  ;;  %v445_v14 = vadd.f32 %v444_v11, %v443_v8 }
 0x375   : >> { %v452_v12 = vrot.slane %v451_v10, 1 }
 0x377   : >> { %v453_v13 = vadd.f32 %v452_v12, %v451_v10 }
 0x379   : >> { %1556 = vpush %v453_v13 }
 0x37a   : >> { %1558 = vpush %v445_v14 }
 0x3aa   : >> { %s1557_s20 = spop %1556 }
 0x3ab   : >> { %s1559_s15 = spop %1558 }
 0x3ac   : >> { %s456_s24 = smul.f32 1e-10, %s1559_s15 }
 0x3ae   : >> { %p457_p11 = scmp.le.f32.partialorder %s1557_s20, %s456_s24 }
 0x3b0   : >> { %p459_p12 = por %p458_p10, %p457_p11 }
 0x3b2   : > { %907 = sbr.rel (!%p459_p12) target bundleno = 278 (0x116), region = 473 }
 0x3b9 PF: > { %s912_s23 = smov [#allocation20]  ;;  %v916_v6 = vmov %v1761_v6  ;;  %v919_v7 = vmov %v1763_v7  ;;  %v967_v15 = vld [vmem:[#allocation12] sm:$0xf]  ;;  %v973_v16 = vld [vmem:[#allocation14] sm:$0xf]  ;;  %s2044_s17 = scalar_lea.vmem [#allocation13], %s1757_s28 }
 0x3ba   : > { %v936_v6 = vmov %v1761_v6  ;;  %v939_v7 = vmov %v1763_v7  ;;  %v920_v17 = vld [vmem:[%s912_s23] sm:$0xf]  ;;  %vm923_vm10 = vcmp.eq.s32.totalorder %v919_v7, %v916_v6  ;;  %969 = vst [vmem:[%s2044_s17] sm:$0xf] %v967_v15  ;;  %s2045_s27 = scalar_lea.vmem [#allocation15], %s1757_s28  ;;  %v979_v18 = vld [vmem:[#allocation16] sm:$0xf] }
 0x3bb   : > { %vm943_vm11 = vcmp.eq.s32.totalorder %v939_v7, %v936_v6  ;;  %975 = vst [vmem:[%s2045_s27] sm:$0xf] %v973_v16  ;;  %v924_v19 = vsel %vm923_vm10, %v920_v17, 0.0  ;;  %s932_s29 = smov [#allocation23]  ;;  %s2046_s16 = scalar_lea.vmem [#allocation17], %s1757_s28  ;;  %v985_v20 = vld [vmem:[#allocation18] sm:$0xf] }
 0x3bc   : > { %981 = vst [vmem:[%s2046_s16] sm:$0xf] %v979_v18  ;;  %v925_v21 = vrot.slane %v924_v19, 4  ;;  %v940_v22 = vld [vmem:[%s932_s29] sm:$0xf]  ;;  %s2047_s30 = scalar_lea.vmem [#allocation19], %s1757_s28  ;;  %s908_s21 = sand.u32 7, %s1720_s12  }
 0x3bd   : > { %987 = vst [vmem:[%s2047_s30] sm:$0xf] %v985_v20  ;;  %v944_v23 = vsel %vm943_vm11, %v940_v22, 0.0  ;;  %s909_s25 = scalar_lea.vmem [#allocation8], %s908_s21  ;;  %s911_s26 = scalar_lea.vmem [#allocation10], %s908_s21 }
 0x3be   : > { %v926_v24 = vadd.f32 %v925_v21, %v924_v19  ;;  %v945_v25 = vrot.slane %v944_v23, 4  ;;  %s913_s25 = smov %s909_s25  ;;  %s933_s26 = smov %s911_s26 }
 0x3bf   : > { %s2048_s11 = scalar_lea.vmem [#allocation9], %s1759_s18  ;;  %s2049_s22 = scalar_lea.vmem [#allocation11], %s1759_s18 }
 0x3c0   : > { %v927_v26 = vrot.slane %v926_v24, 2  ;;  %v946_v6 = vadd.f32 %v945_v25, %v944_v23  ;;  %s1015_s14 = sshrl.u32 (%p1734_p3), %s1720_s12, 3  ;;  %s2050_s20 = scalar_lea.vmem (%p1734_p3), [#allocation9], %s1759_s18 }
 0x3c1   : > { %s1544_s15 = sshll.u32 (%p1734_p3), %s1015_s14, 1 }
 0x3c2   : > { %v928_v7 = vadd.f32 %v927_v26, %v926_v24  ;;  %v947_v27 = vrot.slane %v946_v6, 2  ;;  %s1017_s17 = scalar_lea.vmem (%p1734_p3), %s2035_s4, %s1544_s15 }
 0x3c4   : > { %v929_v28 = vrot.slane %v928_v7, 1  ;;  %v948_v29 = vadd.f32 %v947_v27, %v946_v6 }
 0x3c6   : > { %v930_v30 = vadd.f32 %v929_v28, %v928_v7  ;;  %v949_v31 = vrot.slane %v948_v29, 1 }
 0x3c8   : > { %931 = vst [vmem:[%s913_s25] sm:$0x1] %v930_v30  ;;  %v950_v32 = vadd.f32 %v949_v31, %v948_v29 }
 0x3ca   : > { %951 = vst [vmem:[%s933_s26] sm:$0x1] %v950_v32 }
 0x3cc   : > { %1014 = sbr.rel (!%p1734_p3) target bundleno = 985 (0x3d9), region = 158 }
 0x3cf   : > { %v955_v33 = vld [vmem:[#allocation8] sm:$0x3] }
 0x3d0   : > { %957 = vst [vmem:[%s2048_s11] sm:$0x3] %v955_v33 }
 0x3d1   : > { %v961_v34 = vld [vmem:[#allocation10] sm:$0x3] }
 0x3d2   : > { %963 = vst [vmem:[%s2049_s22] sm:$0x3] %v961_v34 }
 0x3d7   : > { %v1033_v35 = vld [vmem:[%s2050_s20] sm:$0x3] }
 0x3d8   : > { %1034 = vst [vmem:[%s1017_s17] sm:$0x3] %v1033_v35 }
 0x3d9 PF: > { %1051 = sbr.rel (!%p1734_p3) target bundleno = 993 (0x3e1), region = 192  ;;  %s1052_s27 = sshrl.u32 (%p1734_p3), %s1720_s12, 3 }
 0x3da   : > { %s2051_s29 = scalar_lea.vmem (%p1734_p3), [#allocation11], %s1759_s18  ;;  %s1545_s16 = sshll.u32 (%p1734_p3), %s1052_s27, 1 }
 0x3db   : > { %s1054_s25 = scalar_lea.vmem (%p1734_p3), %s2036_s5, %s1545_s16 }
 0x3df   : > { %v1070_v36 = vld [vmem:[%s2051_s29] sm:$0x3] (%p1734_p3) }
 0x3e0   : > { %1071 = vst [vmem:[%s1054_s25] sm:$0x3] %v1070_v36 }
 0x3e1 PF: > { %s1546_s26 = sshll.u32 %s1720_s12, 2  ;;  %s2052_s19 = scalar_lea.vmem [#allocation13], %s1757_s28 }
 0x3e2   : > { %v1103_v37 = vld [vmem:[%s2052_s19] sm:$0xf]  ;;  %s2053_s11 = scalar_lea.vmem [#allocation15], %s1757_s28  ;;  %s1087_s14 = scalar_lea.vmem %s2037_s6, %s1546_s26 }
 0x3e3   : > { %v1136_v38 = vld [vmem:[%s2053_s11] sm:$0xf]  ;;  %s1120_s24 = scalar_lea.vmem %s2038_s7, %s1546_s26  ;;  %s2054_s23 = scalar_lea.vmem [#allocation17], %s1757_s28  ;;  %1104 = vst [vmem:[%s1087_s14] sm:$0xf] %v1103_v37 }
 0x3e4   : > { %v1169_v39 = vld [vmem:[%s2054_s23] sm:$0xf]  ;;  %s2055_s17 = scalar_lea.vmem [#allocation19], %s1757_s28  ;;  %1137 = vst [vmem:[%s1120_s24] sm:$0xf] %v1136_v38  ;;  %s1153_s29 = scalar_lea.vmem %s2039_s8, %s1546_s26 }
 0x3e5   : > { %v1202_v40 = vld [vmem:[%s2055_s17] sm:$0xf]  ;;  %s1186_s21 = scalar_lea.vmem %s2040_s9, %s1546_s26  ;;  %1170 = vst [vmem:[%s1153_s29] sm:$0xf] %v1169_v39 }
 0x3e6   : > { %1203 = vst [vmem:[%s1186_s21] sm:$0xf] %v1202_v40 }
 0x3e7 PF: > { %s2056_s25 = sld [smem:[#allocation33_spill]]  ;;  %p13_p13 = scmp.ge.s32.totalorder %s1723_s13, 4  }
 0x3e8   : > { %s2057_s30 = smov %s1637_s10  ;;  %s2059_s11 = smov %s1723_s13 }
 0x3e9   :  { %15 = sbr.rel (!%p13_p13) target bundleno = 2 (0x2), region = 484 }
 0x3ed   : > { %s2058_s10 = smov %s2056_s25 }

// kernel: reverse
= control target key start
LH: loop header
LB: loop body
LE: loop exit
PB: predicated region body
PF: predicated region fallthrough
CT: control target
= control target key end

     0   :  { %v2_v0 = vlaneseq  ;;  %s105_s0 = inlined_call_operand.vmem [shape: f32[2,8], index: 0, kind: input, shape index: {}]   ;;  %s106_s1 = inlined_call_operand.vmem [shape: f32[2,8], index: 1, kind: output, shape index: {}]  }
   0x2   :  { %v3_v1 = vsub.s32 7, %v2_v0 }
   0x4   :  { %4 = vset.pattern.permute.xlu0 %v3_v1 }
   0x5   :  { %v20_v2 = vld [vmem:[%s105_s0] sm:$0x3] }
   0x6   :  { %21 = vst [vmem:[#allocation1] sm:$0x3] %v20_v2 }
   0xd   :  { %v38_v3 = vld [vmem:[#allocation1] sm:$0x3] }
   0xe   :  { %39 = vst [vmem:[#allocation0] sm:$0x3] %v38_v3 }
  0x15   :  { %v40_v4 = vld [vmem:[#allocation0] sm:$0xff] }
  0x16   :  { %41 = vperm.xlu0 %4, %v40_v4  }
  0x95   :  { %v42_v5 = vpop.permute.xlu0 %41 }
  0x96   :  { %43 = vst [vmem:[#allocation2] sm:$0xff] %v42_v5 }
  0x9d   :  { %v47_v6 = vld [vmem:[#allocation2] sm:$0x3] }
  0x9e   :  { %49 = vst [vmem:[#allocation3] sm:$0x3] %v47_v6 }
  0xa5   :  { %v65_v7 = vld [vmem:[#allocation3] sm:$0x3] }
  0xa6   :  { %66 = vst [vmem:[%s106_s1] sm:$0x3] %v65_v7 }

// kernel: custom-call.13
= control target key start
LH: loop header
LB: loop body
LE: loop exit
PB: predicated region body
PF: predicated region fallthrough
CT: control target
= control target key end

     0   :  { %s645_s9 = smov 0   ;;  %s647_s10 = smov 0   ;;  %s792_s0 = inlined_call_operand.vmem [shape: f32[2,8,8], index: 0, kind: input, shape index: {}]   ;;  %s793_s1 = inlined_call_operand.vmem [shape: f32[2,8,8], index: 1, kind: output, shape index: {0}]   ;;  %s794_s2 = inlined_call_operand.vmem [shape: f32[2,8], index: 2, kind: output, shape index: {1}]  }
   0x1   :  { %s649_s11 = smov 0   ;;  %s651_s12 = smov 0  }
   0x2   :  { %s653_s13 = smov 0  }
   0x3 LB: > { %s28_s14 = sadd.s32 1, %s618_s12  ;;  %s500_s15 = sadd.s32 4294967295, %s622_s13   ;;  %s622_s13 = sphi %s653_s13, %s9_s13   ;;  %s618_s12 = sphi %s651_s12, %s801_s12   ;;  %s614_s11 = sphi %s649_s11, %s800_s11   ;;  %s610_s10 = sphi %s647_s10, %s799_s10   ;;  %s606_s9 = sphi %s645_s9, %s798_s9  }
   0x4   : > { %p30_p0 = scmp.ge.s32.totalorder %s28_s14, 2  ;;  %s33_s16 = ssub.s32 0, %s618_s12 }
   0x5   : > { %s502_s17 = smin.u32 %s618_s12, %s33_s16  ;;  %p57_p1 = scmp.ne.s32.totalorder %s610_s10, %s606_s9 }
   0x6   : > { %s803_s14 = smov (%p30_p0, %s28_s14), 0  ;;  %s35_s18 = sshrl.u32 %s502_s17, 3 }
   0x7   : > { %s39_s19 = ssub.s32 0, %s803_s14  ;;  %p58_p2 = scmp.eq.s32.totalorder %s500_s15, 1 }
   0x8   : > { %s503_s20 = smin.u32 %s39_s19, %s803_s14  ;;  %s47_s24 = sadd.s32 1, %s610_s10 }
   0x9   : > { %s41_s21 = sshrl.u32 %s503_s20, 3  ;;  %p680_p3 = por %p58_p2, %p57_p1 }
   0xa   : > { %s44_s23 = ssub.s32 %s35_s18, %s41_s21  ;;  %p505_p5 = scmp.ge.s32.totalorder %s622_s13, 2 }
   0xb   : > { %p45_p4 = scmp.eq.s32.totalorder %s44_s23, 0  ;;  %s82_s26 = sand.u32 (!%p505_p5), 1, %s622_s13  }
   0xc   : > { %80 = sbr.rel (%p505_p5) target bundleno = 19 (0x13), region = 16  ;;  %s507_s27 = sshll.u32 (!%p505_p5), %s618_s12, 3 }
   0xd   : > { %s686_s25 = scalar_select %p45_p4, %s610_s10, %s47_s24  }
   0xe   : > { %s506_s28 = sshll.u32 (!%p505_p5), %s82_s26, 3  ;;  %s88_s3 = scalar_lea.vmem (!%p505_p5), %s792_s0, %s507_s27 }
   0xf   : > { %v116_v0 = vld [vmem:[%s88_s3] sm:$0xff] (!%p505_p5)  ;;  %s84_s4 = scalar_lea.vmem (!%p505_p5), [#allocation0], %s506_s28 }
  0x10   : > { %117 = vst [vmem:[%s84_s4] sm:$0xff] (!%p505_p5), %v116_v0 }
  0x13 PF: > { %p508_p6 = scmp.ge.s32.totalorder %s622_s13, 1  ;;  %p122_p7 = scmp.lt.s32.totalorder %s622_s13, 3 }
  0x15   : > { %p123_p8 = pnand %p508_p6, %p122_p7 }
  0x17   : > { %126 = sbr.rel (%p123_p8) target bundleno = 330 (0x14a), region = 54 }
  0x1e   : > { %s129_s5 = sand.u32 1, %s500_s15   ;;  %s143_s6 = sand.u32 1, %s606_s9   ;;  %v628_v2 = vmov 0.0  }
  0x1f   : > { %s509_s7 = sshll.u32 %s129_s5, 3  ;;  %s697_s8 = sshll.u32 %s143_s6, 1 }
  0x20   : > { %s152_s16 = sand.u32 7, %s614_s11   ;;  %s131_s17 = scalar_lea.vmem [#allocation0], %s509_s7 }
  0x21   : > { %v154_v1 = vld [vmem:[%s131_s17] sm:$0xff]  ;;  %s700_s18 = scalar_lea.vmem [#allocation1], %s509_s7  ;;  %s703_s19 = scalar_lea.vmem [#allocation2], %s152_s16 }
  0x22   : > { %155 = vst [vmem:[%s700_s18] sm:$0xff] %v154_v1  ;;  %156 = vst [vmem:[%s703_s19] sm:$0x1] %v628_v2  ;;  %s145_s15 = scalar_lea.vmem [#allocation3], %s697_s8  ;;  %s707_s20 = smov 0  }
  0x23 LB: >> { %v164_v3 = vlaneseq  ;;  %v716_v6 = vstv %s626_s20  ;;  %s191_s9 = scalar_lea.vmem %s700_s18, %s626_s20 [#allocation1]  ;;  %s249_s21 = scalar_lea.vmem [#allocation4], %s626_s20  ;;  %v629_v59 = vmov 1.0   ;;  %s626_s20 = sphi %s707_s20, %s162_s20  }
  0x24   : >> { %s266_s23 = smov [#allocation4] }
  0x25   : >> { %v713_v5 = vshrl.u32 %v164_v3, 7  ;;  %v243_v48 = vand.u32 127, %v164_v3 }
  0x27   : >> { %vm168_vm0 = vcmp.gt.s32.totalorder %v713_v5, %v716_v6  ;;  %v230_v5 = vmov %v713_v5  ;;  %vm731_vm10 = vcmp.eq.s32.totalorder %v243_v48, %v716_v6  ;;  %vm295_vm13 = vcmp.gt.s32.totalorder %v243_v48, %v716_v6 }
  0x28   : >> { %vm234_vm7 = vcmp.gt.s32.totalorder %v230_v5, %v716_v6  ;;  %vm235_vm8 = vcmp.lt.s32.totalorder %v230_v5, 8  ;;  %v269_v5 = vmov %v713_v5 }
  0x29   : >> { %v163_v4 = vld [vmem:[%s700_s18] sm:$0xff]  ;;  %v192_v15 = vld [vmem:[%s191_s9] ss:$0 sm:$0xff]  ;;  %s227_s18 = smov %s700_s18  ;;  %vm236_vm9 = vmand %vm234_vm7, %vm235_vm8  ;;  %vm274_vm11 = vcmp.lt.s32.totalorder %v269_v5, 8  ;;  %v286_v5 = vmov %v713_v5 }
  0x2a   : >> { %v171_v7 = vsel %vm168_vm0, %v163_v4, 0.0  ;;  %v193_v16 = vand.u32 2147483647, %v192_v15  ;;  %vm218_vm6 = vcmp.lt.f32.partialorder %v192_v15, 0.0  ;;  %v231_v45 = vld [vmem:[%s227_s18] sm:$0xff]  ;;  %s265_s18 = smov %s700_s18  ;;  %vm303_vm12 = vcmp.ge.s32.totalorder %v286_v5, %v716_v6 }
  0x2b   : >> { %v172_v8 = vmul.f32 %v171_v7, %v171_v7  ;;  %v237_v49 = vsel %vm236_vm9, %v231_v45, 0.0  ;;  %v262_v60 = vld [vmem:[%s703_s19] ss:$0 sm:$0xff]  ;;  %vm304_vm14 = vmand %vm731_vm10, %vm303_vm12 }
  0x2c   : >> { %v194_v21 = vmax.f32 %v193_v16, 0.0  ;;  %v272_v63 = vld [vmem:[%s265_s18] sm:$0xff]  ;;  %s282_s18 = smov %s265_s18 }
  0x2d   : >> { %v173_v9 = vrot.slane %v172_v8, 4  ;;  %s307_s24 = scalar_lea.vmem %s282_s18, %s626_s20  ;;  %s162_s20 = sadd.s32 1, %s626_s20  }
  0x2e   : >> { %p159_p9 = scmp.ge.s32.totalorder %s162_s20, 8  }
  0x2f   : >> { %v174_v10 = vadd.f32 %v173_v9, %v172_v8  ;;  %s515_s26 = sshll.u32 (%p159_p9), %s614_s11, 3 }
  0x30   : > { %s332_s29 = scalar_lea.vmem (%p159_p9), %s793_s1, %s515_s26 }
  0x31   : >> { %v175_v11 = vrot.slane %v174_v10, 2 }
  0x33   : >> { %v176_v12 = vadd.f32 %v175_v11, %v174_v10 }
  0x35   : >> { %v177_v13 = vrot.slane %v176_v12, 1 }
  0x37   : >> { %v178_v14 = vadd.f32 %v177_v13, %v176_v12  ;;  %v293_v13 = vld [vmem:[%s282_s18] sm:$0xff] }
  0x39   : >> { %570 = vrsqrt.f32 %v178_v14  ;;  %vm181_vm1 = vcmp.eq.f32.partialorder %v178_v14, inf  ;;  %v184_v18 = vand.u32 2147483648, %v178_v14  ;;  %vm183_vm2 = vcmp.eq.f32.partialorder %v178_v14, 0.0 }
  0x43   : >> { %v571_v17 = vpop.eup %570 }
  0x44   : >> { %v180_v19 = vmul.f32 %v571_v17, %v178_v14 }
  0x46   : >> { %v182_v20 = vsel %vm181_vm1, %v178_v14, %v180_v19 }
  0x47   : >> { %v185_v22 = vsel %vm183_vm2, %v184_v18, %v182_v20 }
  0x48   : >> { %v195_v23 = vand.u32 2147483647, %v185_v22 }
  0x4a   : >> { %v196_v24 = vmax.f32 %v194_v21, %v195_v23 }
  0x4c   : >> { %572 = vrcp.f32 %v196_v24  ;;  %vm208_vm5 = vcmp.eq.f32.partialorder %v196_v24, 0.0 }
  0x56   : >> { %v573_v25 = vpop.eup %572 }
  0x57   : >> { %v198_v26 = vmul.f32 %v573_v25, %v193_v16  ;;  %v201_v27 = vmul.f32 0.0, %v573_v25  ;;  %v205_v28 = vmul.f32 %v573_v25, %v195_v23 }
  0x59   : >> { %v199_v29 = vmul.f32 %v198_v26, %v198_v26  ;;  %v202_v30 = vmul.f32 %v201_v27, %v201_v27  ;;  %v206_v31 = vmul.f32 %v205_v28, %v205_v28 }
  0x5b   : >> { %v203_v32 = vadd.f32 %v202_v30, %v199_v29 }
  0x5d   : >> { %v207_v33 = vadd.f32 %v206_v31, %v203_v32 }
  0x5f   : >> { %574 = vrsqrt.f32 %v207_v33  ;;  %vm211_vm3 = vcmp.eq.f32.partialorder %v207_v33, inf  ;;  %v214_v35 = vand.u32 2147483648, %v207_v33  ;;  %vm213_vm4 = vcmp.eq.f32.partialorder %v207_v33, 0.0 }
  0x69   : >> { %v575_v34 = vpop.eup %574 }
  0x6a   : >> { %v210_v36 = vmul.f32 %v575_v34, %v207_v33 }
  0x6c   : >> { %v212_v37 = vsel %vm211_vm3, %v207_v33, %v210_v36 }
  0x6d   : >> { %v215_v38 = vsel %vm213_vm4, %v214_v35, %v212_v37 }
  0x6e   : >> { %v216_v39 = vmul.f32 %v215_v38, %v196_v24 }
  0x70   : >> { %v217_v40 = vsel %vm208_vm5, 0.0, %v216_v39 }
  0x71   : >> { %v219_v41 = vxor.u32 2147483648, %v217_v40 }
  0x73   : >> { %v220_v42 = vsel %vm218_vm6, %v217_v40, %v219_v41 }
  0x74   : >> { %v724_v43 = vsel %vm183_vm2, %v192_v15, %v220_v42  ;;  %576 = vrcp.f32 %v220_v42  ;;  %v221_v46 = vsub.f32 %v220_v42, %v192_v15 }
  0x75   : >> { %v226_v44 = vsub.f32 %v192_v15, %v724_v43 }
  0x77   : >> { %578 = vrcp.f32 %v226_v44 }
  0x7e   : >> { %v577_v47 = vpop.eup %576 }
  0x7f   : >> { %v223_v50 = vmul.f32 %v577_v47, %v221_v46 }
  0x81   : >> { %v579_v51 = vpop.eup %578  ;;  %v225_v55 = vsel %vm183_vm2, 0.0, %v223_v50 }
  0x82   : >> { %v239_v52 = vmul.f32 %v579_v51, %v237_v49  ;;  %v255_v57 = vsel %vm731_vm10, %v225_v55, 0.0 }
  0x84   : >> { %v240_v54 = vsel %vm183_vm2, 0.0, %v239_v52 }
  0x85   : >> { %v245_v56 = vsel %vm731_vm10, %v240_v54, 0.0 }
  0x86   : >> { %246 = vadd.xlane.f32.xlu0 %v245_v56 }
  0x8a   : >> { %256 = vadd.xlane.f32.xlu0 %v255_v57 }
 0x113   : >> { %v247_v58 = vpop.xlane.xlu0 %246 }
 0x114   : >> { %248 = vst [vmem:[#allocation4] sm:$0xff] %v247_v58 }
 0x115   : >> { %250 = vst [vmem:[%s249_s21] sm:$0x1] %v629_v59 }
 0x117   : >> { %v257_v61 = vpop.xlane.xlu0 %256 }
 0x118   : >> { %v263_v62 = vsel %vm731_vm10, %v257_v61, %v262_v60 }
 0x119   : >> { %264 = vst [vmem:[%s703_s19] sm:$0x1] %v263_v62 }
 0x11c   : >> { %v271_v0 = vld [vmem:[%s266_s23] sm:$0xff]  ;;  %s283_s23 = smov %s266_s23 }
 0x11d   : >> { %v273_v1 = vmul.f32 %v272_v63, %v271_v0  ;;  %v291_v12 = vld [vmem:[%s283_s23] sm:$0xff] }
 0x11f   : >> { %v275_v2 = vsel %vm274_vm11, %v273_v1, 0.0 }
 0x120   : >> { %v276_v3 = vrot.slane %v275_v2, 4  ;;  %v318_v5 = vld [vmem:[#allocation2] sm:$0x3] (%p159_p9) }
 0x121   : > { %320 = vst [vmem:[%s145_s15] sm:$0x3] (%p159_p9), %v318_v5 }
 0x122   : >> { %v277_v4 = vadd.f32 %v276_v3, %v275_v2 }
 0x124   : >> { %v278_v7 = vrot.slane %v277_v4, 2 }
 0x126   : >> { %v279_v8 = vadd.f32 %v278_v7, %v277_v4 }
 0x128   : >> { %v280_v9 = vrot.slane %v279_v8, 1 }
 0x12a   : >> { %v281_v10 = vadd.f32 %v280_v9, %v279_v8 }
 0x12c   : >> { %v287_v11 = vmul.f32 %v281_v10, %v257_v61 }
 0x12e   : >> { %v292_v14 = vmul.f32 %v291_v12, %v287_v11 }
 0x130   : >> { %v296_v15 = vsub.f32 %v293_v13, %v292_v14 }
 0x132   : >> { %v297_v16 = vsel %vm295_vm13, %v296_v15, %v293_v13 }
 0x133   : >> { %v305_v17 = vsel %vm304_vm14, %v291_v12, %v297_v16 }
 0x134   : >> { %306 = vst [vmem:[%s282_s18] sm:$0xff] %v305_v17 }
 0x137   : > { %161 = sbr.rel (!%p159_p9) target bundleno = 35 (0x23), region = 175 }
 0x13b   : >> { %v308_v18 = vld [vmem:[%s307_s24] ss:$0 sm:$0xff] }
 0x13c   : >> { %v313_v19 = vsel %vm731_vm10, %v724_v43, %v308_v18 }
 0x13d   : >> { %314 = vst [vmem:[%s307_s24] sm:$0x1] %v313_v19 }
 0x13e   : > { %p368_p10 = scmp.lt.s32.totalorder (%p680_p3), %s614_s11, 0  ;;  %s369_s30 = ssub.s32 (%p680_p3), 0, %s614_s11  ;;  %v391_v20 = vld [vmem:[%s145_s15] sm:$0x3] (%p680_p3) }
 0x13f   : > { %367 = sbr.rel (!%p680_p3) target bundleno = 330 (0x14a), region = 99  ;;  %s516_s3 = smin.u32 (%p680_p3), %s614_s11, %s369_s30 }
 0x140   : > { %s371_s4 = sshrl.u32 (%p680_p3), %s516_s3, 3 }
 0x141   : > { %s372_s5 = ssub.s32 (%p680_p3), 0, %s371_s4 }
 0x144   : > { %v360_v6 = vld [vmem:[%s700_s18] sm:$0xff] }
 0x145   : > { %361 = vst [vmem:[%s332_s29] sm:$0xff] %v360_v6 }
 0x146   : > { %s805_s5 = smov (!%p368_p10, %s372_s5), %s371_s4 }
 0x147   : > { %s517_s6 = sshll.u32 %s805_s5, 1 }
 0x148   : > { %s375_s17 = scalar_lea.vmem %s794_s2, %s517_s6 }
 0x149   : > { %392 = vst [vmem:[%s375_s17] sm:$0x3] %v391_v20 }
 0x14a PF: > { %s9_s13 = sadd.s32 1, %s622_s13   ;;  %s798_s9 = smov %s610_s10 }
 0x14b   : > { %p6_p11 = scmp.ge.s32.totalorder %s9_s13, 4   ;;  %s799_s10 = smov %s686_s25 }
 0x14c   : > { %s800_s11 = smov %s618_s12  ;;  %s801_s12 = smov %s803_s14 }
 0x14d   :  { %8 = sbr.rel (!%p6_p11) target bundleno = 3 (0x3), region = 186 }

// kernel: model_forward.3
= control target key start
LH: loop header
LB: loop body
LE: loop exit
PB: predicated region body
PF: predicated region fallthrough
CT: control target
= control target key end

     0   :  { %s2914_s17 = smov 16   ;;  %v2915_v2 = vmov 0   ;;  %v2916_v4 = vmov 0.0|0.0   ;;  %s3217_s0 = inlined_call_operand.vmem [shape: f32[2,16,16], index: 0, kind: input, shape index: {}]   ;;  %s3218_s1 = inlined_call_operand.vmem [shape: f32[1,16], index: 1, kind: input, shape index: {}]   ;;  %s3219_s2 = inlined_call_operand.vmem [shape: f32[2,8,8], index: 2, kind: input, shape index: {}]   ;;  %s3220_s3 = inlined_call_operand.vmem [shape: f32[8,16], index: 3, kind: input, shape index: {}]   ;;  %s3221_s4 = inlined_call_operand.vmem [shape: f32[8,16], index: 4, kind: input, shape index: {}]   ;;  %s3222_s5 = inlined_call_operand.vmem [shape: f32[8,1], index: 5, kind: input, shape index: {}]   ;;  %s3223_s6 = inlined_call_operand.vmem [shape: f32[32,48], index: 6, kind: input, shape index: {}]   ;;  %s3224_s7 = inlined_call_operand.vmem [shape: f32[1,16], index: 7, kind: input, shape index: {}]   ;;  %s3225_s8 = inlined_call_operand.vmem [shape: f32[8,8], index: 8, kind: input, shape index: {}]   ;;  %s3226_s9 = inlined_call_operand.vmem [shape: f32[8,1], index: 9, kind: input, shape index: {}]   ;;  %s3227_s10 = inlined_call_operand.hbm [shape: f32[2,8,8], index: 10, kind: output, shape index: {}]  }
   0x1   :  { %v2485_v0 = vld [vmem:[%s3217_s0 + $0x10] sm:$0xff]  ;;  %v62_v1 = vld [vmem:[%s3222_s5] sm:$0xff]  ;;  %2880 = vset.pattern.permute.xlu1 %v2915_v2  ;;  %v2486_v3 = vld [vmem:[%s3217_s0 + $0x18] sm:$0xff]  ;;  %2772 = vmatprep.subr.bf16.mxu0 %v2916_v4 }
   0x2   :  { %43 = vrot.lane.b32.xlu0 %v2485_v0, %s2914_s17  ;;  %65 = vperm.xlu1 %2880, %v62_v1  }
   0x3   :  { %15 = vsyncpa [#allocation3], 0  ;;  %vm2917_vm0 = vmmov 0   ;;  %v2918_v5 = vmov 0.0   ;;  %v2487_v6 = vld [vmem:[%s3219_s2 + $0x8] sm:$0xff]  ;;  %2881 = vset.pattern.permute.xlu0 %v2915_v2  ;;  %2790 = vmatprep.subr.bf16.mxu1 %v2916_v4  ;;  %s2919_s21 = smov 8  }
   0x4   :  { %2578 = vmatprep.mubr.msk.f32.mxu0 %vm2917_vm0, %v2918_v5  ;;  %2624 = vmatprep.mubr.msk.f32.mxu1 %vm2917_vm0, %v2918_v5  ;;  %v1054_v7 = vld [vmem:[%s3226_s9] sm:$0xff]  ;;  %vm49_vm1 = vcmask 130048   ;;  %v37_v17 = vld [vmem:[%s3217_s0 + $0x8] sm:$0xff]  ;;  %vm59_vm2 = vcmask 64512   ;;  %v532_v58 = vld [vmem:[%s3223_s6 + $0x10] sm:$0xff]  ;;  %vm534_vm3 = vcmask 261120  }
   0x5   :  { %v61_v8 = vld [vmem:[%s3221_s4] sm:$0xff]  ;;  %v531_v52 = vld [vmem:[%s3223_s6 + $0x8] sm:$0xff]  ;;  %v533_v59 = vld [vmem:[%s3223_s6 + $0x18] sm:$0xff]  ;;  %v545_v60 = vand.u32 4294901760, %v532_v58  ;;  %s2922_s18 = smov 112  }
   0x6   :  { %45 = vrot.lane.b32.xlu0 %v2486_v3, %s2914_s17  ;;  %56 = vrot.lane.b32.xlu1 %v2487_v6, %s2919_s21  ;;  %v69_v9 = vsel %vm49_vm1, %v61_v8, 0  ;;  %v36_v12 = vld [vmem:[%s3217_s0] sm:$0xff]  ;;  %v542_v54 = vand.u32 4294901760, %v531_v52  ;;  %v548_v61 = vand.u32 4294901760, %v533_v59  ;;  %s2921_s17 = smov 96  }
   0x7   :  { %v138_v10 = vand.u32 4294901760, %v69_v9  ;;  %v1053_v35 = vld [vmem:[%s3225_s8] sm:$0xff]  ;;  %v633_v1 = vsub.f32 %v532_v58, %v545_v60 }
   0x8   :  { %v52_v37 = vld [vmem:[%s3219_s2] sm:$0xff]  ;;  %v1061_v38 = vsel %vm59_vm2, %v1053_v35, 0  ;;  %v3074_v57 = vsub.f32 %v531_v52, %v542_v54  ;;  %v3086_v0 = vpack.c.bf16 %v548_v61, %v545_v60  ;;  %v640_v2 = vsub.f32 %v533_v59, %v548_v61 }
   0x9   :  { %v139_v11 = vsub.f32 %v69_v9, %v138_v10  ;;  %v1129_v41 = vand.u32 4294901760, %v1061_v38  ;;  %v530_v51 = vld [vmem:[%s3223_s6] sm:$0xff]  ;;  %v634_v9 = vand.u32 4294901760, %v633_v1  ;;  %s2920_s6 = smov 120  }
   0xa   :  { %1057 = vperm.xlu0 %2881, %v1054_v7   ;;  %v539_v53 = vand.u32 4294901760, %v530_v51  ;;  %v627_v63 = vand.u32 4294901760, %v3074_v57 }
   0xb   :  { %v140_v15 = vand.u32 4294901760, %v139_v11  ;;  %v1130_v43 = vsub.f32 %v1061_v38, %v1129_v41 }
   0xc   :  { %v3070_v55 = vpack.c.bf16 %v542_v54, %v539_v53  ;;  %v3072_v56 = vsub.f32 %v530_v51, %v539_v53  ;;  %v628_v6 = vsub.f32 %v3074_v57, %v627_v63 }
   0xd   :  { %v141_v21 = vsub.f32 %v139_v11, %v140_v15  ;;  %v1131_v45 = vand.u32 4294901760, %v1130_v43 }
   0xe   :  { %2792 = vmatpush3.bf16.msra.mxu1 %v3070_v55  ;;  %v620_v62 = vand.u32 4294901760, %v3072_v56  ;;  %v629_v8 = vand.u32 4294901760, %v628_v6 }
   0xf   :  { %v142_v26 = vand.u32 4294901760, %v141_v21  ;;  %v1132_v47 = vsub.f32 %v1130_v43, %v1131_v45  ;;  %2793 = vmatprep.subr.bf16.mxu1 %v2916_v4 }
  0x10   :  { %v621_v3 = vsub.f32 %v3072_v56, %v620_v62 }
  0x11   :  { %v1133_v49 = vand.u32 4294901760, %v1132_v47 }
  0x12   :  { %2795 = vmatpush3.bf16.msra.mxu1 %v3086_v0  ;;  %v622_v7 = vand.u32 4294901760, %v621_v3 }
  0x13   :  { %2796 = vmatprep.subr.bf16.mxu1 %v2916_v4 }
  0x74   :  { %v44_v13 = vpop.permute.xlu0 %43 }
  0x75   :  { %v50_v14 = vsel %vm49_vm1, %v36_v12, %v44_v13  ;;  %v635_v12 = vsub.f32 %v633_v1, %v634_v9 }
  0x76   :  { %v72_v16 = vand.u32 4294901760, %v50_v14 }
  0x78   :  { %v150_v18 = vsub.f32 %v50_v14, %v72_v16  ;;  %v46_v19 = vpop.permute.xlu0 %45  ;;  %v636_v14 = vand.u32 4294901760, %v635_v12 }
  0x79   :  { %v51_v20 = vsel %vm49_vm1, %v37_v17, %v46_v19  ;;  %v2803_v17 = vpack.c.bf16 %v3074_v57, %v3072_v56  ;;  %v2815_v19 = vpack.c.bf16 %v627_v63, %v620_v62 }
  0x7a   :  { %v151_v22 = vand.u32 4294901760, %v150_v18  ;;  %v75_v23 = vand.u32 4294901760, %v51_v20 }
  0x7c   :  { %v157_v24 = vsub.f32 %v51_v20, %v75_v23  ;;  %v2773_v25 = vpack.c.bf16 %v75_v23, %v72_v16  ;;  %v152_v27 = vsub.f32 %v150_v18, %v151_v22 }
  0x7e   :  { %v158_v28 = vand.u32 4294901760, %v157_v24  ;;  %2774 = vmatpush3.bf16.msra.mxu0 %v2773_v25  ;;  %v153_v30 = vand.u32 4294901760, %v152_v27  ;;  %v2779_v33 = vpack.c.bf16 %v157_v24, %v150_v18  ;;  %v2806_v18 = vpack.c.bf16 %v640_v2, %v633_v1 }
  0x7f   :  { %2775 = vmatprep.subr.bf16.mxu0 %v2916_v4 }
  0x80   :  { %v159_v29 = vsub.f32 %v157_v24, %v158_v28  ;;  %v2785_v40 = vpack.c.bf16 %v158_v28, %v151_v22 }
  0x81   :  { %2579 = vmatmul.mubr.f32.vlgmr.msra.gmra.mrb[0].mxu0 %v142_v26  ;;  %v3021_v34 = vpop.permute.xlu1 %65 }
  0x82   :  { %v160_v31 = vand.u32 4294901760, %v159_v29  ;;  %2585 = vmatprep.mubr.msk.f32.mxu0 %vm2917_vm0, %v2918_v5 }
  0x84   :  { %v2776_v32 = vpack.c.bf16 %v160_v31, %v153_v30 }
  0x85   :  { %v57_v36 = vpop.permute.xlu1 %56 }
  0x86   :  { %2777 = vmatpush3.bf16.msra.mxu0 %v2776_v32  ;;  %v3034_v39 = vsel %vm59_vm2, %v52_v37, %v57_v36 }
  0x87   :  { %2778 = vmatprep.subr.bf16.mxu0 %v2916_v4  ;;  %v1064_v42 = vand.u32 4294901760, %v3034_v39 }
  0x89   :  { %2586 = vmatmul.mubr.f32.vlgmr.msra.gmra.mrb[0].mxu0 %v138_v10  ;;  %v1141_v44 = vsub.f32 %v3034_v39, %v1064_v42  ;;  %v1058_v24 = vpop.permute.xlu0 %1057 }
  0x8a   :  { %2780 = vmatpush3.bf16.msra.mxu0 %v2779_v33  ;;  %2592 = vmatprep.mubr.msk.f32.mxu0 %vm2917_vm0, %v2918_v5 }
  0x8b   :  { %2781 = vmatprep.subr.bf16.mxu0 %v2916_v4  ;;  %v1142_v46 = vand.u32 4294901760, %v1141_v44 }
  0x8d   :  { %v1143_v48 = vsub.f32 %v1141_v44, %v1142_v46 }
  0x8f   :  { %v1144_v50 = vand.u32 4294901760, %v1143_v48 }
  0x91   :  { %2593 = vmatmul.mubr.f32.vlgmr.msra.gmra.mrb[0].mxu0 %v139_v11  ;;  %v2797_v11 = vpack.c.bf16 %v629_v8, %v622_v7 }
  0x92   :  { %2783 = vmatpush3.bf16.msra.mxu0 %v2773_v25  ;;  %2599 = vmatprep.mubr.msk.f32.mxu0 %vm2917_vm0, %v2918_v5 }
  0x93   :  { %2784 = vmatprep.subr.bf16.mxu0 %v2916_v4 }
  0x99   :  { %2600 = vmatmul.mubr.f32.vlgmr.msra.gmra.mrb[0].mxu0 %v140_v15 }
  0x9a   :  { %2786 = vmatpush3.bf16.msra.mxu0 %v2785_v40  ;;  %2606 = vmatprep.mubr.msk.f32.mxu0 %vm2917_vm0, %v2918_v5 }
  0x9b   :  { %2787 = vmatprep.subr.bf16.mxu0 %v2916_v4 }
  0xa1   :  { %2607 = vmatmul.mubr.f32.vlgmr.msra.gmra.mrb[0].mxu0 %v138_v10 }
  0xa2   :  { %2789 = vmatpush3.bf16.msra.mxu0 %v2773_v25  ;;  %2613 = vmatprep.mubr.msk.f32.mxu0 %vm2917_vm0, %v2918_v5 }
  0xa3   :  { %2682 = vmatprep.subr.mxu0 %v2918_v5 }
  0xa9   :  { %2614 = vmatmul.mubr.f32.vlgmr.msra.gmra.mrb[0].mxu0 %v138_v10  ;;  %v641_v10 = vand.u32 4294901760, %v640_v2 }
  0xaa   :  { %2683 = vmatpush3.msra.mxu0 %v1064_v42  ;;  %2684 = vmatprep.mubr.msk.f32.mxu0 %vm2917_vm0, %v2918_v5 }
  0xab   :  { %2687 = vmatprep.subr.mxu0 %v2918_v5  ;;  %v642_v13 = vsub.f32 %v640_v2, %v641_v10  ;;  %v3094_v20 = vpack.c.bf16 %v641_v10, %v634_v9 }
  0xad   :  { %2685 = vmatmul.mubr.f32.vlgmr.msra.gmra.mrb[2].mxu0 %v1133_v49  ;;  %v643_v15 = vand.u32 4294901760, %v642_v13 }
  0xae   :  { %2688 = vmatpush3.msra.mxu0 %v1144_v50  ;;  %2689 = vmatprep.mubr.msk.f32.mxu0 %vm2917_vm0, %v2918_v5 }
  0xaf   :  { %2692 = vmatprep.subr.mxu0 %v2918_v5  ;;  %v2800_v16 = vpack.c.bf16 %v643_v15, %v636_v14 }
  0xb1   :  { %2690 = vmatmul.mubr.f32.vlgmr.msra.gmra.mrb[4].mxu0 %v1129_v41 }
  0xb2   :  { %2693 = vmatpush3.msra.mxu0 %v1141_v44  ;;  %2694 = vmatprep.mubr.msk.f32.mxu0 %vm2917_vm0, %v2918_v5 }
  0xb3   :  { %2697 = vmatprep.subr.mxu0 %v2918_v5 }
  0xb5   :  { %2695 = vmatmul.mubr.f32.vlgmr.msra.gmra.mrb[6].mxu0 %v1130_v43 }
  0xb6   :  { %2698 = vmatpush3.msra.mxu0 %v1064_v42  ;;  %2699 = vmatprep.mubr.msk.f32.mxu0 %vm2917_vm0, %v2918_v5 }
  0xb7   :  { %2702 = vmatprep.subr.mxu0 %v2918_v5 }
  0xb9   :  { %2700 = vmatmul.mubr.f32.vlgmr.msra.gmra.mrb[8].mxu0 %v1131_v45 }
  0xba   :  { %2703 = vmatpush3.msra.mxu0 %v1142_v46  ;;  %2704 = vmatprep.mubr.msk.f32.mxu0 %vm2917_vm0, %v2918_v5 }
  0xbb   :  { %2707 = vmatprep.subr.mxu0 %v2918_v5 }
  0xbd   :  { %2705 = vmatmul.mubr.f32.vlgmr.msra.gmra.mrb[10].mxu0 %v1129_v41 }
  0xbe   :  { %2708 = vmatpush3.msra.mxu0 %v1064_v42  ;;  %2709 = vmatprep.mubr.msk.f32.mxu0 %vm2917_vm0, %v2918_v5 }
  0xbf   :  { %2712 = vmatprep.subr.mxu0 %v2918_v5 }
  0xc1   :  { %2710 = vmatmul.mubr.f32.vlgmr.msra.gmra.mrb[12].mxu0 %v1129_v41 }
  0xc2   :  { %2714 = vmatprep.mubr.msk.f32.mxu0 %vm2917_vm0, %v2918_v5 }
 0x17c   :  { %v526_v21 = vpop.f32.mrb[0].mxu0 }
 0x17d   :  { %v3097_v22 = vadd.f32 %v526_v21, %v3021_v34  ;;  %v2615_v23 = vpop.f32.mrb[1].mxu0 }
 0x17f   :  { %v536_v25 = vsel %vm534_vm3, %v3097_v22, 0  ;;  %1048 = vrot.lane.b32.xlu0 %v3097_v22, %s2920_s6 }
 0x180   :  { %v3102_v26 = vand.u32 4294901760, %v536_v25  ;;  %v1135_v27 = vpop.f32.mrb[2].mxu0 }
 0x181   :  { %v1136_v28 = vadd.f32 %v1135_v27, %v1058_v24  ;;  %v2686_v29 = vpop.f32.mrb[3].mxu0 }
 0x182   :  { %v608_v30 = vsub.f32 %v536_v25, %v3102_v26 }
 0x184   :  { %v609_v31 = vand.u32 4294901760, %v608_v30  ;;  %v1211_v32 = vpop.f32.mrb[4].mxu0 }
 0x185   :  { %v1212_v33 = vadd.f32 %v1211_v32, %v1136_v28  ;;  %v2691_v34 = vpop.f32.mrb[5].mxu0 }
 0x186   :  { %v610_v35 = vsub.f32 %v608_v30, %v609_v31 }
 0x188   :  { %v611_v36 = vand.u32 4294901760, %v610_v35  ;;  %v1285_v37 = vpop.f32.mrb[6].mxu0 }
 0x189   :  { %v1286_v38 = vadd.f32 %v1285_v37, %v1212_v33  ;;  %v2696_v40 = vpop.f32.mrb[7].mxu0 }
 0x18a   :  { %2625 = vmatmul.mubr.f32.vlgmr.msra.gmra.mrb[0].mxu1 %v611_v36 }
 0x18b   :  { %2798 = vmatpush3.bf16.msra.mxu1 %v2797_v11  ;;  %2635 = vmatprep.mubr.msk.f32.mxu1 %vm2917_vm0, %v2918_v5  ;;  %v1023_v11 = vlaneseq }
 0x18c   :  { %2799 = vmatprep.subr.bf16.mxu1 %v2916_v4  ;;  %v1359_v41 = vpop.f32.mrb[8].mxu0 }
 0x18d   :  { %v1360_v42 = vadd.f32 %v1359_v41, %v1286_v38  ;;  %v2701_v43 = vpop.f32.mrb[9].mxu0  ;;  %v1024_v12 = vshrl.u32 %v1023_v11, 7  ;;  %v2489_v41 = vld [vmem:[%s3218_s1] ss:$0 sm:$0xff] }
 0x18f   :  { %2801 = vmatpush3.bf16.msra.mxu1 %v2800_v16  ;;  %vm1025_vm6 = vcmp.eq.s32.totalorder %v1024_v12, 0  ;;  %vm1028_vm7 = vcmp.eq.s32.totalorder %v1024_v12, 7 }
 0x190   :  { %2802 = vmatprep.subr.bf16.mxu1 %v2916_v4  ;;  %v1433_v44 = vpop.f32.mrb[10].mxu0 }
 0x191   :  { %v1434_v45 = vadd.f32 %v1433_v44, %v1360_v42  ;;  %v2706_v46 = vpop.f32.mrb[11].mxu0 }
 0x192   :  { %2636 = vmatmul.mubr.f32.vlgmr.msra.gmra.mrb[0].mxu1 %v3102_v26 }
 0x193   :  { %2804 = vmatpush3.bf16.msra.mxu1 %v2803_v17  ;;  %2646 = vmatprep.mubr.msk.f32.mxu1 %vm2917_vm0, %v2918_v5 }
 0x194   :  { %2805 = vmatprep.subr.bf16.mxu1 %v2916_v4  ;;  %v1505_v47 = vpop.f32.mrb[12].mxu0 }
 0x195   :  { %v1506_v48 = vadd.f32 %v1505_v47, %v1434_v45  ;;  %v2711_v49 = vpop.f32.mrb[13].mxu0 }
 0x197   :  { %2807 = vmatpush3.bf16.msra.mxu1 %v2806_v18  ;;  %v1509_v50 = vadd.f32 %v1506_v48, %v3034_v39 }
 0x198   :  { %2808 = vmatprep.subr.bf16.mxu1 %v2916_v4 }
 0x199   :  { %v1528_v51 = vmul.f32 %v1509_v50, %v1509_v50 }
 0x19a   :  { %2647 = vmatmul.mubr.f32.vlgmr.msra.gmra.mrb[0].mxu1 %v608_v30 }
 0x19b   :  { %2810 = vmatpush3.bf16.msra.mxu1 %v3070_v55  ;;  %2657 = vmatprep.mubr.msk.f32.mxu1 %vm2917_vm0, %v2918_v5  ;;  %v1529_v52 = vsel %vm49_vm1, %v1528_v51, 0.0 }
 0x19c   :  { %2811 = vmatprep.subr.bf16.mxu1 %v2916_v4  ;;  %v1530_v53 = vrot.slane %v1529_v52, 4 }
 0x19e   :  { %v1531_v54 = vadd.f32 %v1530_v53, %v1529_v52 }
 0x19f   :  { %2813 = vmatpush3.bf16.msra.mxu1 %v3086_v0 }
 0x1a0   :  { %2814 = vmatprep.subr.bf16.mxu1 %v2916_v4  ;;  %v1532_v39 = vrot.slane %v1531_v54, 2 }
 0x1a2   :  { %2658 = vmatmul.mubr.f32.vlgmr.msra.gmra.mrb[0].mxu1 %v609_v31  ;;  %v1533_v56 = vadd.f32 %v1532_v39, %v1531_v54  ;;  %v1554_v54 = vld [vmem:[%s3220_s3] sm:$0xff]  ;;  %s2923_s3 = smov [#allocation2]  }
 0x1a3   :  { %2816 = vmatpush3.bf16.msra.mxu1 %v2815_v19  ;;  %2668 = vmatprep.mubr.msk.f32.mxu1 %vm2917_vm0, %v2918_v5  ;;  %s2474_s23 = sshll.u32 %s2923_s3, 4  ;;  %s2475_s23 = int_to_ptr.vmem [resolvable:$true] %s2474_s23 }
 0x1a4   :  { %2817 = vmatprep.subr.bf16.mxu1 %v2916_v4  ;;  %v1534_v57 = vrot.slane %v1533_v56, 1  ;;  %s2890_s24 = scalar_lea.vmem %s2475_s23, 256  ;;  %p2895_p1 = scmp.lt.s32.totalorder %s2475_s23, %s2475_s23 }
 0x1a5   :  { %p2891_p0 = scmp.ne.s32.totalorder %s2475_s23, %s2890_s24  ;;  %p2896_p2 = scmp.lt.s32.totalorder %s2890_s24, %s2890_s24 }
 0x1a6   :  { %v1535_v58 = vadd.f32 %v1534_v57, %v1533_v56 }
 0x1a7   :  { %2819 = vmatpush3.bf16.msra.mxu1 %v3094_v20  ;;  %v2488_v20 = vld [vmem:[%s3224_s7] ss:$0 sm:$0xff]  ;;  %p2897_p3 = por %p2896_p2, %p2895_p1 }
 0x1a8   :  { %2820 = vmatprep.subr.bf16.mxu1 %v2916_v4  ;;  %2882 = vrsqrt.f32 %v1535_v58  ;;  %vm1538_vm4 = vcmp.eq.f32.partialorder %v1535_v58, inf  ;;  %v1541_v60 = vand.u32 2147483648, %v1535_v58  ;;  %vm1540_vm5 = vcmp.eq.f32.partialorder %v1535_v58, 0.0 }
 0x1a9   :  { %p2898_p4 = pnand %p2897_p3, %p2891_p0 }
 0x1aa   :  { %2669 = vmatmul.mubr.f32.vlgmr.msra.gmra.mrb[0].mxu1 %v3102_v26 }
 0x1ab   :  { %2822 = vmatpush3.bf16.msra.mxu1 %v3070_v55  ;;  %2679 = vmatprep.mubr.msk.f32.mxu1 %vm2917_vm0, %v2918_v5 }
 0x1ac   :  { %2823 = vmatprep.subr.bf16.mxu1 %v2916_v4 }
 0x1af   :  { %2825 = vmatpush3.bf16.msra.mxu1 %v3086_v0 }
 0x1b0   :  { %2742 = vmatprep.subr.mxu1 %v2918_v5 }
 0x1b2   :  { %v2883_v59 = vpop.eup %2882  ;;  %2680 = vmatmul.mubr.f32.vlgmr.msra.gmra.mrb[0].mxu1 %v3102_v26 }
 0x1b3   :  { %v1537_v61 = vmul.f32 %v2883_v59, %v1535_v58  ;;  %2744 = vmatprep.mubr.msk.f32.mxu1 %vm2917_vm0, %v2918_v5 }
 0x1b5   :  { %v1539_v55 = vsel %vm1538_vm4, %v1535_v58, %v1537_v61 }
 0x1b6   :  { %v1542_v62 = vsel %vm1540_vm5, %v1541_v60, %v1539_v55 }
 0x1b7   :  { %v1543_v63 = vmax.f32 %v1542_v62, 1e-12 }
 0x1b9   :  { %2884 = vrcp.f32 %v1543_v63 }
 0x1c3   :  { %v2885_v1 = vpop.eup %2884 }
 0x1c4   :  { %v1545_v4 = vmul.f32 %v2885_v1, %v1509_v50 }
 0x1c6   :  { %2011 = vrot.lane.b32.xlu0 %v1545_v4, %s2920_s6  ;;  %v1559_v0 = vsel %vm59_vm2, %v1545_v4, 0 }
 0x1c7   :  { %v3139_v2 = vand.u32 4294901760, %v1559_v0 }
 0x1c9   :  { %2713 = vmatpush3.xpose.msra.mxu0 %v3139_v2  ;;  %v1639_v43 = vsub.f32 %v1559_v0, %v3139_v2 }
 0x1ca   :  { %2717 = vmatprep.subr.mxu0 %v2918_v5 }
 0x1cb   :  { %v1640_v47 = vand.u32 4294901760, %v1639_v43 }
 0x1cd   :  { %v1641_v50 = vsub.f32 %v1639_v43, %v1640_v47 }
 0x1cf   :  { %v1642_v53 = vand.u32 4294901760, %v1641_v50 }
 0x1f1   :  { %v1049_v3 = vpop.permute.xlu0 %1048 }
 0x1f2   :  { %v1051_v24 = vsel %vm59_vm2, %v3097_v22, %v1049_v3 }
 0x238   :  { %v2012_v6 = vpop.permute.xlu0 %2011 }
 0x239   :  { %v3144_v7 = vsel %vm59_vm2, %v2012_v6, 0 }
 0x23a   :  { %v3147_v8 = vand.u32 4294901760, %v3144_v7 }
 0x23c   :  { %2743 = vmatpush3.xpose.msra.mxu1 %v3147_v8  ;;  %v2099_v39 = vsub.f32 %v3144_v7, %v3147_v8 }
 0x23d   :  { %2747 = vmatprep.subr.mxu1 %v2918_v5 }
 0x23e   :  { %v2100_v59 = vand.u32 4294901760, %v2099_v39 }
 0x240   :  { %v2101_v55 = vsub.f32 %v2099_v39, %v2100_v59 }
 0x242   :  { %v2102_v1 = vand.u32 4294901760, %v2101_v55 }
 0x285   :  { %v1019_v9 = vpop.f32.mrb[0].mxu1 }
 0x286   :  { %1030 = vrot.lane.b32.xlu1 %v1019_v9, %s2921_s17  ;;  %v2681_v10 = vpop.f32.mrb[1].mxu1  ;;  %v1026_v14 = vrot.slane %v1019_v9, 7 }
 0x288   :  { %v1027_v17 = vsel %vm1025_vm6, 0.0, %v1026_v14 }
 0x28a   :  { %1035 = vrot.lane.b32.xlu1 %v1019_v9, %s2922_s18 }
 0x2f8   :  { %v1031_v13 = vpop.permute.xlu1 %1030 }
 0x2f9   :  { %v1033_v15 = vrot.slane %v1031_v13, 1 }
 0x2fb   :  { %v1034_v19 = vsel %vm1028_vm7, 0.0, %v1033_v15 }
 0x2fc   :  { %v1036_v16 = vpop.permute.xlu1 %1035 }
 0x2fd   :  { %v1038_v18 = vadd.f32 %v1036_v16, %v1027_v17 }
 0x2ff   :  { %v1039_v21 = vadd.f32 %v1038_v18, %v1034_v19 }
 0x301   :  { %v1047_v23 = vadd.f32 %v2488_v20, %v1039_v21 }
 0x303   :  { %v1052_v25 = vadd.f32 %v1051_v24, %v1047_v23 }
 0x305   :  { %v1510_v26 = vmul.f32 %v1052_v25, %v1052_v25 }
 0x307   :  { %v1511_v27 = vsel %vm49_vm1, %v1510_v26, 0.0 }
 0x308   :  { %v1512_v28 = vrot.slane %v1511_v27, 4 }
 0x30a   :  { %v1513_v29 = vadd.f32 %v1512_v28, %v1511_v27 }
 0x30c   :  { %v1514_v30 = vrot.slane %v1513_v29, 2 }
 0x30e   :  { %v1515_v31 = vadd.f32 %v1514_v30, %v1513_v29 }
 0x310   :  { %v1516_v32 = vrot.slane %v1515_v31, 1 }
 0x312   :  { %v1517_v33 = vadd.f32 %v1516_v32, %v1515_v31 }
 0x314   :  { %2886 = vrsqrt.f32 %v1517_v33  ;;  %vm1520_vm8 = vcmp.eq.f32.partialorder %v1517_v33, inf  ;;  %v1523_v36 = vand.u32 2147483648, %v1517_v33  ;;  %vm1522_vm9 = vcmp.eq.f32.partialorder %v1517_v33, 0.0 }
 0x31e   :  { %v2887_v34 = vpop.eup %2886 }
 0x31f   :  { %v1519_v35 = vmul.f32 %v2887_v34, %v1517_v33 }
 0x321   :  { %v1521_v37 = vsel %vm1520_vm8, %v1517_v33, %v1519_v35 }
 0x322   :  { %v1524_v38 = vsel %vm1522_vm9, %v1523_v36, %v1521_v37 }
 0x323   :  { %v1525_v40 = vmax.f32 %v1524_v38, 1e-12 }
 0x325   :  { %2888 = vrcp.f32 %v1525_v40 }
 0x32f   :  { %v2889_v22 = vpop.eup %2888 }
 0x330   :  { %v1527_v42 = vmul.f32 %v2889_v22, %v1052_v25 }
 0x332   :  { %v1553_v44 = vmul.f32 %v2489_v41, %v1527_v42 }
 0x334   :  { %2009 = vrot.lane.b32.xlu1 %v1553_v44, %s2920_s6  ;;  %v1556_v45 = vsel %vm59_vm2, %v1553_v44, 0 }
 0x335   :  { %v1627_v46 = vand.u32 4294901760, %v1556_v45 }
 0x337   :  { %v1628_v48 = vsub.f32 %v1556_v45, %v1627_v46 }
 0x338   :  { %2014 = vrot.lane.b32.xlu1 %v1554_v54, %s2920_s6 }
 0x339   :  { %v1629_v49 = vand.u32 4294901760, %v1628_v48 }
 0x33b   :  { %v1630_v51 = vsub.f32 %v1628_v48, %v1629_v49 }
 0x33d   :  { %v1631_v52 = vand.u32 4294901760, %v1630_v51 }
 0x33f   :  { %2715 = vmatmul.mubr.f32.vlgmr.msra.gmra.mrb[14].mxu0 %v1631_v52 }
 0x340   :  { %2718 = vmatpush3.xpose.msra.mxu0 %v1642_v53  ;;  %2719 = vmatprep.mubr.msk.f32.mxu0 %vm2917_vm0, %v2918_v5 }
 0x341   :  { %2722 = vmatprep.subr.mxu0 %v2918_v5 }
 0x347   :  { %2720 = vmatmul.mubr.f32.vlgmr.msra.gmra.mrb[14].mxu0 %v1627_v46 }
 0x348   :  { %2723 = vmatpush3.xpose.msra.mxu0 %v1639_v43  ;;  %2724 = vmatprep.mubr.msk.f32.mxu0 %vm2917_vm0, %v2918_v5 }
 0x349   :  { %2727 = vmatprep.subr.mxu0 %v2918_v5 }
 0x34f   :  { %2725 = vmatmul.mubr.f32.vlgmr.msra.gmra.mrb[14].mxu0 %v1628_v48 }
 0x350   :  { %2728 = vmatpush3.xpose.msra.mxu0 %v3139_v2  ;;  %2729 = vmatprep.mubr.msk.f32.mxu0 %vm2917_vm0, %v2918_v5 }
 0x351   :  { %2732 = vmatprep.subr.mxu0 %v2918_v5 }
 0x357   :  { %2730 = vmatmul.mubr.f32.vlgmr.msra.gmra.mrb[14].mxu0 %v1629_v49 }
 0x358   :  { %2733 = vmatpush3.xpose.msra.mxu0 %v1640_v47  ;;  %2734 = vmatprep.mubr.msk.f32.mxu0 %vm2917_vm0, %v2918_v5 }
 0x359   :  { %2737 = vmatprep.subr.mxu0 %v2918_v5 }
 0x35f   :  { %2735 = vmatmul.mubr.f32.vlgmr.msra.gmra.mrb[14].mxu0 %v1627_v46 }
 0x360   :  { %2738 = vmatpush3.xpose.msra.mxu0 %v3139_v2  ;;  %2739 = vmatprep.mubr.msk.f32.mxu0 %vm2917_vm0, %v2918_v5 }
 0x367   :  { %2740 = vmatmul.mubr.f32.vlgmr.msra.gmra.mrb[14].mxu0 %v1627_v46 }
 0x3a6   :  { %v2010_v56 = vpop.permute.xlu1 %2009 }
 0x3a7   :  { %v2017_v57 = vsel %vm59_vm2, %v2010_v56, 0 }
 0x3a8   :  { %v2087_v58 = vand.u32 4294901760, %v2017_v57 }
 0x3aa   :  { %v2088_v60 = vsub.f32 %v2017_v57, %v2087_v58  ;;  %v2015_v3 = vpop.permute.xlu1 %2014 }
 0x3ac   :  { %v2089_v61 = vand.u32 4294901760, %v2088_v60 }
 0x3ae   :  { %v2090_v62 = vsub.f32 %v2088_v60, %v2089_v61 }
 0x3b0   :  { %v2091_v63 = vand.u32 4294901760, %v2090_v62 }
 0x3b2   :  { %2745 = vmatmul.mubr.f32.vlgmr.msra.gmra.mrb[2].mxu1 %v2091_v63 }
 0x3b3   :  { %2748 = vmatpush3.xpose.msra.mxu1 %v2102_v1  ;;  %2749 = vmatprep.mubr.msk.f32.mxu1 %vm2917_vm0, %v2918_v5 }
 0x3b4   :  { %2752 = vmatprep.subr.mxu1 %v2918_v5 }
 0x3ba   :  { %2750 = vmatmul.mubr.f32.vlgmr.msra.gmra.mrb[2].mxu1 %v2087_v58 }
 0x3bb   :  { %2753 = vmatpush3.xpose.msra.mxu1 %v2099_v39  ;;  %2754 = vmatprep.mubr.msk.f32.mxu1 %vm2917_vm0, %v2918_v5 }
 0x3bc   :  { %2757 = vmatprep.subr.mxu1 %v2918_v5 }
 0x3c2   :  { %2755 = vmatmul.mubr.f32.vlgmr.msra.gmra.mrb[2].mxu1 %v2088_v60 }
 0x3c3   :  { %2758 = vmatpush3.xpose.msra.mxu1 %v3147_v8  ;;  %2759 = vmatprep.mubr.msk.f32.mxu1 %vm2917_vm0, %v2918_v5 }
 0x3c4   :  { %2762 = vmatprep.subr.mxu1 %v2918_v5 }
 0x3ca   :  { %2760 = vmatmul.mubr.f32.vlgmr.msra.gmra.mrb[2].mxu1 %v2089_v61 }
 0x3cb   :  { %2763 = vmatpush3.xpose.msra.mxu1 %v2100_v59  ;;  %2764 = vmatprep.mubr.msk.f32.mxu1 %vm2917_vm0, %v2918_v5 }
 0x3cc   :  { %2767 = vmatprep.subr.mxu1 %v2918_v5 }
 0x3d2   :  { %2765 = vmatmul.mubr.f32.vlgmr.msra.gmra.mrb[2].mxu1 %v2087_v58 }
 0x3d3   :  { %2768 = vmatpush3.xpose.msra.mxu1 %v3147_v8  ;;  %2769 = vmatprep.mubr.msk.f32.mxu1 %vm2917_vm0, %v2918_v5 }
 0x3da   :  { %2770 = vmatmul.mubr.f32.vlgmr.msra.gmra.mrb[2].mxu1 %v2087_v58 }
 0x43a   :  { %v2003_v4 = vpop.f32.mrb[14].mxu0 }
 0x43b   :  { %v2827_v0 = vadd.f32 %v2003_v4, %v1554_v54  ;;  %v2741_v2 = vpop.f32.mrb[15].mxu0 }
 0x43d   :  { %2007 = vst.msk [vmem:[#allocation2] sm:$0xff] %vm59_vm2, %v2827_v0 }
 0x4ad   :  { %v2463_v6 = vpop.f32.mrb[2].mxu1 }
 0x4ae   :  { %v2828_v7 = vadd.f32 %v2463_v6, %v2015_v3  ;;  %v2771_v9 = vpop.f32.mrb[3].mxu1 }
 0x4b0   :  { %2468 = vst.msk [vmem:[#allocation2 + $0x8] sm:$0xff] %vm59_vm2, %v2828_v7 }
 0x4b1   :  { %2901 = shalt.err (!%p2898_p4)
}
 0x4b2   :  { %s2902_s27 = scalar_lea.hbm %s3227_s10, 256 }
 0x4b3   :  { %p2903_p5 = scmp.ne.s32.totalorder %s3227_s10, %s2902_s27  ;;  %p2906_p6 = scmp.lt.u32.totalorder %s2902_s27, %s3227_s10 }
 0x4b5   :  { %p2908_p7 = pnand %p2906_p6, %p2903_p5 }
 0x4b7   :  { %2911 = shalt.err (!%p2908_p7)
}
 0x4b8   :  { %s2924_s29 = smov 128  }
 0x4b9   :  { %2480 = dma.vmem_to_hbm [thread:$0]  %s2475_s23, 256, %s3227_s10, [#allocation3], %s2924_s29, %s2924_s29, %s2919_s21  }
 0x4ba   :  { %2912 = dma.done.wait [#allocation3], 256  }
 0x4bb   :  { %2913 = vsyncadd [#allocation3], 4294967040 }
 0x4bc   :  { %2484 = vsyncpa [#allocation3], 1 }

</bundles_post_ra>
